<compile_context>
chip_gen: v7x
topology: tpu7x:2x2x1
jax: 0.10.0
libtpu: 0.0.40
codegen_flags: <defaults>
</compile_context>

<pallas_src>
import functools

import numpy as np
import jax
import jax.numpy as jnp
from jax import lax
from jax.experimental import pallas as pl
from jax.experimental.pallas import tpu as pltpu

_COUT_PAD = 8      # conv2 output channels padded 3 -> 8 (one sublane tile)
_K1_PAD = 32       # conv1 contraction 9*3 = 27 padded -> 32


def _round_up(x, m):
    return (x + m - 1) // m * m


# ----------------------------------------------------------------------------
# fused kernel: conv3x3(3->64) + bias + ReLU + conv3x3(64->3) + bias
# one image per grid step; the layer-1 activation never leaves VMEM.
# ----------------------------------------------------------------------------
def _fused_gan_kernel(x_ref, w1_ref, b1_ref, w2_ref, b2_ref, mask_ref, o_ref,
                      hbuf_ref, p1_ref, p2_ref, *, H, W, Wp, E, OFF):
    Cin = x_ref.shape[0]                       # 3
    C1 = hbuf_ref.shape[0]                     # 64
    Lh = H * Wp                                # flat (width-padded) image size
    Lext = hbuf_ref.shape[1]                   # Lh + 2*E (halo for conv2 taps)

    taps = [(oy, ox) for oy in (-1, 0, 1) for ox in (-1, 0, 1)]  # t = kh*3 + kw

    # ---- conv1: gather the 9 shifted (Cin, Lext) lane-windows of the
    #      channel-major input into a (32, Lext) patch, then ONE MXU dot.
    #      (x already carries its zero padding from the XLA-side width pad.)
    for t, (_, _) in enumerate(taps):
        d = taps[t][0] * Wp + taps[t][1]
        lo = OFF - E + d
        p1_ref[t * Cin:(t + 1) * Cin, :] = x_ref[:, lo:lo + Lext]
    # pad rows 27..31 of the patch (they meet zero w1 columns, but must be
    # finite); rewritten every step -> no persistent-scratch assumptions.
    p1_ref[9 * Cin:, :] = jnp.zeros((_K1_PAD - 9 * Cin, Lext), p1_ref.dtype)

    h = jnp.dot(w1_ref[...], p1_ref[...], preferred_element_type=jnp.float32)
    h = jnp.maximum(h + b1_ref[...], 0.0)                       # bias + ReLU

    # zero h at every non-image position (wrap columns + vertical halo) so
    # conv2's shifted reads see true zero padding, then stage it in VMEM.
    hbuf_ref[...] = h * mask_ref[...]

    # ---- conv2: same patch trick over the 64-channel activation, then ONE
    #      NN dot (8, 576) @ (576, Lh) -> channel-major, lane-dense output.
    for t, (_, _) in enumerate(taps):
        d = taps[t][0] * Wp + taps[t][1]
        lo = E + d
        p2_ref[t * C1:(t + 1) * C1, :] = hbuf_ref[:, lo:lo + Lh]

    out = jnp.dot(w2_ref[...], p2_ref[...], preferred_element_type=jnp.float32)
    o_ref[...] = (out + b2_ref[...]).astype(o_ref.dtype)        # full-tile store


# ----------------------------------------------------------------------------
# host-side helpers (one-time packing; tiny trace-time constants)
# ----------------------------------------------------------------------------
def _interior_mask(H, W, Wp, E):
    """(1, Lext) {0,1} mask: 1 exactly at real image positions."""
    Lh = H * Wp
    jp = np.arange(Lh + 2 * E) - E             # center position of each column
    ok = (jp >= 0) & (jp < Lh) & ((jp % Wp) < W)
    return ok.astype(np.float32).reshape(1, -1)


def pack_params(params):
    """One-time repack of PyTorch-layout Conv2d params into kernel layout."""
    w1 = params["w1"]                          # (64, 3, 3, 3)  (Cout, Cin, kh, kw)
    w2 = params["w2"]                          # (3, 64, 3, 3)
    c1, cin = w1.shape[0], w1.shape[1]
    cout = w2.shape[0]
    # conv1: patch row k = tap*Cin + cin  (tap = kh*3 + kw), padded 27 -> 32.
    w1k = jnp.transpose(w1, (0, 2, 3, 1)).reshape(c1, 9 * cin)
    w1k = jnp.pad(w1k, ((0, 0), (0, _K1_PAD - 9 * cin)))
    # conv2: patch row k = tap*C1 + c1;  output channels padded 3 -> 8.
    w2k = jnp.transpose(w2, (0, 2, 3, 1)).reshape(cout, 9 * c1)
    w2k = jnp.pad(w2k, ((0, _COUT_PAD - cout), (0, 0)))
    b2p = jnp.pad(params["b2"], (0, _COUT_PAD - cout)).reshape(_COUT_PAD, 1)
    return {
        "w1k": w1k.astype(jnp.float32),                 # (64, 32)
        "b1": params["b1"].reshape(c1, 1).astype(jnp.float32),
        "w2k": w2k.astype(jnp.float32),                 # (8, 576)
        "b2": b2p.astype(jnp.float32),
    }


def simple_gan_forward(x_nchw, packed, *, cout=3):
    N, cin, H, W = x_nchw.shape
    c1 = packed["w1k"].shape[0]                # 64

    # geometry: width-padded flat layout, everything on the lane axis.
    Wp = _round_up(W + 1, 8)                   # padded row stride (>= W+1)
    E = _round_up(Wp + 1, 8)                   # conv2 halo width
    OFF = _round_up(E + Wp + 1, 8)             # image start lane in the buffer
    Lh = H * Wp
    Lext = Lh + 2 * E
    BUF = _round_up(OFF + Lh + E + Wp + 1, 128)

    # NCHW is already channel-major: no transpose, just zero pads + reshape.
    x_w = jnp.pad(x_nchw, ((0, 0), (0, 0), (0, 0), (0, Wp - W)))
    x_buf = jnp.pad(x_w.reshape(N, cin, Lh),
                    ((0, 0), (0, 0), (OFF, BUF - OFF - Lh)))     # (N, Cin, BUF)

    mask = jnp.asarray(_interior_mask(H, W, Wp, E))              # (1, Lext)

    kernel = functools.partial(_fused_gan_kernel, H=H, W=W, Wp=Wp, E=E, OFF=OFF)

    out = pl.pallas_call(
        kernel,
        out_shape=jax.ShapeDtypeStruct((N, _COUT_PAD, Lh), jnp.float32),
        grid=(N,),
        in_specs=[
            pl.BlockSpec((None, cin, BUF), lambda i: (i, 0, 0)),
            pl.BlockSpec((c1, _K1_PAD), lambda i: (0, 0)),
            pl.BlockSpec((c1, 1), lambda i: (0, 0)),
            pl.BlockSpec((_COUT_PAD, 9 * c1), lambda i: (0, 0)),
            pl.BlockSpec((_COUT_PAD, 1), lambda i: (0, 0)),
            pl.BlockSpec((1, Lext), lambda i: (0, 0)),
        ],
        out_specs=pl.BlockSpec((None, _COUT_PAD, Lh), lambda i: (i, 0, 0)),
        scratch_shapes=[
            pltpu.VMEM((c1, Lext), jnp.float32),        # staged layer-1 act
            pltpu.VMEM((_K1_PAD, Lext), jnp.float32),   # conv1 patch (32, L)
            pltpu.VMEM((9 * c1, Lh), jnp.float32),      # conv2 patch (576, L)
        ],
        compiler_params=pltpu.CompilerParams(
            dimension_semantics=("parallel",),          # batch across TCs
            vmem_limit_bytes=32 * 1024 * 1024),         # explicit, v7x-safe
    )(x_buf, packed["w1k"], packed["b1"], packed["w2k"], packed["b2"], mask)

    # (N, 8, H*Wp) -> NCHW: reshape + static slice only (no transpose).
    return out.reshape(N, _COUT_PAD, H, Wp)[:, :cout, :, :W]


# ----------------------------------------------------------------------------
# init / reference (pure JAX, only used to validate the kernel)
# ----------------------------------------------------------------------------
def init_params(key):
    k1, k2, k3, k4 = jax.random.split(key, 4)
    bound1 = 1.0 / jnp.sqrt(3 * 3 * 3)
    bound2 = 1.0 / jnp.sqrt(64 * 3 * 3)
    return {
        "w1": jax.random.uniform(k1, (64, 3, 3, 3), jnp.float32, -bound1, bound1),
        "b1": jax.random.uniform(k2, (64,), jnp.float32, -bound1, bound1),
        "w2": jax.random.uniform(k3, (3, 64, 3, 3), jnp.float32, -bound2, bound2),
        "b2": jax.random.uniform(k4, (3,), jnp.float32, -bound2, bound2),
    }


def reference_forward(x_nchw, params):
    x = jnp.transpose(x_nchw, (0, 2, 3, 1))
    dn = ("NHWC", "HWIO", "NHWC")
    w1 = jnp.transpose(params["w1"], (2, 3, 1, 0))
    w2 = jnp.transpose(params["w2"], (2, 3, 1, 0))
    h = lax.conv_general_dilated(x, w1, (1, 1), "SAME", dimension_numbers=dn)
    h = jnp.maximum(h + params["b1"], 0.0)
    y = lax.conv_general_dilated(h, w2, (1, 1), "SAME", dimension_numbers=dn)
    y = y + params["b2"]
    return jnp.transpose(y, (0, 3, 1, 2))


if __name__ == "__main__":
    key = jax.random.PRNGKey(0)
    kp, kx = jax.random.split(key)
    params = init_params(kp)
    x = jax.random.normal(kx, (2, 3, 16, 16), jnp.float32)   # NCHW like PyTorch

    packed = pack_params(params)
    out = jax.jit(simple_gan_forward)(x, packed)
    out = jax.block_until_ready(out)
    assert out.shape == (2, 3, 16, 16), out.shape

    ref = reference_forward(x, params)
    err = float(jnp.max(jnp.abs(out - ref)))
    assert err < 1e-4, err

    print("KERNEL_OK")
</pallas_src>

<mosaic_0001>
module attributes {stable_mosaic.version = 11 : i64} {
  func.func @_fused_gan_kernel(%arg0: i32, %arg1: memref<1x3x512xf32, #tpu.memory_space<vmem>>, %arg2: memref<64x32xf32, #tpu.memory_space<vmem>>, %arg3: memref<64x1xf32, #tpu.memory_space<vmem>>, %arg4: memref<8x576xf32, #tpu.memory_space<vmem>>, %arg5: memref<8x1xf32, #tpu.memory_space<vmem>>, %arg6: memref<1x448xf32, #tpu.memory_space<vmem>>, %arg7: memref<1x8x384xf32, #tpu.memory_space<vmem>>, %arg8: memref<64x448xf32, #tpu.memory_space<vmem>>, %arg9: memref<32x448xf32, #tpu.memory_space<vmem>>, %arg10: memref<576x384xf32, #tpu.memory_space<vmem>>) attributes {dimension_semantics = [#tpu.dimension_semantics<parallel>], iteration_bounds = array<i64: 2>, scalar_prefetch = 0 : i64, scratch_operands = 3 : i64, tpu.core_type = #tpu.core_type<tc>, window_params = [{transform_indices = @transform_0, window_bounds = array<i64: 1, 3, 512>}, {pipeline_mode = #tpu.pipeline_mode<synchronous>, transform_indices = @transform_1, window_bounds = array<i64: 64, 32>}, {pipeline_mode = #tpu.pipeline_mode<synchronous>, transform_indices = @transform_2, window_bounds = array<i64: 64, 1>}, {pipeline_mode = #tpu.pipeline_mode<synchronous>, transform_indices = @transform_3, window_bounds = array<i64: 8, 576>}, {pipeline_mode = #tpu.pipeline_mode<synchronous>, transform_indices = @transform_4, window_bounds = array<i64: 8, 1>}, {pipeline_mode = #tpu.pipeline_mode<synchronous>, transform_indices = @transform_5, window_bounds = array<i64: 1, 448>}, {transform_indices = @transform_6, window_bounds = array<i64: 1, 8, 384>}]} {
    %c0 = arith.constant 0 : index
    %c0_0 = arith.constant 0 : index
    %c7 = arith.constant 7 : index
    %0 = vector.load %arg1[%c0, %c0_0, %c7] : memref<1x3x512xf32, #tpu.memory_space<vmem>>, vector<1x3x448xf32>
    %1 = vector.shape_cast %0 : vector<1x3x448xf32> to vector<3x448xf32>
    %c0_1 = arith.constant 0 : index
    %c0_2 = arith.constant 0 : index
    %2 = vector.load %arg9[%c0_1, %c0_2] : memref<32x448xf32, #tpu.memory_space<vmem>>, vector<3x448xf32>
    tpu.vector_store %arg9[%c0_1, %c0_2], %1 {strides = array<i32>} : memref<32x448xf32, #tpu.memory_space<vmem>>, vector<3x448xf32>,
    %c0_3 = arith.constant 0 : index
    %c0_4 = arith.constant 0 : index
    %c8 = arith.constant 8 : index
    %3 = vector.load %arg1[%c0_3, %c0_4, %c8] : memref<1x3x512xf32, #tpu.memory_space<vmem>>, vector<1x3x448xf32>
    %4 = vector.shape_cast %3 : vector<1x3x448xf32> to vector<3x448xf32>
    %c3 = arith.constant 3 : index
    %c0_5 = arith.constant 0 : index
    %5 = vector.load %arg9[%c3, %c0_5] : memref<32x448xf32, #tpu.memory_space<vmem>>, vector<3x448xf32>
    tpu.vector_store %arg9[%c3, %c0_5], %4 {strides = array<i32>} : memref<32x448xf32, #tpu.memory_space<vmem>>, vector<3x448xf32>,
    %c0_6 = arith.constant 0 : index
    %c0_7 = arith.constant 0 : index
    %c9 = arith.constant 9 : index
    %6 = vector.load %arg1[%c0_6, %c0_7, %c9] : memref<1x3x512xf32, #tpu.memory_space<vmem>>, vector<1x3x448xf32>
    %7 = vector.shape_cast %6 : vector<1x3x448xf32> to vector<3x448xf32>
    %c6 = arith.constant 6 : index
    %c0_8 = arith.constant 0 : index
    %8 = vector.load %arg9[%c6, %c0_8] : memref<32x448xf32, #tpu.memory_space<vmem>>, vector<3x448xf32>
    tpu.vector_store %arg9[%c6, %c0_8], %7 {strides = array<i32>} : memref<32x448xf32, #tpu.memory_space<vmem>>, vector<3x448xf32>,
    %c0_9 = arith.constant 0 : index
    %c0_10 = arith.constant 0 : index
    %c31 = arith.constant 31 : index
    %9 = vector.load %arg1[%c0_9, %c0_10, %c31] : memref<1x3x512xf32, #tpu.memory_space<vmem>>, vector<1x3x448xf32>
    %10 = vector.shape_cast %9 : vector<1x3x448xf32> to vector<3x448xf32>
    %c9_11 = arith.constant 9 : index
    %c0_12 = arith.constant 0 : index
    %11 = vector.load %arg9[%c9_11, %c0_12] : memref<32x448xf32, #tpu.memory_space<vmem>>, vector<3x448xf32>
    tpu.vector_store %arg9[%c9_11, %c0_12], %10 {strides = array<i32>} : memref<32x448xf32, #tpu.memory_space<vmem>>, vector<3x448xf32>,
    %c0_13 = arith.constant 0 : index
    %c0_14 = arith.constant 0 : index
    %c32 = arith.constant 32 : index
    %12 = vector.load %arg1[%c0_13, %c0_14, %c32] : memref<1x3x512xf32, #tpu.memory_space<vmem>>, vector<1x3x448xf32>
    %13 = vector.shape_cast %12 : vector<1x3x448xf32> to vector<3x448xf32>
    %c12 = arith.constant 12 : index
    %c0_15 = arith.constant 0 : index
    %14 = vector.load %arg9[%c12, %c0_15] : memref<32x448xf32, #tpu.memory_space<vmem>>, vector<3x448xf32>
    tpu.vector_store %arg9[%c12, %c0_15], %13 {strides = array<i32>} : memref<32x448xf32, #tpu.memory_space<vmem>>, vector<3x448xf32>,
    %c0_16 = arith.constant 0 : index
    %c0_17 = arith.constant 0 : index
    %c33 = arith.constant 33 : index
    %15 = vector.load %arg1[%c0_16, %c0_17, %c33] : memref<1x3x512xf32, #tpu.memory_space<vmem>>, vector<1x3x448xf32>
    %16 = vector.shape_cast %15 : vector<1x3x448xf32> to vector<3x448xf32>
    %c15 = arith.constant 15 : index
    %c0_18 = arith.constant 0 : index
    %17 = vector.load %arg9[%c15, %c0_18] : memref<32x448xf32, #tpu.memory_space<vmem>>, vector<3x448xf32>
    tpu.vector_store %arg9[%c15, %c0_18], %16 {strides = array<i32>} : memref<32x448xf32, #tpu.memory_space<vmem>>, vector<3x448xf32>,
    %c0_19 = arith.constant 0 : index
    %c0_20 = arith.constant 0 : index
    %c55 = arith.constant 55 : index
    %18 = vector.load %arg1[%c0_19, %c0_20, %c55] : memref<1x3x512xf32, #tpu.memory_space<vmem>>, vector<1x3x448xf32>
    %19 = vector.shape_cast %18 : vector<1x3x448xf32> to vector<3x448xf32>
    %c18 = arith.constant 18 : index
    %c0_21 = arith.constant 0 : index
    %20 = vector.load %arg9[%c18, %c0_21] : memref<32x448xf32, #tpu.memory_space<vmem>>, vector<3x448xf32>
    tpu.vector_store %arg9[%c18, %c0_21], %19 {strides = array<i32>} : memref<32x448xf32, #tpu.memory_space<vmem>>, vector<3x448xf32>,
    %c0_22 = arith.constant 0 : index
    %c0_23 = arith.constant 0 : index
    %c56 = arith.constant 56 : index
    %21 = vector.load %arg1[%c0_22, %c0_23, %c56] : memref<1x3x512xf32, #tpu.memory_space<vmem>>, vector<1x3x448xf32>
    %22 = vector.shape_cast %21 : vector<1x3x448xf32> to vector<3x448xf32>
    %c21 = arith.constant 21 : index
    %c0_24 = arith.constant 0 : index
    %23 = vector.load %arg9[%c21, %c0_24] : memref<32x448xf32, #tpu.memory_space<vmem>>, vector<3x448xf32>
    tpu.vector_store %arg9[%c21, %c0_24], %22 {strides = array<i32>} : memref<32x448xf32, #tpu.memory_space<vmem>>, vector<3x448xf32>,
    %c0_25 = arith.constant 0 : index
    %c0_26 = arith.constant 0 : index
    %c57 = arith.constant 57 : index
    %24 = vector.load %arg1[%c0_25, %c0_26, %c57] : memref<1x3x512xf32, #tpu.memory_space<vmem>>, vector<1x3x448xf32>
    %25 = vector.shape_cast %24 : vector<1x3x448xf32> to vector<3x448xf32>
    %c24 = arith.constant 24 : index
    %c0_27 = arith.constant 0 : index
    %26 = vector.load %arg9[%c24, %c0_27] : memref<32x448xf32, #tpu.memory_space<vmem>>, vector<3x448xf32>
    tpu.vector_store %arg9[%c24, %c0_27], %25 {strides = array<i32>} : memref<32x448xf32, #tpu.memory_space<vmem>>, vector<3x448xf32>,
    %cst = arith.constant 0.000000e+00 : f32
    %27 = vector.broadcast %cst : f32 to vector<5x448xf32>
    %c27 = arith.constant 27 : index
    %c0_28 = arith.constant 0 : index
    %28 = vector.load %arg9[%c27, %c0_28] : memref<32x448xf32, #tpu.memory_space<vmem>>, vector<5x448xf32>
    tpu.vector_store %arg9[%c27, %c0_28], %27 {strides = array<i32>} : memref<32x448xf32, #tpu.memory_space<vmem>>, vector<5x448xf32>,
    %c0_29 = arith.constant 0 : index
    %c0_30 = arith.constant 0 : index
    %29 = vector.load %arg2[%c0_29, %c0_30] : memref<64x32xf32, #tpu.memory_space<vmem>>, vector<64x32xf32>
    %c0_31 = arith.constant 0 : index
    %c0_32 = arith.constant 0 : index
    %30 = vector.load %arg9[%c0_31, %c0_32] : memref<32x448xf32, #tpu.memory_space<vmem>>, vector<32x448xf32>
    %cst_33 = arith.constant dense<0.000000e+00> : vector<64x448xf32>
    %31 = tpu.matmul %29, %30, %cst_33 {dimension_numbers = #tpu.dot_dimension_numbers<[1], [0], [0], [1], [0, 0, 1, 1], [], []>} : vector<64x32xf32>, vector<32x448xf32>, vector<64x448xf32> -> vector<64x448xf32>
    %c0_34 = arith.constant 0 : index
    %c0_35 = arith.constant 0 : index
    %32 = vector.load %arg3[%c0_34, %c0_35] : memref<64x1xf32, #tpu.memory_space<vmem>>, vector<64x1xf32>
    %33 = vector.broadcast %32 : vector<64x1xf32> to vector<64x448xf32>
    %34 = arith.addf %31, %33 : vector<64x448xf32>
    %cst_36 = arith.constant 0.000000e+00 : f32
    %35 = vector.broadcast %cst_36 : f32 to vector<64x448xf32>
    %36 = arith.maximumf %34, %35 : vector<64x448xf32>
    %c0_37 = arith.constant 0 : index
    %c0_38 = arith.constant 0 : index
    %37 = vector.load %arg6[%c0_37, %c0_38] : memref<1x448xf32, #tpu.memory_space<vmem>>, vector<1x448xf32>
    %38 = vector.broadcast %37 : vector<1x448xf32> to vector<64x448xf32>
    %39 = arith.mulf %36, %38 : vector<64x448xf32>
    %c0_39 = arith.constant 0 : index
    %c0_40 = arith.constant 0 : index
    %40 = vector.load %arg8[%c0_39, %c0_40] : memref<64x448xf32, #tpu.memory_space<vmem>>, vector<64x448xf32>
    tpu.vector_store %arg8[%c0_39, %c0_40], %39 {strides = array<i32>} : memref<64x448xf32, #tpu.memory_space<vmem>>, vector<64x448xf32>,
    %c0_41 = arith.constant 0 : index
    %c7_42 = arith.constant 7 : index
    %41 = vector.load %arg8[%c0_41, %c7_42] : memref<64x448xf32, #tpu.memory_space<vmem>>, vector<64x384xf32>
    %c0_43 = arith.constant 0 : index
    %c0_44 = arith.constant 0 : index
    %42 = vector.load %arg10[%c0_43, %c0_44] : memref<576x384xf32, #tpu.memory_space<vmem>>, vector<64x384xf32>
    tpu.vector_store %arg10[%c0_43, %c0_44], %41 {strides = array<i32>} : memref<576x384xf32, #tpu.memory_space<vmem>>, vector<64x384xf32>,
    %c0_45 = arith.constant 0 : index
    %c8_46 = arith.constant 8 : index
    %43 = vector.load %arg8[%c0_45, %c8_46] : memref<64x448xf32, #tpu.memory_space<vmem>>, vector<64x384xf32>
    %c64 = arith.constant 64 : index
    %c0_47 = arith.constant 0 : index
    %44 = vector.load %arg10[%c64, %c0_47] : memref<576x384xf32, #tpu.memory_space<vmem>>, vector<64x384xf32>
    tpu.vector_store %arg10[%c64, %c0_47], %43 {strides = array<i32>} : memref<576x384xf32, #tpu.memory_space<vmem>>, vector<64x384xf32>,
    %c0_48 = arith.constant 0 : index
    %c9_49 = arith.constant 9 : index
    %45 = vector.load %arg8[%c0_48, %c9_49] : memref<64x448xf32, #tpu.memory_space<vmem>>, vector<64x384xf32>
    %c128 = arith.constant 128 : index
    %c0_50 = arith.constant 0 : index
    %46 = vector.load %arg10[%c128, %c0_50] : memref<576x384xf32, #tpu.memory_space<vmem>>, vector<64x384xf32>
    tpu.vector_store %arg10[%c128, %c0_50], %45 {strides = array<i32>} : memref<576x384xf32, #tpu.memory_space<vmem>>, vector<64x384xf32>,
    %c0_51 = arith.constant 0 : index
    %c31_52 = arith.constant 31 : index
    %47 = vector.load %arg8[%c0_51, %c31_52] : memref<64x448xf32, #tpu.memory_space<vmem>>, vector<64x384xf32>
    %c192 = arith.constant 192 : index
    %c0_53 = arith.constant 0 : index
    %48 = vector.load %arg10[%c192, %c0_53] : memref<576x384xf32, #tpu.memory_space<vmem>>, vector<64x384xf32>
    tpu.vector_store %arg10[%c192, %c0_53], %47 {strides = array<i32>} : memref<576x384xf32, #tpu.memory_space<vmem>>, vector<64x384xf32>,
    %c0_54 = arith.constant 0 : index
    %c32_55 = arith.constant 32 : index
    %49 = vector.load %arg8[%c0_54, %c32_55] : memref<64x448xf32, #tpu.memory_space<vmem>>, vector<64x384xf32>
    %c256 = arith.constant 256 : index
    %c0_56 = arith.constant 0 : index
    %50 = vector.load %arg10[%c256, %c0_56] : memref<576x384xf32, #tpu.memory_space<vmem>>, vector<64x384xf32>
    tpu.vector_store %arg10[%c256, %c0_56], %49 {strides = array<i32>} : memref<576x384xf32, #tpu.memory_space<vmem>>, vector<64x384xf32>,
    %c0_57 = arith.constant 0 : index
    %c33_58 = arith.constant 33 : index
    %51 = vector.load %arg8[%c0_57, %c33_58] : memref<64x448xf32, #tpu.memory_space<vmem>>, vector<64x384xf32>
    %c320 = arith.constant 320 : index
    %c0_59 = arith.constant 0 : index
    %52 = vector.load %arg10[%c320, %c0_59] : memref<576x384xf32, #tpu.memory_space<vmem>>, vector<64x384xf32>
    tpu.vector_store %arg10[%c320, %c0_59], %51 {strides = array<i32>} : memref<576x384xf32, #tpu.memory_space<vmem>>, vector<64x384xf32>,
    %c0_60 = arith.constant 0 : index
    %c55_61 = arith.constant 55 : index
    %53 = vector.load %arg8[%c0_60, %c55_61] : memref<64x448xf32, #tpu.memory_space<vmem>>, vector<64x384xf32>
    %c384 = arith.constant 384 : index
    %c0_62 = arith.constant 0 : index
    %54 = vector.load %arg10[%c384, %c0_62] : memref<576x384xf32, #tpu.memory_space<vmem>>, vector<64x384xf32>
    tpu.vector_store %arg10[%c384, %c0_62], %53 {strides = array<i32>} : memref<576x384xf32, #tpu.memory_space<vmem>>, vector<64x384xf32>,
    %c0_63 = arith.constant 0 : index
    %c56_64 = arith.constant 56 : index
    %55 = vector.load %arg8[%c0_63, %c56_64] : memref<64x448xf32, #tpu.memory_space<vmem>>, vector<64x384xf32>
    %c448 = arith.constant 448 : index
    %c0_65 = arith.constant 0 : index
    %56 = vector.load %arg10[%c448, %c0_65] : memref<576x384xf32, #tpu.memory_space<vmem>>, vector<64x384xf32>
    tpu.vector_store %arg10[%c448, %c0_65], %55 {strides = array<i32>} : memref<576x384xf32, #tpu.memory_space<vmem>>, vector<64x384xf32>,
    %c0_66 = arith.constant 0 : index
    %c57_67 = arith.constant 57 : index
    %57 = vector.load %arg8[%c0_66, %c57_67] : memref<64x448xf32, #tpu.memory_space<vmem>>, vector<64x384xf32>
    %c512 = arith.constant 512 : index
    %c0_68 = arith.constant 0 : index
    %58 = vector.load %arg10[%c512, %c0_68] : memref<576x384xf32, #tpu.memory_space<vmem>>, vector<64x384xf32>
    tpu.vector_store %arg10[%c512, %c0_68], %57 {strides = array<i32>} : memref<576x384xf32, #tpu.memory_space<vmem>>, vector<64x384xf32>,
    %c0_69 = arith.constant 0 : index
    %c0_70 = arith.constant 0 : index
    %59 = vector.load %arg4[%c0_69, %c0_70] : memref<8x576xf32, #tpu.memory_space<vmem>>, vector<8x576xf32>
    %c0_71 = arith.constant 0 : index
    %c0_72 = arith.constant 0 : index
    %60 = vector.load %arg10[%c0_71, %c0_72] : memref<576x384xf32, #tpu.memory_space<vmem>>, vector<576x384xf32>
    %cst_73 = arith.constant dense<0.000000e+00> : vector<8x384xf32>
    %61 = tpu.matmul %59, %60, %cst_73 {dimension_numbers = #tpu.dot_dimension_numbers<[1], [0], [0], [1], [0, 0, 1, 1], [], []>} : vector<8x576xf32>, vector<576x384xf32>, vector<8x384xf32> -> vector<8x384xf32>
    %c0_74 = arith.constant 0 : index
    %c0_75 = arith.constant 0 : index
    %62 = vector.load %arg5[%c0_74, %c0_75] : memref<8x1xf32, #tpu.memory_space<vmem>>, vector<8x1xf32>
    %63 = vector.broadcast %62 : vector<8x1xf32> to vector<8x384xf32>
    %64 = arith.addf %61, %63 : vector<8x384xf32>
    %c0_76 = arith.constant 0 : index
    %c0_77 = arith.constant 0 : index
    %c0_78 = arith.constant 0 : index
    %65 = vector.load %arg7[%c0_76, %c0_77, %c0_78] : memref<1x8x384xf32, #tpu.memory_space<vmem>>, vector<1x8x384xf32>
    %66 = vector.shape_cast %65 : vector<1x8x384xf32> to vector<8x384xf32>
    %67 = vector.shape_cast %64 : vector<8x384xf32> to vector<1x8x384xf32>
    tpu.vector_store %arg7[%c0_76, %c0_77, %c0_78], %67 {strides = array<i32>} : memref<1x8x384xf32, #tpu.memory_space<vmem>>, vector<1x8x384xf32>,
    return
  }
  func.func @transform_0(%arg0: i32) -> (i32, i32, i32) {
    %c0_i32 = arith.constant 0 : i32
    %c0_i32_0 = arith.constant 0 : i32
    %c0_i32_1 = arith.constant 0 : i32
    return %arg0, %c0_i32, %c0_i32_0 : i32, i32, i32
  }
  func.func @transform_1(%arg0: i32) -> (i32, i32) {
    %c0_i32 = arith.constant 0 : i32
    %c0_i32_0 = arith.constant 0 : i32
    %c0_i32_1 = arith.constant 0 : i32
    return %c0_i32, %c0_i32_0 : i32, i32
  }
  func.func @transform_2(%arg0: i32) -> (i32, i32) {
    %c0_i32 = arith.constant 0 : i32
    %c0_i32_0 = arith.constant 0 : i32
    %c0_i32_1 = arith.constant 0 : i32
    return %c0_i32, %c0_i32_0 : i32, i32
  }
  func.func @transform_3(%arg0: i32) -> (i32, i32) {
    %c0_i32 = arith.constant 0 : i32
    %c0_i32_0 = arith.constant 0 : i32
    %c0_i32_1 = arith.constant 0 : i32
    return %c0_i32, %c0_i32_0 : i32, i32
  }
  func.func @transform_4(%arg0: i32) -> (i32, i32) {
    %c0_i32 = arith.constant 0 : i32
    %c0_i32_0 = arith.constant 0 : i32
    %c0_i32_1 = arith.constant 0 : i32
    return %c0_i32, %c0_i32_0 : i32, i32
  }
  func.func @transform_5(%arg0: i32) -> (i32, i32) {
    %c0_i32 = arith.constant 0 : i32
    %c0_i32_0 = arith.constant 0 : i32
    %c0_i32_1 = arith.constant 0 : i32
    return %c0_i32, %c0_i32_0 : i32, i32
  }
  func.func @transform_6(%arg0: i32) -> (i32, i32, i32) {
    %c0_i32 = arith.constant 0 : i32
    %c0_i32_0 = arith.constant 0 : i32
    %c0_i32_1 = arith.constant 0 : i32
    return %arg0, %c0_i32, %c0_i32_0 : i32, i32, i32
  }
}

</mosaic_0001>

<bundles_post_ra>
// kernel: simple_gan_forward.1
= control target key start
LH: loop header
LB: loop body
LE: loop exit
PB: predicated region body
PF: predicated region fallthrough
CT: control target
= control target key end

     0   :  { %s4673_s21 = smov 0   ;;  %s6760_s0 = inlined_call_operand.vmem [shape: f32[2,3,512], index: 0, kind: input, shape index: {}]   ;;  %s6761_s1 = inlined_call_operand.vmem [shape: f32[64,32], index: 1, kind: input, shape index: {}]   ;;  %s6762_s2 = inlined_call_operand.vmem [shape: f32[64,1], index: 2, kind: input, shape index: {}]   ;;  %s6763_s3 = inlined_call_operand.vmem [shape: f32[8,576], index: 3, kind: input, shape index: {}]   ;;  %s6764_s4 = inlined_call_operand.vmem [shape: f32[8,1], index: 4, kind: input, shape index: {}]   ;;  %s6765_s5 = inlined_call_operand.vmem [shape: f32[1,448], index: 5, kind: input, shape index: {}]   ;;  %s6766_s6 = inlined_call_operand.vmem [shape: f32[2,8,384], index: 6, kind: output, shape index: {}]  }
   0x1 LB: > { %s3486_s22 = sadd.s32 4294967295, %s4623_s21   ;;  %p3490_p0 = scmp.ge.s32.totalorder %s4623_s21, 1  ;;  %s4623_s21 = sphi %s4673_s21, %s16_s21  }
   0x2   : > { %p212_p1 = scmp.lt.s32.totalorder %s4623_s21, 3 }
   0x4   : > { %p213_p2 = pnand %p3490_p0, %p212_p1 }
   0x6   : > { %216 = sbr.rel (%p213_p2) target bundleno = 1084 (0x43c), region = 44 }
   0xd   : > { %p242_p3 = scmp.lt.s32.totalorder %s3486_s22, 1  ;;  %s4625_s27 = smov 121   ;;  %v6767_v47 = vmov 0.0   ;;  %vm531_vm0 = vcmask 523267   ;;  %v557_v61 = vld [vmem:[%s6762_s2] sm:$0xff]  ;;  %v4635_v62 = vmov 0  }
   0xe   : > { %s4626_s28 = smov 120   ;;  %s4627_s29 = smov 119   ;;  %529 = vst [vmem:[#allocation3 + $0x68] sm:$0xf8] %v6767_v47  ;;  %528 = vst [vmem:[#allocation3 + $0x60] sm:$0xf8] %v6767_v47  ;;  %694 = vmatprep.mubr.f32.mxu0 %v6767_v47  ;;  %807 = vmatprep.mubr.f32.mxu1 %v6767_v47 }
   0xf   : > { %s7140_s22 = smov (!%p242_p3, %s3486_s22), 1  ;;  %s4628_s30 = smov 97   ;;  %530 = vst [vmem:[#allocation3 + $0x70] sm:$0xf8] %v6767_v47  ;;  %532 = vst.msk [vmem:[#allocation3 + $0x78] sm:$0xf8] %vm531_vm0, %v6767_v47  ;;  %3877 = vset.pattern.permute.xlu0 %v4635_v62  ;;  %3878 = vset.pattern.permute.xlu1 %v4635_v62 }
  0x10   : > { %s3514_s23 = sshll.u32 %s7140_s22, 4  ;;  %s4629_s7 = smov 96   ;;  %v558_v63 = vld [vmem:[%s6762_s2 + $0x8] sm:$0xff]  ;;  %vm266_vm1 = vcmask 990208   ;;  %vm328_vm2 = vcmask 973824   ;;  %vm297_vm3 = vcmask 982016  }
  0x11   : > { %s4687_s26 = scalar_lea.vmem %s6760_s0, %s3514_s23  ;;  %s4630_s8 = smov 95   ;;  %vm364_vm4 = vcmask 793600   ;;  %vm391_vm5 = vcmask 785408   ;;  %vm422_vm6 = vcmask 777216   ;;  %vm277_vm7 = vcmask 518144  }
  0x12   : > { %v253_v0 = vld [vmem:[%s4687_s26 + $0x8] sm:$0x77]  ;;  %v252_v2 = vld [vmem:[%s4687_s26] sm:$0x77]  ;;  %s4632_s9 = smov 73   ;;  %s4633_s10 = smov 72  }
  0x13   : > { %v280_v1 = vld [vmem:[%s4687_s26 + $0x8] sm:$0x77]  ;;  %262 = vrot.lane.b32.xlu0 %v253_v0, %s4625_s27  ;;  %v256_v4 = vcombine.high %v252_v2, %v252_v2  ;;  %v310_v6 = vld [vmem:[%s4687_s26] sm:$0x77]  ;;  %v257_v32 = vcombine.high %v253_v0, %v253_v0  ;;  %s4634_s11 = smov 71   ;;  %v560_v0 = vld [vmem:[%s6762_s2 + $0x18] sm:$0xff] }
  0x14   : > { %v287_v3 = vrot.slane %v280_v1, 5  ;;  %v311_v5 = vld [vmem:[%s4687_s26 + $0x8] sm:$0x77]  ;;  %v314_v7 = vcombine.high %v310_v6, %v310_v6  ;;  %v279_v8 = vld [vmem:[%s4687_s26] sm:$0x77]  ;;  %v316_v27 = vrot.slane %v310_v6, 2  ;;  %v284_v30 = vcombine.high %v280_v1, %v280_v1 }
  0x15   : > { %v346_v9 = vld [vmem:[%s4687_s26] sm:$0x77]  ;;  %v318_v10 = vrot.slane %v311_v5, 2  ;;  %v283_v11 = vcombine.high %v279_v8, %v279_v8  ;;  %v347_v15 = vld [vmem:[%s4687_s26 + $0x8] sm:$0x77]  ;;  %v285_v26 = vrot.slane %v279_v8, 5  ;;  %v315_v33 = vcombine.high %v311_v5, %v311_v5 }
  0x16   : > { %293 = vrot.lane.b32.xlu1 %v287_v3, %s4626_s28  ;;  %v317_v12 = vrot.slane %v314_v7, 2  ;;  %v350_v13 = vcombine.high %v346_v9, %v346_v9  ;;  %v404_v17 = vld [vmem:[%s4687_s26] sm:$0x77]  ;;  %v354_v18 = vrot.slane %v347_v15, 7  ;;  %v378_v19 = vld [vmem:[%s4687_s26 + $0x8] sm:$0x77]  ;;  %v351_v35 = vcombine.high %v347_v15, %v347_v15 }
  0x17   : > { %260 = vrot.lane.b32.xlu0 %v256_v4, %s4625_s27  ;;  %v286_v14 = vrot.slane %v283_v11, 5  ;;  %v408_v20 = vcombine.high %v404_v17, %v404_v17  ;;  %v377_v21 = vld [vmem:[%s4687_s26] sm:$0x77]  ;;  %v382_v22 = vcombine.low %v378_v19, %v378_v19  ;;  %v405_v23 = vld [vmem:[%s4687_s26 + $0x8] sm:$0x77]  ;;  %v352_v28 = vrot.slane %v346_v9, 7 }
  0x18   : > { %v353_v16 = vrot.slane %v350_v13, 7  ;;  %v412_v25 = vrot.slane %v405_v23, 1  ;;  %v381_v29 = vcombine.low %v377_v21, %v377_v21  ;;  %v410_v31 = vrot.slane %v404_v17, 1  ;;  %v440_v37 = vld [vmem:[%s4687_s26] sm:$0x77]  ;;  %v559_v1 = vld [vmem:[%s6762_s2 + $0x10] sm:$0xff] }
  0x19   : > { %v411_v24 = vrot.slane %v408_v20, 1  ;;  %v288_v34 = vrot.slane %v284_v30, 5  ;;  %v319_v36 = vrot.slane %v315_v33, 2  ;;  %v355_v38 = vrot.slane %v351_v35, 7  ;;  %v471_v41 = vld [vmem:[%s4687_s26] sm:$0x77] }
  0x1a   : > { %324 = vrot.lane.b32.xlu1 %v318_v10, %s4627_s29  ;;  %v409_v39 = vcombine.high %v405_v23, %v405_v23  ;;  %v444_v40 = vcombine.high %v440_v37, %v440_v37  ;;  %v441_v43 = vld [vmem:[%s4687_s26 + $0x8] sm:$0x77]  ;;  %v475_v45 = vcombine.high %v471_v41, %v471_v41  ;;  %v502_v50 = vld [vmem:[%s4687_s26] sm:$0x77]  ;;  %v446_v54 = vrot.slane %v440_v37, 6  ;;  %v564_v4 = vld [vmem:[%s6762_s2 + $0x38] sm:$0xff] }
  0x1b   : > { %322 = vrot.lane.b32.xlu0 %v317_v12, %s4627_s29  ;;  %v448_v46 = vrot.slane %v441_v43, 6  ;;  %v472_v48 = vld [vmem:[%s4687_s26 + $0x8] sm:$0x77]  ;;  %v506_v52 = vcombine.high %v502_v50, %v502_v50  ;;  %v477_v55 = vrot.slane %v471_v41, 3  ;;  %v445_v56 = vcombine.high %v441_v43, %v441_v43  ;;  %v561_v3 = vld [vmem:[%s6762_s2 + $0x20] sm:$0xff]  ;;  %v563_v5 = vld [vmem:[%s6762_s2 + $0x30] sm:$0xff] }
  0x1c   : > { %v413_v42 = vrot.slane %v409_v39, 1  ;;  %v447_v44 = vrot.slane %v444_v40, 6  ;;  %v478_v49 = vrot.slane %v475_v45, 3  ;;  %v479_v51 = vrot.slane %v472_v48, 3  ;;  %v503_v53 = vld [vmem:[%s4687_s26 + $0x8] sm:$0x77] }
  0x1d   : > { %v476_v57 = vcombine.high %v472_v48, %v472_v48  ;;  %v449_v58 = vrot.slane %v445_v56, 6  ;;  %v507_v60 = vcombine.high %v503_v53, %v503_v53  ;;  %vm308_vm8 = vcmask 521219   ;;  %s3855_s25 = smul.u32 24, %s7140_s22 }
  0x1e   : > { %291 = vrot.lane.b32.xlu1 %v286_v14, %s4626_s28  ;;  %vm339_vm9 = vcmask 523270   ;;  %vm344_vm10 = vcmask 516096   ;;  %vm375_vm11 = vcmask 519169   ;;  %vm402_vm12 = vcmask 522244  }
  0x1f   : > { %358 = vrot.lane.b32.xlu0 %v353_v16, %s4628_s30  ;;  %v480_v59 = vrot.slane %v476_v57, 3  ;;  %vm433_vm13 = vcmask 523271   ;;  %vm438_vm14 = vcmask 517120   ;;  %vm458_vm15 = vcmask 596992   ;;  %s251_s13 = scalar_lea.vmem %s6766_s6, %s3855_s25 }
  0x20   : > { %vm489_vm0 = vcmask 588800  }
  0x22   : > { %360 = vrot.lane.b32.xlu1 %v354_v18, %s4628_s30 }
  0x23   : > { %385 = vrot.lane.b32.xlu0 %v377_v21, %s4629_s7 }
  0x26   : > { %387 = vrot.lane.b32.xlu1 %v382_v22, %s4629_s7 }
  0x27   : > { %416 = vrot.lane.b32.xlu0 %v411_v24, %s4630_s8 }
  0x2a   : > { %418 = vrot.lane.b32.xlu1 %v412_v25, %s4630_s8 }
  0x2b   : > { %258 = vrot.lane.b32.xlu0 %v252_v2, %s4625_s27  ;;  %v562_v2 = vld [vmem:[%s6762_s2 + $0x28] sm:$0xff] }
  0x2e   : > { %289 = vrot.lane.b32.xlu1 %v285_v26, %s4626_s28 }
  0x2f   : > { %320 = vrot.lane.b32.xlu0 %v316_v27, %s4627_s29 }
  0x32   : > { %356 = vrot.lane.b32.xlu1 %v352_v28, %s4628_s30 }
  0x33   : > { %383 = vrot.lane.b32.xlu0 %v381_v29, %s4629_s7 }
  0x36   : > { %414 = vrot.lane.b32.xlu1 %v410_v31, %s4630_s8 }
  0x37   : > { %264 = vrot.lane.b32.xlu0 %v257_v32, %s4625_s27 }
  0x3a   : > { %295 = vrot.lane.b32.xlu1 %v288_v34, %s4626_s28 }
  0x3b   : > { %326 = vrot.lane.b32.xlu0 %v319_v36, %s4627_s29 }
  0x3e   : > { %362 = vrot.lane.b32.xlu1 %v355_v38, %s4628_s30 }
  0x3f   : > { %389 = vrot.lane.b32.xlu0 %v378_v19, %s4629_s7 }
  0x42   : > { %420 = vrot.lane.b32.xlu1 %v413_v42, %s4630_s8 }
  0x43   : > { %452 = vrot.lane.b32.xlu0 %v447_v44, %s4632_s9 }
  0x46   : > { %454 = vrot.lane.b32.xlu1 %v448_v46, %s4632_s9 }
  0x47   : > { %483 = vrot.lane.b32.xlu0 %v478_v49, %s4633_s10 }
  0x4a   : > { %485 = vrot.lane.b32.xlu1 %v479_v51, %s4633_s10 }
  0x4b   : > { %510 = vrot.lane.b32.xlu0 %v506_v52, %s4634_s11 }
  0x4e   : > { %512 = vrot.lane.b32.xlu1 %v503_v53, %s4634_s11 }
  0x4f   : > { %450 = vrot.lane.b32.xlu0 %v446_v54, %s4632_s9 }
  0x52   : > { %481 = vrot.lane.b32.xlu1 %v477_v55, %s4633_s10 }
  0x53   : > { %508 = vrot.lane.b32.xlu0 %v502_v50, %s4634_s11 }
  0x56   : > { %456 = vrot.lane.b32.xlu1 %v449_v58, %s4632_s9 }
  0x57   : > { %487 = vrot.lane.b32.xlu0 %v480_v59, %s4633_s10 }
  0x5a   : > { %514 = vrot.lane.b32.xlu1 %v507_v60, %s4634_s11 }
  0x5b   : > { %567 = vperm.xlu0 %3877, %v557_v61  }
  0x5e   : > { %572 = vperm.xlu1 %3878, %v558_v63  }
  0x5f   : > { %582 = vperm.xlu0 %3877, %v560_v0  }
  0x62   : > { %577 = vperm.xlu1 %3878, %v559_v1  }
  0x63   : > { %592 = vperm.xlu0 %3877, %v562_v2  }
  0x66   : > { %587 = vperm.xlu1 %3878, %v561_v3  }
  0x67   : > { %602 = vperm.xlu0 %3877, %v564_v4  }
  0x6a   : > { %597 = vperm.xlu1 %3878, %v563_v5  }
  0x85   : > { %v263_v6 = vpop.permute.xlu0 %262 }
  0x88   : > { %v294_v7 = vpop.permute.xlu1 %293 }
  0x89   : > { %v261_v8 = vpop.permute.xlu0 %260 }
  0x8a   : > { %v268_v9 = vsel %vm266_vm1, %v261_v8, %v263_v6 }
  0x8b   : > { %275 = vst [vmem:[#allocation3 + $0x8] sm:$0x7] %v268_v9 }
  0x8c   : > { %v325_v10 = vpop.permute.xlu1 %324 }
  0x8d   : > { %v323_v11 = vpop.permute.xlu0 %322 }
  0x8e   : > { %v330_v12 = vsel %vm328_vm2, %v323_v11, %v325_v10 }
  0x8f   : > { %337 = vst [vmem:[#allocation3 + $0x28] ss:$-28 sps:$4 sm:$0xc1] %v330_v12  }
  0x90   : > { %v292_v13 = vpop.permute.xlu1 %291 }
  0x91   : > { %v299_v14 = vsel %vm297_vm3, %v292_v13, %v294_v7  ;;  %v359_v15 = vpop.permute.xlu0 %358 }
  0x92   : > { %306 = vst [vmem:[#allocation3 + $0x8] sm:$0x38] %v299_v14 }
  0x94   : > { %v361_v16 = vpop.permute.xlu1 %360 }
  0x95   : > { %v366_v17 = vsel %vm364_vm4, %v359_v15, %v361_v16  ;;  %v386_v18 = vpop.permute.xlu0 %385 }
  0x96   : > { %373 = vst [vmem:[#allocation3 + $0x28] sm:$0xe] %v366_v17 }
  0x98   : > { %v388_v19 = vpop.permute.xlu1 %387 }
  0x99   : > { %v393_v20 = vsel %vm391_vm5, %v386_v18, %v388_v19  ;;  %v417_v21 = vpop.permute.xlu0 %416  ;;  %v542_v32 = vld [vmem:[#allocation3 + $0x8] sm:$0xff] }
  0x9a   : > { %400 = vst [vmem:[#allocation3 + $0x28] sm:$0x70] %v393_v20 }
  0x9c   : > { %v419_v22 = vpop.permute.xlu1 %418 }
  0x9d   : > { %v424_v23 = vsel %vm422_vm6, %v417_v21, %v419_v22  ;;  %v259_v24 = vpop.permute.xlu0 %258 }
  0x9e   : > { %431 = vst [vmem:[#allocation3 + $0x48] ss:$-28 sps:$4 sm:$0x83] %v424_v23   ;;  %v267_v25 = vsel %vm266_vm1, %v259_v24, %v261_v8  ;;  %v533_v24 = vld [vmem:[%s6761_s1] sm:$0xff] }
  0x9f   : > { %274 = vst [vmem:[#allocation3] sm:$0x7] %v267_v25 }
  0xa0   : > { %v290_v26 = vpop.permute.xlu1 %289 }
  0xa1   : > { %v298_v27 = vsel %vm297_vm3, %v290_v26, %v292_v13  ;;  %v321_v28 = vpop.permute.xlu0 %320 }
  0xa2   : > { %305 = vst [vmem:[#allocation3] sm:$0x38] %v298_v27  ;;  %v329_v29 = vsel %vm328_vm2, %v321_v28, %v323_v11 }
  0xa3   : > { %336 = vst [vmem:[#allocation3 + $0x20] ss:$-28 sps:$4 sm:$0xc1] %v329_v29  }
  0xa4   : > { %v357_v30 = vpop.permute.xlu1 %356 }
  0xa5   : > { %v365_v31 = vsel %vm364_vm4, %v357_v30, %v359_v15  ;;  %v546_v33 = vld [vmem:[#allocation3 + $0x28] sm:$0xff]  ;;  %v384_v34 = vpop.permute.xlu0 %383 }
  0xa6   : > { %372 = vst [vmem:[#allocation3 + $0x20] sm:$0xe] %v365_v31  ;;  %v3613_v35 = vpack.c.bf16 %v546_v33, %v542_v32  ;;  %v392_v36 = vsel %vm391_vm5, %v384_v34, %v386_v18  ;;  %v534_v31 = vld [vmem:[%s6761_s1 + $0x8] sm:$0xff]  ;;  %v535_v32 = vld [vmem:[%s6761_s1 + $0x10] sm:$0xff]  ;;  %v536_v33 = vld [vmem:[%s6761_s1 + $0x18] sm:$0xff] }
  0xa7   : > { %399 = vst [vmem:[#allocation3 + $0x20] sm:$0x70] %v392_v36  ;;  %v537_v34 = vld [vmem:[%s6761_s1 + $0x20] sm:$0xff]  ;;  %v539_v36 = vld [vmem:[%s6761_s1 + $0x30] sm:$0xff] }
  0xa8   : > { %v415_v37 = vpop.permute.xlu1 %414  ;;  %3614 = vmatprep.subr.bf16.mxu0 %v3613_v35  ;;  %v538_v35 = vld [vmem:[%s6761_s1 + $0x28] sm:$0xff] }
  0xa9   : > { %v423_v38 = vsel %vm422_vm6, %v415_v37, %v417_v21  ;;  %v265_v39 = vpop.permute.xlu0 %264  ;;  %v540_v37 = vld [vmem:[%s6761_s1 + $0x38] sm:$0xff] }
  0xaa   : > { %430 = vst [vmem:[#allocation3 + $0x40] ss:$-28 sps:$4 sm:$0x83] %v423_v38   ;;  %v269_v40 = vsel %vm266_vm1, %v263_v6, %v265_v39  ;;  %278 = vst.msk [vmem:[#allocation3 + $0x18] sm:$0x7] %vm277_vm7, %v265_v39  ;;  %v541_v48 = vld [vmem:[#allocation3] sm:$0xff]  ;;  %v890_v38 = vlaneseq }
  0xab   : > { %276 = vst [vmem:[#allocation3 + $0x10] sm:$0x7] %v269_v40 }
  0xac   : > { %v296_v41 = vpop.permute.xlu1 %295  ;;  %v891_v39 = vshrl.u32 %v890_v38, 7 }
  0xad   : > { %v300_v42 = vsel %vm297_vm3, %v294_v7, %v296_v41  ;;  %309 = vst.msk [vmem:[#allocation3 + $0x18] sm:$0x38] %vm308_vm8, %v296_v41  ;;  %v327_v43 = vpop.permute.xlu0 %326  ;;  %vm516_vm8 = vcmask 580608   ;;  %v888_v41 = vld [vmem:[%s6765_s5] sm:$0xf] }
  0xae   : > { %307 = vst [vmem:[#allocation3 + $0x10] sm:$0x38] %v300_v42  ;;  %v331_v44 = vsel %vm328_vm2, %v325_v10, %v327_v43  ;;  %340 = vst.msk [vmem:[#allocation3 + $0x18] sm:$0xc0] %vm339_vm9, %v327_v43  ;;  %vm469_vm9 = vcmask 520194   ;;  %v892_v40 = vsub.s32 0, %v891_v39 }
  0xaf   : > { %345 = vst.msk [vmem:[#allocation3 + $0x38] sm:$0x1] %vm344_vm10, %v327_v43  ;;  %338 = vst [vmem:[#allocation3 + $0x30] ss:$-28 sps:$4 sm:$0xc1] %v331_v44   ;;  %vm500_vm10 = vcmask 523269  }
  0xb0   : > { %v363_v45 = vpop.permute.xlu1 %362  ;;  %v896_v42 = vsub.s32 1, %v891_v39 }
  0xb1   : > { %v367_v46 = vsel %vm364_vm4, %v361_v16, %v363_v45  ;;  %376 = vst.msk [vmem:[#allocation3 + $0x38] sm:$0xe] %vm375_vm11, %v363_v45  ;;  %v545_v49 = vld [vmem:[#allocation3 + $0x20] sm:$0xff]  ;;  %v390_v50 = vpop.permute.xlu0 %389  ;;  %vm605_vm11 = vcmask 261120  }
  0xb2   : > { %374 = vst [vmem:[#allocation3 + $0x30] sm:$0xe] %v367_v46  ;;  %v3615_v51 = vpack.c.bf16 %v545_v49, %v541_v48  ;;  %v394_v52 = vsel %vm391_vm5, %v388_v19, %v390_v50  ;;  %403 = vst.msk [vmem:[#allocation3 + $0x38] sm:$0x70] %vm402_vm12, %v390_v50  ;;  %v4860_v48 = vrot.slane %v888_v41, %v892_v40 }
  0xb3   : > { %401 = vst [vmem:[#allocation3 + $0x30] sm:$0x70] %v394_v52 }
  0xb4   : > { %v421_v53 = vpop.permute.xlu1 %420  ;;  %3616 = vmatpush1.bf16.msra.mxu0 %v3615_v51  ;;  %v4862_v51 = vrot.slane %v888_v41, %v896_v42 }
  0xb5   : > { %v425_v54 = vsel %vm422_vm6, %v419_v22, %v421_v53  ;;  %434 = vst.msk [vmem:[#allocation3 + $0x38] sm:$0x80] %vm433_vm13, %v421_v53  ;;  %v453_v55 = vpop.permute.xlu0 %452  ;;  %v544_v60 = vld [vmem:[#allocation3 + $0x18] sm:$0xff] }
  0xb6   : > { %439 = vst.msk [vmem:[#allocation3 + $0x58] sm:$0x3] %vm438_vm14, %v421_v53  ;;  %432 = vst [vmem:[#allocation3 + $0x50] ss:$-28 sps:$4 sm:$0x83] %v425_v54   ;;  %v543_v0 = vld [vmem:[#allocation3 + $0x10] sm:$0xff] }
  0xb7   : > { %v900_v53 = vsub.s32 2, %v891_v39 }
  0xb8   : > { %v455_v56 = vpop.permute.xlu1 %454 }
  0xb9   : > { %v460_v57 = vsel %vm458_vm15, %v453_v55, %v455_v56  ;;  %v484_v58 = vpop.permute.xlu0 %483 }
  0xba   : > { %467 = vst [vmem:[#allocation3 + $0x48] sm:$0x1c] %v460_v57 }
  0xbc   : > { %v486_v59 = vpop.permute.xlu1 %485  ;;  %v548_v61 = vld [vmem:[#allocation3 + $0x38] sm:$0xff] }
  0xbd   : > { %v491_v62 = vsel %vm489_vm0, %v484_v58, %v486_v59  ;;  %v3621_v63 = vpack.c.bf16 %v548_v61, %v544_v60  ;;  %v547_v1 = vld [vmem:[#allocation3 + $0x30] sm:$0xff]  ;;  %v511_v2 = vpop.permute.xlu0 %510 }
  0xbe   : > { %498 = vst [vmem:[#allocation3 + $0x48] sm:$0xe0] %v491_v62  ;;  %v3623_v3 = vpack.c.bf16 %v547_v1, %v543_v0 }
  0xbf   : > { %3622 = vmatprep.subr.bf16.mxu1 %v3621_v63 }
  0xc0   : > { %v513_v4 = vpop.permute.xlu1 %512  ;;  %3624 = vmatpush1.bf16.msra.mxu1 %v3623_v3 }
  0xc1   : > { %v518_v5 = vsel %vm516_vm8, %v511_v2, %v513_v4  ;;  %v451_v6 = vpop.permute.xlu0 %450 }
  0xc2   : > { %525 = vst [vmem:[#allocation3 + $0x68] sm:$0x7] %v518_v5  ;;  %v459_v7 = vsel %vm458_vm15, %v451_v6, %v453_v55 }
  0xc3   : > { %466 = vst [vmem:[#allocation3 + $0x40] sm:$0x1c] %v459_v7 }
  0xc4   : > { %v482_v8 = vpop.permute.xlu1 %481 }
  0xc5   : > { %v490_v9 = vsel %vm489_vm0, %v482_v8, %v484_v58  ;;  %v509_v10 = vpop.permute.xlu0 %508  ;;  %v550_v14 = vld [vmem:[#allocation3 + $0x48] sm:$0xff] }
  0xc6   : > { %497 = vst [vmem:[#allocation3 + $0x40] sm:$0xe0] %v490_v9  ;;  %v517_v11 = vsel %vm516_vm8, %v509_v10, %v511_v2  ;;  %v4866_v2 = vrot.slane %v888_v41, %v900_v53 }
  0xc7   : > { %524 = vst [vmem:[#allocation3 + $0x60] sm:$0x7] %v517_v11 }
  0xc8   : > { %v457_v12 = vpop.permute.xlu1 %456 }
  0xc9   : > { %v461_v13 = vsel %vm458_vm15, %v455_v56, %v457_v12  ;;  %470 = vst.msk [vmem:[#allocation3 + $0x58] sm:$0x1c] %vm469_vm9, %v457_v12  ;;  %v554_v15 = vld [vmem:[#allocation3 + $0x68] sm:$0xff]  ;;  %v488_v16 = vpop.permute.xlu0 %487  ;;  %v904_v56 = vsub.s32 3, %v891_v39 }
  0xca   : > { %468 = vst [vmem:[#allocation3 + $0x50] sm:$0x1c] %v461_v13  ;;  %v3617_v17 = vpack.c.bf16 %v554_v15, %v550_v14  ;;  %v492_v18 = vsel %vm489_vm0, %v486_v59, %v488_v16  ;;  %501 = vst.msk [vmem:[#allocation3 + $0x58] sm:$0xe0] %vm500_vm10, %v488_v16 }
  0xcb   : > { %499 = vst [vmem:[#allocation3 + $0x50] sm:$0xe0] %v492_v18  ;;  %v4868_v6 = vrot.slane %v888_v41, %v904_v56 }
  0xcc   : > { %v515_v19 = vpop.permute.xlu1 %514  ;;  %3618 = vmatprep.subr.bf16.mxu0 %v3617_v17 }
  0xcd   : > { %v519_v20 = vsel %vm516_vm8, %v513_v4, %v515_v19  ;;  %527 = vst.msk [vmem:[#allocation3 + $0x78] sm:$0x7] %vm277_vm7, %v515_v19  ;;  %v549_v21 = vld [vmem:[#allocation3 + $0x40] sm:$0xff]  ;;  %vm945_vm7 = vcmask 523264  }
  0xce   : > { %526 = vst [vmem:[#allocation3 + $0x70] sm:$0x7] %v519_v20  ;;  %v553_v22 = vld [vmem:[#allocation3 + $0x60] sm:$0xff] }
  0xcf   : > { %v3619_v23 = vpack.c.bf16 %v553_v22, %v549_v21 }
  0xd1   : > { %3620 = vmatpush1.bf16.msra.mxu0 %v3619_v23  ;;  %v552_v25 = vld [vmem:[#allocation3 + $0x58] sm:$0xff] }
  0xd2   : > { %v551_v28 = vld [vmem:[#allocation3 + $0x50] sm:$0xff] }
  0xd4   : > { %v556_v26 = vld [vmem:[#allocation3 + $0x78] sm:$0xff]  ;;  %3494 = vmatmul.mubr.msk.f32.vlgmr.msra.gmra.mrb[0].mxu0 %vm605_vm11, %v533_v24 }
  0xd5   : > { %v3625_v27 = vpack.c.bf16 %v556_v26, %v552_v25  ;;  %v555_v29 = vld [vmem:[#allocation3 + $0x70] sm:$0xff]  ;;  %700 = vmatprep.mubr.f32.mxu0 %v6767_v47 }
  0xd6   : > { %v3627_v30 = vpack.c.bf16 %v555_v29, %v551_v28 }
  0xd7   : > { %3626 = vmatprep.subr.bf16.mxu1 %v3625_v27 }
  0xd8   : > { %3628 = vmatpush1.bf16.msra.mxu1 %v3627_v30  ;;  %3495 = vmatmul.mubr.msk.f32.gmra.mrb[2].mxu0 %vm605_vm11, %v534_v31 }
  0xd9   : > { %706 = vmatprep.mubr.f32.mxu0 %v6767_v47 }
  0xda   : > { %v568_v43 = vpop.permute.xlu0 %567 }
  0xdb   : > { %3502 = vmatmul.mubr.msk.f32.vlgmr.msra.gmra.mrb[0].mxu1 %vm605_vm11, %v533_v24 }
  0xdc   : > { %813 = vmatprep.mubr.f32.mxu1 %v6767_v47  ;;  %3496 = vmatmul.mubr.msk.f32.gmra.mrb[4].mxu0 %vm605_vm11, %v535_v32 }
  0xdd   : > { %712 = vmatprep.mubr.f32.mxu0 %v6767_v47  ;;  %v573_v45 = vpop.permute.xlu1 %572 }
  0xde   : > { %v583_v22 = vpop.permute.xlu0 %582 }
  0xdf   : > { %3503 = vmatmul.mubr.msk.f32.gmra.mrb[2].mxu1 %vm605_vm11, %v534_v31 }
  0xe0   : > { %819 = vmatprep.mubr.f32.mxu1 %v6767_v47  ;;  %3497 = vmatmul.mubr.msk.f32.gmra.mrb[6].mxu0 %vm605_vm11, %v536_v33 }
  0xe1   : > { %718 = vmatprep.mubr.f32.mxu0 %v6767_v47  ;;  %v578_v63 = vpop.permute.xlu1 %577 }
  0xe3   : > { %3504 = vmatmul.mubr.msk.f32.gmra.mrb[4].mxu1 %vm605_vm11, %v535_v32 }
  0xe4   : > { %825 = vmatprep.mubr.f32.mxu1 %v6767_v47  ;;  %3498 = vmatmul.mubr.msk.f32.gmra.mrb[8].mxu0 %vm605_vm11, %v537_v34 }
  0xe5   : > { %724 = vmatprep.mubr.f32.mxu0 %v6767_v47 }
  0xe7   : > { %3505 = vmatmul.mubr.msk.f32.gmra.mrb[6].mxu1 %vm605_vm11, %v536_v33 }
  0xe8   : > { %831 = vmatprep.mubr.f32.mxu1 %v6767_v47  ;;  %3499 = vmatmul.mubr.msk.f32.gmra.mrb[10].mxu0 %vm605_vm11, %v538_v35 }
  0xe9   : > { %730 = vmatprep.mubr.f32.mxu0 %v6767_v47 }
  0xeb   : > { %3506 = vmatmul.mubr.msk.f32.gmra.mrb[8].mxu1 %vm605_vm11, %v537_v34 }
  0xec   : > { %837 = vmatprep.mubr.f32.mxu1 %v6767_v47  ;;  %3500 = vmatmul.mubr.msk.f32.gmra.mrb[12].mxu0 %vm605_vm11, %v539_v36 }
  0xed   : > { %736 = vmatprep.mubr.f32.mxu0 %v6767_v47 }
  0xef   : > { %3507 = vmatmul.mubr.msk.f32.gmra.mrb[10].mxu1 %vm605_vm11, %v538_v35 }
  0xf0   : > { %843 = vmatprep.mubr.f32.mxu1 %v6767_v47  ;;  %3501 = vmatmul.mubr.msk.f32.gmra.mrb[14].mxu0 %vm605_vm11, %v540_v37 }
  0xf3   : > { %3508 = vmatmul.mubr.msk.f32.gmra.mrb[12].mxu1 %vm605_vm11, %v539_v36 }
  0xf4   : > { %849 = vmatprep.mubr.f32.mxu1 %v6767_v47 }
  0xf7   : > { %3509 = vmatmul.mubr.msk.f32.gmra.mrb[14].mxu1 %vm605_vm11, %v540_v37  ;;  %v4891_v37 = vpop.permute.xlu1 %587 }
  0xf8   : > { %3211 = vmatprep.mubr.f32.mxu1 %v6767_v47 }
 0x1a7   : > { %v696_v44 = vpop.f32.mrb[0].mxu0 }
 0x1a8   : > { %v697_v46 = vadd.f32 %v696_v44, %v568_v43  ;;  %v698_v49 = vpop.f32.mrb[1].mxu0 }
 0x1a9   : > { %v699_v50 = vadd.f32 %v698_v49, %v568_v43 }
 0x1aa   : > { %v856_v52 = vmax.f32 %v697_v46, 0.0 }
 0x1ab   : > { %v857_v54 = vmax.f32 %v699_v50, 0.0  ;;  %v702_v55 = vpop.f32.mrb[2].mxu0 }
 0x1ac   : > { %v910_v57 = vmul.f32 %v4860_v48, %v856_v52  ;;  %v703_v58 = vadd.f32 %v702_v55, %v573_v45  ;;  %v704_v59 = vpop.f32.mrb[3].mxu0 }
 0x1ad   : > { %v911_v60 = vmul.f32 %v4862_v51, %v857_v54  ;;  %v705_v61 = vadd.f32 %v704_v59, %v573_v45 }
 0x1ae   : > { %v809_v62 = vpop.f32.mrb[0].mxu1  ;;  %942 = vst [vmem:[#allocation2] sm:$0xff] %v910_v57  ;;  %v860_v0 = vmax.f32 %v703_v58, 0.0 }
 0x1af   : > { %v810_v1 = vadd.f32 %v809_v62, %v568_v43  ;;  %v811_v3 = vpop.f32.mrb[1].mxu1  ;;  %943 = vst [vmem:[#allocation2 + $0x8] sm:$0xff] %v911_v60  ;;  %v861_v4 = vmax.f32 %v705_v61, 0.0  ;;  %v708_v7 = vpop.f32.mrb[4].mxu0  ;;  %v4870_v8 = vpack.i.bf16 %v911_v60, %v910_v57 }
 0x1b0   : > { %v812_v5 = vadd.f32 %v811_v3, %v568_v43  ;;  %v914_v9 = vmul.f32 %v4860_v48, %v860_v0  ;;  %v710_v11 = vpop.f32.mrb[5].mxu0  ;;  %v709_v12 = vadd.f32 %v708_v7, %v578_v63  ;;  %v593_v0 = vpop.permute.xlu0 %592 }
 0x1b1   : > { %v858_v10 = vmax.f32 %v810_v1, 0.0  ;;  %v915_v13 = vmul.f32 %v4862_v51, %v861_v4  ;;  %v711_v16 = vadd.f32 %v710_v11, %v578_v63  ;;  %3905 = vrot.lane.b32.xlu1 %v4870_v8, %s4625_s27 }
 0x1b2   : > { %v859_v14 = vmax.f32 %v812_v5, 0.0  ;;  %v815_v15 = vpop.f32.mrb[2].mxu1  ;;  %947 = vst [vmem:[#allocation2 + $0x20] sm:$0xff] %v914_v9  ;;  %v864_v20 = vmax.f32 %v709_v12, 0.0  ;;  %v4879_v21 = vpack.i.bf16 %v914_v9, %v910_v57 }
 0x1b3   : > { %v4877_v17 = vmul.f32 %v4866_v2, %v858_v10  ;;  %v816_v18 = vadd.f32 %v815_v15, %v573_v45  ;;  %v817_v19 = vpop.f32.mrb[3].mxu1  ;;  %948 = vst [vmem:[#allocation2 + $0x28] sm:$0xff] %v915_v13  ;;  %v865_v25 = vmax.f32 %v711_v16, 0.0  ;;  %v714_v26 = vpop.f32.mrb[6].mxu0  ;;  %v4882_v27 = vpack.i.bf16 %v915_v13, %v914_v9 }
 0x1b4   : > { %v913_v23 = vmul.f32 %v4868_v6, %v859_v14  ;;  %v818_v24 = vadd.f32 %v817_v19, %v573_v45  ;;  %v918_v29 = vmul.f32 %v4860_v48, %v864_v20  ;;  %v715_v30 = vadd.f32 %v714_v26, %v583_v22  ;;  %v716_v31 = vpop.f32.mrb[7].mxu0  ;;  %v4936_v20 = vpop.permute.xlu1 %597 }
 0x1b5   : > { %944 = vst [vmem:[#allocation2 + $0x10] sm:$0xff] %v4877_v17  ;;  %v862_v28 = vmax.f32 %v816_v18, 0.0  ;;  %v4887_v32 = vpack.i.bf16 %v4877_v17, %v911_v60  ;;  %v919_v34 = vmul.f32 %v4862_v51, %v865_v25  ;;  %v717_v35 = vadd.f32 %v716_v31, %v583_v22  ;;  %3910 = vrot.lane.b32.xlu1 %v4870_v8, %s4626_s28 }
 0x1b6   : > { %946 = vst.msk [vmem:[#allocation2 + $0x18] sm:$0xff] %vm945_vm7, %v913_v23  ;;  %v863_v33 = vmax.f32 %v818_v24, 0.0  ;;  %v821_v36 = vpop.f32.mrb[4].mxu1  ;;  %951 = vst [vmem:[#allocation2 + $0x40] sm:$0xff] %v918_v29  ;;  %v868_v39 = vmax.f32 %v715_v30, 0.0 }
 0x1b7   : > { %v4896_v38 = vmul.f32 %v4866_v2, %v862_v28  ;;  %v822_v40 = vadd.f32 %v821_v36, %v578_v63  ;;  %v823_v41 = vpop.f32.mrb[5].mxu1  ;;  %952 = vst [vmem:[#allocation2 + $0x48] sm:$0xff] %v919_v34  ;;  %v869_v43 = vmax.f32 %v717_v35, 0.0  ;;  %v720_v45 = vpop.f32.mrb[8].mxu0  ;;  %v4899_v46 = vpack.i.bf16 %v919_v34, %v918_v29 }
 0x1b8   : > { %v917_v42 = vmul.f32 %v4868_v6, %v863_v33  ;;  %v824_v44 = vadd.f32 %v823_v41, %v578_v63  ;;  %v4903_v49 = vmul.f32 %v4860_v48, %v868_v39  ;;  %v722_v52 = vpop.f32.mrb[9].mxu0  ;;  %v721_v53 = vadd.f32 %v720_v45, %v4891_v37 }
 0x1b9   : > { %949 = vst [vmem:[#allocation2 + $0x30] sm:$0xff] %v4896_v38  ;;  %v866_v50 = vmax.f32 %v822_v40, 0.0  ;;  %v4907_v54 = vpack.i.bf16 %v4896_v38, %v915_v13  ;;  %v4911_v55 = vmul.f32 %v4862_v51, %v869_v43  ;;  %v723_v58 = vadd.f32 %v722_v52, %v4891_v37  ;;  %3915 = vrot.lane.b32.xlu1 %v4870_v8, %s4627_s29 }
 0x1ba   : > { %950 = vst.msk [vmem:[#allocation2 + $0x38] sm:$0xff] %vm945_vm7, %v917_v42  ;;  %v867_v56 = vmax.f32 %v824_v44, 0.0  ;;  %v827_v57 = vpop.f32.mrb[6].mxu1  ;;  %955 = vst [vmem:[#allocation2 + $0x60] sm:$0xff] %v4903_v49  ;;  %v872_v62 = vmax.f32 %v721_v53, 0.0  ;;  %v4921_v63 = vpack.i.bf16 %v4903_v49, %v918_v29  ;;  %v603_v53 = vpop.permute.xlu0 %602 }
 0x1bb   : > { %v4918_v59 = vmul.f32 %v4866_v2, %v866_v50  ;;  %v828_v60 = vadd.f32 %v827_v57, %v583_v22  ;;  %v829_v61 = vpop.f32.mrb[7].mxu1  ;;  %956 = vst [vmem:[#allocation2 + $0x68] sm:$0xff] %v4911_v55  ;;  %v873_v4 = vmax.f32 %v723_v58, 0.0  ;;  %v726_v5 = vpop.f32.mrb[10].mxu0  ;;  %v4927_v7 = vpack.i.bf16 %v4911_v55, %v4903_v49 }
 0x1bc   : > { %v921_v1 = vmul.f32 %v4868_v6, %v867_v56  ;;  %v830_v3 = vadd.f32 %v829_v61, %v583_v22  ;;  %v926_v10 = vmul.f32 %v4860_v48, %v872_v62  ;;  %v727_v11 = vadd.f32 %v726_v5, %v593_v0  ;;  %v728_v12 = vpop.f32.mrb[11].mxu0 }
 0x1bd   : > { %953 = vst [vmem:[#allocation2 + $0x50] sm:$0xff] %v4918_v59  ;;  %v870_v9 = vmax.f32 %v828_v60, 0.0  ;;  %v978_v13 = vld [vmem:[#allocation2 + $0x18] sm:$0xff]  ;;  %v4932_v14 = vpack.i.bf16 %v4918_v59, %v919_v34  ;;  %v927_v16 = vmul.f32 %v4862_v51, %v873_v4  ;;  %v729_v18 = vadd.f32 %v728_v12, %v593_v0  ;;  %3920 = vrot.lane.b32.xlu1 %v4870_v8, %s4628_s30 }
 0x1be   : > { %954 = vst.msk [vmem:[#allocation2 + $0x58] sm:$0xff] %vm945_vm7, %v921_v1  ;;  %v871_v15 = vmax.f32 %v830_v3, 0.0  ;;  %v833_v19 = vpop.f32.mrb[8].mxu1  ;;  %v4939_v22 = vpack.i.bf16 %v978_v13, %v4877_v17  ;;  %959 = vst [vmem:[#allocation2 + $0x80] sm:$0xff] %v926_v10  ;;  %v876_v24 = vmax.f32 %v727_v11, 0.0  ;;  %v4109_v28 = vpack.i.bf16 %v4911_v55, %v4918_v59 }
 0x1bf   : > { %v4944_v23 = vmul.f32 %v4866_v2, %v870_v9  ;;  %v834_v25 = vadd.f32 %v833_v19, %v4891_v37  ;;  %v835_v26 = vpop.f32.mrb[9].mxu1  ;;  %960 = vst [vmem:[#allocation2 + $0x88] sm:$0xff] %v927_v16  ;;  %v877_v30 = vmax.f32 %v729_v18, 0.0  ;;  %v732_v17 = vpop.f32.mrb[12].mxu0  ;;  %v4953_v8 = vpack.i.bf16 %v927_v16, %v926_v10 }
 0x1c0   : > { %v925_v29 = vmul.f32 %v4868_v6, %v871_v15  ;;  %v836_v31 = vadd.f32 %v835_v26, %v4891_v37  ;;  %3880 = vrot.lane.b32.xlu0 %v4939_v22, %s4625_s27  ;;  %v930_v33 = vmul.f32 %v4860_v48, %v876_v24  ;;  %v733_v35 = vadd.f32 %v732_v17, %v4936_v20  ;;  %v734_v36 = vpop.f32.mrb[13].mxu0 }
 0x1c1   : > { %957 = vst [vmem:[#allocation2 + $0x70] sm:$0xff] %v4944_v23  ;;  %v874_v34 = vmax.f32 %v834_v25, 0.0  ;;  %v4074_v39 = vpack.i.bf16 %v4903_v49, %v4944_v23  ;;  %v931_v37 = vmul.f32 %v4862_v51, %v877_v30  ;;  %v735_v41 = vadd.f32 %v734_v36, %v4936_v20  ;;  %3935 = vrot.lane.b32.xlu1 %v4887_v32, %s4630_s8 }
 0x1c2   : > { %958 = vst.msk [vmem:[#allocation2 + $0x78] sm:$0xff] %vm945_vm7, %v925_v29  ;;  %v875_v40 = vmax.f32 %v836_v31, 0.0  ;;  %v839_v42 = vpop.f32.mrb[10].mxu1  ;;  %963 = vst [vmem:[#allocation2 + $0xa0] sm:$0xff] %v930_v33  ;;  %v880_v44 = vmax.f32 %v733_v35, 0.0  ;;  %v4970_v52 = vpack.i.bf16 %v4944_v23, %v4911_v55  ;;  %v4975_v61 = vpack.i.bf16 %v930_v33, %v926_v10 }
 0x1c3   : > { %v4966_v43 = vmul.f32 %v4866_v2, %v874_v34  ;;  %v840_v45 = vadd.f32 %v839_v42, %v593_v0  ;;  %v841_v50 = vpop.f32.mrb[11].mxu1  ;;  %964 = vst [vmem:[#allocation2 + $0xa8] sm:$0xff] %v931_v37  ;;  %v881_v57 = vmax.f32 %v735_v41, 0.0  ;;  %v738_v60 = vpop.f32.mrb[14].mxu0 }
 0x1c4   : > { %v929_v56 = vmul.f32 %v4868_v6, %v875_v40  ;;  %v842_v58 = vadd.f32 %v841_v50, %v593_v0  ;;  %3885 = vrot.lane.b32.xlu0 %v4939_v22, %s4626_s28  ;;  %v934_v62 = vmul.f32 %v4860_v48, %v880_v44  ;;  %v739_v3 = vadd.f32 %v738_v60, %v603_v53  ;;  %v740_v4 = vpop.f32.mrb[15].mxu0 }
 0x1c5   : > { %961 = vst [vmem:[#allocation2 + $0x90] sm:$0xff] %v4966_v43  ;;  %v878_v1 = vmax.f32 %v840_v45, 0.0  ;;  %v4980_v5 = vpack.i.bf16 %v4966_v43, %v927_v16  ;;  %v935_v0 = vmul.f32 %v4862_v51, %v881_v57  ;;  %v741_v11 = vadd.f32 %v740_v4, %v603_v53  ;;  %3970 = vrot.lane.b32.xlu1 %v4879_v21, %s4630_s8 }
 0x1c6   : > { %962 = vst.msk [vmem:[#allocation2 + $0x98] sm:$0xff] %vm945_vm7, %v929_v56  ;;  %v879_v9 = vmax.f32 %v842_v58, 0.0  ;;  %v845_v12 = vpop.f32.mrb[12].mxu1  ;;  %967 = vst [vmem:[#allocation2 + $0xc0] sm:$0xff] %v934_v62  ;;  %v884_v13 = vmax.f32 %v739_v3, 0.0  ;;  %v4990_v16 = vpack.i.bf16 %v931_v37, %v930_v33 }
 0x1c7   : > { %v4987_v10 = vmul.f32 %v4866_v2, %v878_v1  ;;  %v846_v15 = vadd.f32 %v845_v12, %v4936_v20  ;;  %v847_v18 = vpop.f32.mrb[13].mxu1  ;;  %968 = vst [vmem:[#allocation2 + $0xc8] sm:$0xff] %v935_v0  ;;  %v885_v24 = vmax.f32 %v741_v11, 0.0  ;;  %v4996_v26 = vpack.i.bf16 %v935_v0, %v934_v62 }
 0x1c8   : > { %v933_v19 = vmul.f32 %v4868_v6, %v879_v9  ;;  %v848_v25 = vadd.f32 %v847_v18, %v4936_v20  ;;  %3890 = vrot.lane.b32.xlu0 %v4939_v22, %s4627_s29  ;;  %v5000_v29 = vmul.f32 %v4860_v48, %v884_v13 }
 0x1c9   : > { %965 = vst [vmem:[#allocation2 + $0xb0] sm:$0xff] %v4987_v10  ;;  %v882_v30 = vmax.f32 %v846_v15, 0.0  ;;  %v5003_v17 = vpack.i.bf16 %v4987_v10, %v931_v37  ;;  %v5007_v31 = vmul.f32 %v4862_v51, %v885_v24  ;;  %3975 = vrot.lane.b32.xlu1 %v4882_v27, %s4625_s27 }
 0x1ca   : > { %966 = vst.msk [vmem:[#allocation2 + $0xb8] sm:$0xff] %vm945_vm7, %v933_v19  ;;  %v883_v20 = vmax.f32 %v848_v25, 0.0  ;;  %v851_v33 = vpop.f32.mrb[14].mxu1  ;;  %971 = vst [vmem:[#allocation2 + $0xe0] sm:$0xff] %v5000_v29  ;;  %v5016_v36 = vpack.i.bf16 %v5000_v29, %v934_v62 }
 0x1cb   : > { %v5013_v34 = vmul.f32 %v4866_v2, %v882_v30  ;;  %v852_v48 = vadd.f32 %v851_v33, %v603_v53  ;;  %v853_v35 = vpop.f32.mrb[15].mxu1  ;;  %972 = vst [vmem:[#allocation2 + $0xe8] sm:$0xff] %v5007_v31  ;;  %v4309_v40 = vpack.i.bf16 %v5007_v31, %v5000_v29  ;;  %v5295_v29 = vld [vmem:[#allocation2 + $0x48] sm:$0xff] }
 0x1cc   : > { %v937_v51 = vmul.f32 %v4868_v6, %v883_v20  ;;  %v854_v37 = vadd.f32 %v853_v35, %v603_v53  ;;  %3895 = vrot.lane.b32.xlu0 %v4939_v22, %s4628_s30 }
 0x1cd   : > { %969 = vst [vmem:[#allocation2 + $0xd0] sm:$0xff] %v5013_v34  ;;  %v886_v41 = vmax.f32 %v852_v48, 0.0  ;;  %v5026_v42 = vpack.i.bf16 %v5013_v34, %v935_v0  ;;  %3980 = vrot.lane.b32.xlu1 %v4882_v27, %s4626_s28  ;;  %v5131_v49 = vld [vmem:[#allocation2 + $0x98] sm:$0xff] }
 0x1ce   : > { %970 = vst.msk [vmem:[#allocation2 + $0xd8] sm:$0xff] %vm945_vm7, %v937_v51  ;;  %v887_v44 = vmax.f32 %v854_v37, 0.0  ;;  %v5041_v53 = vld [vmem:[#allocation2 + $0xc8] sm:$0xff] }
 0x1cf   : > { %v5032_v45 = vmul.f32 %v4866_v2, %v886_v41 }
 0x1d0   : > { %v941_v50 = vmul.f32 %v4868_v6, %v887_v44  ;;  %3900 = vrot.lane.b32.xlu0 %v4939_v22, %s4632_s9  ;;  %v5055_v6 = vld [vmem:[#allocation2 + $0x38] sm:$0xff] }
 0x1d1   : > { %973 = vst [vmem:[#allocation2 + $0xf0] sm:$0xff] %v5032_v45  ;;  %3985 = vrot.lane.b32.xlu1 %v4882_v27, %s4627_s29  ;;  %v3939_v22 = vpack.i.bf16 %v5055_v6, %v4896_v38 }
 0x1d2   : > { %974 = vst.msk [vmem:[#allocation2 + $0xf8] sm:$0xff] %vm945_vm7, %v941_v50  ;;  %v5043_v56 = vld [vmem:[#allocation2 + $0xe8] sm:$0xff] }
 0x1d3   : > { %v5049_v2 = vpack.i.bf16 %v5043_v56, %v5041_v53 }
 0x1d4   : > { %3925 = vrot.lane.b32.xlu0 %v4887_v32, %s4634_s11 }
 0x1d5   : > { %3990 = vrot.lane.b32.xlu1 %v4882_v27, %s4628_s30  ;;  %v5083_v27 = vld [vmem:[#allocation2 + $0x58] sm:$0xff] }
 0x1d6   : > { %v5217_v11 = vld [vmem:[#allocation2 + $0xd8] sm:$0xff] }
 0x1d7   : > { %v4229_v30 = vpack.i.bf16 %v5217_v11, %v5013_v34 }
 0x1d8   : > { %3930 = vrot.lane.b32.xlu0 %v4887_v32, %s4629_s7  ;;  %v4009_v32 = vpack.i.bf16 %v5083_v27, %v4918_v59 }
 0x1d9   : > { %3995 = vrot.lane.b32.xlu1 %v4907_v54, %s4634_s11 }
 0x1dc   : > { %3940 = vrot.lane.b32.xlu0 %v3939_v22, %s4625_s27 }
 0x1dd   : > { %4000 = vrot.lane.b32.xlu1 %v4907_v54, %s4629_s7 }
 0x1e0   : > { %3945 = vrot.lane.b32.xlu0 %v3939_v22, %s4626_s28 }
 0x1e1   : > { %4025 = vrot.lane.b32.xlu1 %v4899_v46, %s4625_s27 }
 0x1e4   : > { %3950 = vrot.lane.b32.xlu0 %v3939_v22, %s4627_s29 }
 0x1e5   : > { %4030 = vrot.lane.b32.xlu1 %v4899_v46, %s4626_s28 }
 0x1e8   : > { %3955 = vrot.lane.b32.xlu0 %v3939_v22, %s4628_s30 }
 0x1e9   : > { %4035 = vrot.lane.b32.xlu1 %v4899_v46, %s4627_s29 }
 0x1ec   : > { %3960 = vrot.lane.b32.xlu0 %v4879_v21, %s4634_s11 }
 0x1ed   : > { %4040 = vrot.lane.b32.xlu1 %v4899_v46, %s4628_s30 }
 0x1f0   : > { %3965 = vrot.lane.b32.xlu0 %v4879_v21, %s4629_s7  ;;  %v5097_v21 = vld [vmem:[#allocation2 + $0x78] sm:$0xff] }
 0x1f1   : > { %4045 = vrot.lane.b32.xlu1 %v4932_v14, %s4634_s11  ;;  %v4054_v38 = vpack.i.bf16 %v5097_v21, %v4944_v23  ;;  %v5113_v46 = vpack.i.bf16 %v5097_v21, %v5083_v27 }
 0x1f4   : > { %4005 = vrot.lane.b32.xlu0 %v4907_v54, %s4630_s8  ;;  %v4119_v54 = vpack.i.bf16 %v5131_v49, %v4966_v43 }
 0x1f5   : > { %4050 = vrot.lane.b32.xlu1 %v4932_v14, %s4629_s7 }
 0x1f8   : > { %4010 = vrot.lane.b32.xlu0 %v4009_v32, %s4625_s27 }
 0x1f9   : > { %4070 = vrot.lane.b32.xlu1 %v4921_v63, %s4634_s11 }
 0x1fc   : > { %4015 = vrot.lane.b32.xlu0 %v4009_v32, %s4626_s28 }
 0x1fd   : > { %4075 = vrot.lane.b32.xlu1 %v4074_v39, %s4628_s30 }
 0x200   : > { %4020 = vrot.lane.b32.xlu0 %v4009_v32, %s4627_s29 }
 0x201   : > { %4080 = vrot.lane.b32.xlu1 %v4921_v63, %s4629_s7 }
 0x204   : > { %4055 = vrot.lane.b32.xlu0 %v4054_v38, %s4625_s27 }
 0x205   : > { %4090 = vrot.lane.b32.xlu1 %v4927_v7, %s4625_s27 }
 0x208   : > { %4060 = vrot.lane.b32.xlu0 %v4054_v38, %s4626_s28 }
 0x209   : > { %4095 = vrot.lane.b32.xlu1 %v4927_v7, %s4626_s28 }
 0x20c   : > { %4065 = vrot.lane.b32.xlu0 %v4054_v38, %s4627_s29  ;;  %v1995_v38 = vld [vmem:[#allocation2 + $0xa0] sm:$0xff] }
 0x20d   : > { %4100 = vrot.lane.b32.xlu1 %v4927_v7, %s4627_s29  ;;  %v5158_v7 = vld [vmem:[#allocation2 + $0xb8] sm:$0xff] }
 0x20e   : > { %v5203_v4 = vpack.i.bf16 %v5158_v7, %v5131_v49 }
 0x210   : > { %4085 = vrot.lane.b32.xlu0 %v5113_v46, %s4628_s30 }
 0x211   : > { %4135 = vrot.lane.b32.xlu1 %v4953_v8, %s4625_s27 }
 0x214   : > { %4105 = vrot.lane.b32.xlu0 %v4970_v52, %s4634_s11 }
 0x215   : > { %4140 = vrot.lane.b32.xlu1 %v4953_v8, %s4626_s28 }
 0x218   : > { %4110 = vrot.lane.b32.xlu0 %v4109_v28, %s4628_s30  ;;  %v4164_v28 = vpack.i.bf16 %v5158_v7, %v4987_v10 }
 0x219   : > { %4145 = vrot.lane.b32.xlu1 %v4953_v8, %s4627_s29 }
 0x21c   : > { %4115 = vrot.lane.b32.xlu0 %v4970_v52, %s4629_s7 }
 0x21d   : > { %4160 = vrot.lane.b32.xlu1 %v4980_v5, %s4629_s7 }
 0x220   : > { %4120 = vrot.lane.b32.xlu0 %v4119_v54, %s4625_s27 }
 0x221   : > { %4190 = vrot.lane.b32.xlu1 %v4975_v61, %s4629_s7 }
 0x223   : > { %v5143_v55 = vpop.permute.xlu1 %3905 }
 0x224   : > { %4125 = vrot.lane.b32.xlu0 %v4119_v54, %s4626_s28  ;;  %v3908_v24 = vunpack.i.h.bf16 %v5143_v55  ;;  %v3907_v25 = vunpack.i.l.bf16 %v5143_v55 }
 0x225   : > { %4200 = vrot.lane.b32.xlu1 %v4990_v16, %s4625_s27 }
 0x226   : > { %v1103_v50 = vsel %vm266_vm1, %v3907_v25, %v3908_v24 }
 0x227   : > { %v5148_v59 = vpop.permute.xlu1 %3910 }
 0x228   : > { %4130 = vrot.lane.b32.xlu0 %v4119_v54, %s4627_s29 }
 0x229   : > { %4205 = vrot.lane.b32.xlu1 %v4990_v16, %s4626_s28 }
 0x22b   : > { %v5154_v63 = vpop.permute.xlu1 %3915 }
 0x22c   : > { %4150 = vrot.lane.b32.xlu0 %v4980_v5, %s4634_s11 }
 0x22d   : > { %4210 = vrot.lane.b32.xlu1 %v4990_v16, %s4627_s29 }
 0x22f   : > { %v5162_v14 = vpop.permute.xlu1 %3920 }
 0x230   : > { %4155 = vrot.lane.b32.xlu0 %v4980_v5, %s4628_s30  ;;  %6878 = vst [vmem:[#allocation5_spill] sm:$0xff] %v5162_v14 }
 0x231   : > { %4215 = vrot.lane.b32.xlu1 %v5003_v17, %s4634_s11 }
 0x232   : > { %v3881_v23 = vpop.permute.xlu0 %3880 }
 0x233   : > { %v5169_v8 = vpop.permute.xlu1 %3935  ;;  %v3883_v15 = vunpack.i.h.bf16 %v3881_v23  ;;  %v3882_v18 = vunpack.i.l.bf16 %v3881_v23 }
 0x234   : > { %4165 = vrot.lane.b32.xlu0 %v4164_v28, %s4625_s27  ;;  %6879 = vst [vmem:[#allocation6_spill] sm:$0xff] %v5169_v8 }
 0x235   : > { %4220 = vrot.lane.b32.xlu1 %v5003_v17, %s4628_s30  ;;  %v5242_v37 = vsel %vm266_vm1, %v3882_v18, %v3883_v15 }
 0x236   : > { %v5171_v39 = vpop.permute.xlu0 %3885  ;;  %6888 = vst [vmem:[#allocation15_spill] sm:$0xff] %v5242_v37 }
 0x237   : > { %v5176_v43 = vpop.permute.xlu1 %3970 }
 0x238   : > { %4170 = vrot.lane.b32.xlu0 %v4164_v28, %s4626_s28  ;;  %6880 = vst [vmem:[#allocation7_spill] sm:$0xff] %v5176_v43 }
 0x239   : > { %4245 = vrot.lane.b32.xlu1 %v4996_v26, %s4625_s27 }
 0x23a   : > { %v5178_v52 = vpop.permute.xlu0 %3890 }
 0x23b   : > { %v3976_v57 = vpop.permute.xlu1 %3975 }
 0x23c   : > { %4175 = vrot.lane.b32.xlu0 %v4164_v28, %s4627_s29  ;;  %v3978_v12 = vunpack.i.h.bf16 %v3976_v57  ;;  %v3977_v10 = vunpack.i.l.bf16 %v3976_v57  ;;  %v5263_v28 = vld [vmem:[#allocation2 + $0xf8] sm:$0xff] }
 0x23d   : > { %4250 = vrot.lane.b32.xlu1 %v4996_v26, %s4626_s28 }
 0x23e   : > { %v5183_v58 = vpop.permute.xlu0 %3895  ;;  %v1106_v35 = vsel %vm266_vm1, %v3977_v10, %v3978_v12  ;;  %v4274_v10 = vpack.i.bf16 %v5263_v28, %v5032_v45 }
 0x23f   : > { %6881 = vst [vmem:[#allocation8_spill] sm:$0xff] %v5183_v58  ;;  %v5189_v60 = vpop.permute.xlu1 %3980  ;;  %v3631_v54 = vpack.c.bf16 %v1106_v35, %v1103_v50  ;;  %v1987_v35 = vld [vmem:[#allocation2 + $0x60] sm:$0xff]  ;;  %v5315_v50 = vld [vmem:[#allocation2 + $0x18] sm:$0xff] }
 0x240   : > { %4180 = vrot.lane.b32.xlu0 %v4975_v61, %s4634_s11 }
 0x241   : > { %4255 = vrot.lane.b32.xlu1 %v4996_v26, %s4627_s29 }
 0x242   : > { %v5191_v62 = vpop.permute.xlu0 %3900 }
 0x243   : > { %6882 = vst [vmem:[#allocation9_spill] sm:$0xff] %v5191_v62  ;;  %v5197_v1 = vpop.permute.xlu1 %3985 }
 0x244   : > { %4185 = vrot.lane.b32.xlu0 %v4975_v61, %s4628_s30 }
 0x245   : > { %4260 = vrot.lane.b32.xlu1 %v5026_v42, %s4634_s11 }
 0x246   : > { %v5199_v3 = vpop.permute.xlu0 %3925 }
 0x247   : > { %6883 = vst [vmem:[#allocation10_spill] sm:$0xff] %v5199_v3  ;;  %v5209_v5 = vpop.permute.xlu1 %3990  ;;  %v6768_v61 = vunpack.i.h.bf16 %v5199_v3  ;;  %v3927_v9 = vunpack.i.l.bf16 %v5199_v3 }
 0x248   : > { %4195 = vrot.lane.b32.xlu0 %v5203_v4, %s4628_s30  ;;  %6884 = vst [vmem:[#allocation11_spill] sm:$0xff] %v5209_v5 }
 0x249   : > { %4265 = vrot.lane.b32.xlu1 %v5026_v42, %s4628_s30  ;;  %v2704_v33 = vsel %vm516_vm8, %v3927_v9, %v6768_v61 }
 0x24a   : > { %v5211_v0 = vpop.permute.xlu0 %3930 }
 0x24b   : > { %6885 = vst [vmem:[#allocation12_spill] sm:$0xff] %v5211_v0  ;;  %v5221_v13 = vpop.permute.xlu1 %3995 }
 0x24c   : > { %4225 = vrot.lane.b32.xlu0 %v5003_v17, %s4629_s7  ;;  %6886 = vst [vmem:[#allocation13_spill] sm:$0xff] %v5221_v13  ;;  %v6769_v16 = vunpack.i.h.bf16 %v5221_v13  ;;  %v3997_v19 = vunpack.i.l.bf16 %v5221_v13 }
 0x24d   : > { %4270 = vrot.lane.b32.xlu1 %v5026_v42, %s4629_s7  ;;  %v1104_v42 = vsel %vm266_vm1, %v3908_v24, %v3882_v18  ;;  %v5277_v18 = vld [vmem:[#allocation2 + $0x30] sm:$0xff] }
 0x24e   : > { %v3941_v26 = vpop.permute.xlu0 %3940  ;;  %v2707_v48 = vsel %vm516_vm8, %v3997_v19, %v6769_v16  ;;  %v1991_v16 = vld [vmem:[#allocation2 + $0x80] sm:$0xff] }
 0x24f   : > { %v3943_v17 = vunpack.i.h.bf16 %v3941_v26  ;;  %v3942_v20 = vunpack.i.l.bf16 %v3941_v26  ;;  %v5239_v51 = vpop.permute.xlu1 %4000  ;;  %v3757_v34 = vpack.c.bf16 %v2707_v48, %v2704_v33 }
 0x250   : > { %4230 = vrot.lane.b32.xlu0 %v4229_v30, %s4625_s27  ;;  %6887 = vst [vmem:[#allocation14_spill] sm:$0xff] %v5239_v51 }
 0x251   : > { %v5245_v41 = vsel %vm266_vm1, %v3942_v20, %v3943_v17  ;;  %v1107_v44 = vsel %vm266_vm1, %v3978_v12, %v3942_v20  ;;  %4290 = vrot.lane.b32.xlu1 %v5016_v36, %s4634_s11  ;;  %3758 = vmatprep.subr.bf16.mxu1 %v3757_v34  ;;  %v5290_v20 = vld [vmem:[#allocation2 + $0x50] sm:$0xff]  ;;  %v5306_v34 = vpack.i.bf16 %v5263_v28, %v5217_v11 }
 0x252   : > { %6889 = vst [vmem:[#allocation16_spill] sm:$0xff] %v5245_v41  ;;  %v5250_v22 = vpop.permute.xlu0 %3945  ;;  %v3629_v32 = vpack.c.bf16 %v1107_v44, %v1104_v42  ;;  %v5359_v41 = vld [vmem:[#allocation2 + $0xb0] sm:$0xff] }
 0x253   : > { %v5257_v55 = vpop.permute.xlu1 %4025 }
 0x254   : > { %4235 = vrot.lane.b32.xlu0 %v4229_v30, %s4626_s28  ;;  %3630 = vmatprep.subr.bf16.mxu0 %v3629_v32  ;;  %v5317_v32 = vld [vmem:[#allocation2 + $0xe0] sm:$0xff] }
 0x255   : > { %3632 = vmatpush1.bf16.msra.mxu0 %v3631_v54  ;;  %4295 = vrot.lane.b32.xlu1 %v5016_v36, %s4628_s30 }
 0x256   : > { %v5259_v23 = vpop.permute.xlu0 %3950 }
 0x257   : > { %v5266_v57 = vpop.permute.xlu1 %4030 }
 0x258   : > { %4240 = vrot.lane.b32.xlu0 %v4229_v30, %s4627_s29 }
 0x259   : > { %4300 = vrot.lane.b32.xlu1 %v5016_v36, %s4629_s7  ;;  %v4314_v36 = vpack.i.bf16 %v5055_v6, %v5277_v18 }
 0x25a   : > { %v5268_v12 = vpop.permute.xlu0 %3955 }
 0x25b   : > { %6890 = vst [vmem:[#allocation17_spill] sm:$0xff] %v5268_v12  ;;  %v5275_v15 = vpop.permute.xlu1 %4035 }
 0x25c   : > { %4275 = vrot.lane.b32.xlu0 %v4274_v10, %s4625_s27  ;;  %6891 = vst [vmem:[#allocation18_spill] sm:$0xff] %v5275_v15 }
 0x25d   : > { %4310 = vrot.lane.b32.xlu1 %v4309_v40, %s4625_s27  ;;  %v4324_v40 = vpack.i.bf16 %v5290_v20, %v5295_v29 }
 0x25e   : > { %v3961_v24 = vpop.permute.xlu0 %3960 }
 0x25f   : > { %v3963_v25 = vunpack.i.h.bf16 %v3961_v24  ;;  %v3962_v26 = vunpack.i.l.bf16 %v3961_v24  ;;  %v5284_v45 = vpop.permute.xlu1 %4040  ;;  %v5323_v24 = vld [vmem:[#allocation2 + $0x70] sm:$0xff] }
 0x260   : > { %4280 = vrot.lane.b32.xlu0 %v4274_v10, %s4626_s28  ;;  %6892 = vst [vmem:[#allocation19_spill] sm:$0xff] %v5284_v45 }
 0x261   : > { %v2706_v30 = vsel %vm516_vm8, %v3963_v25, %v3997_v19  ;;  %v2703_v17 = vsel %vm516_vm8, %v3962_v26, %v3927_v9  ;;  %4315 = vrot.lane.b32.xlu1 %v4314_v36, %s4632_s9  ;;  %v1983_v19 = vld [vmem:[#allocation2 + $0x40] sm:$0xff]  ;;  %v4344_v26 = vpack.i.bf16 %v5043_v56, %v5317_v32  ;;  %v5330_v36 = vld [vmem:[#allocation2 + $0x68] sm:$0xff] }
 0x262   : > { %v5292_v33 = vpop.permute.xlu0 %3965  ;;  %v3759_v48 = vpack.c.bf16 %v2706_v30, %v2703_v17  ;;  %v5313_v44 = vpack.i.bf16 %v1987_v35, %v1983_v19  ;;  %v4329_v17 = vpack.i.bf16 %v5323_v24, %v5330_v36  ;;  %v4339_v35 = vpack.i.bf16 %v5083_v27, %v5290_v20 }
 0x263   : > { %6893 = vst [vmem:[#allocation20_spill] sm:$0xff] %v5292_v33  ;;  %v5298_v31 = vpop.permute.xlu1 %4045  ;;  %v4028_v27 = vunpack.i.h.bf16 %v5257_v55 }
 0x264   : > { %4285 = vrot.lane.b32.xlu0 %v4274_v10, %s4627_s29  ;;  %3760 = vmatpush1.bf16.msra.mxu1 %v3759_v48  ;;  %6894 = vst [vmem:[#allocation21_spill] sm:$0xff] %v5298_v31  ;;  %v4319_v10 = vpack.i.bf16 %v5055_v6, %v5315_v50  ;;  %v4349_v48 = vpack.i.bf16 %v5097_v21, %v5323_v24 }
 0x265   : > { %4325 = vrot.lane.b32.xlu1 %v4324_v40, %s4630_s8  ;;  %v5342_v40 = vld [vmem:[#allocation2 + $0x90] sm:$0xff] }
 0x266   : > { %v5302_v9 = vpop.permute.xlu0 %4005 }
 0x267   : > { %6895 = vst [vmem:[#allocation22_spill] sm:$0xff] %v5302_v9  ;;  %v5311_v42 = vpop.permute.xlu1 %4050 }
 0x268   : > { %4305 = vrot.lane.b32.xlu0 %v5306_v34, %s4628_s30  ;;  %6896 = vst [vmem:[#allocation23_spill] sm:$0xff] %v5311_v42 }
 0x269   : > { %4335 = vrot.lane.b32.xlu1 %v5313_v44, %s4630_s8 }
 0x26a   : > { %v4011_v54 = vpop.permute.xlu0 %4010 }
 0x26b   : > { %v5326_v25 = vpop.permute.xlu1 %4070  ;;  %v4013_v61 = vunpack.i.h.bf16 %v4011_v54  ;;  %v4012_v21 = vunpack.i.l.bf16 %v4011_v54 }
 0x26c   : > { %4320 = vrot.lane.b32.xlu0 %v4319_v10, %s4629_s7  ;;  %v5349_v10 = vld [vmem:[#allocation2 + $0x88] sm:$0xff] }
 0x26d   : > { %4345 = vrot.lane.b32.xlu1 %v4344_v26, %s4626_s28  ;;  %v5366_v54 = vsel %vm266_vm1, %v4012_v21, %v4013_v61 }
 0x26e   : > { %v5332_v30 = vpop.permute.xlu0 %4015  ;;  %6900 = vst [vmem:[#allocation27_spill] sm:$0xff] %v5366_v54 }
 0x26f   : > { %v5338_v6 = vpop.permute.xlu1 %4075 }
 0x270   : > { %4330 = vrot.lane.b32.xlu0 %v4329_v17, %s4630_s8  ;;  %6897 = vst [vmem:[#allocation24_spill] sm:$0xff] %v5338_v6  ;;  %v4359_v17 = vpack.i.bf16 %v5342_v40, %v5349_v10  ;;  %v4374_v6 = vpack.i.bf16 %v5131_v49, %v5342_v40 }
 0x271   : > { %4350 = vrot.lane.b32.xlu1 %v4349_v48, %s4632_s9  ;;  %v4027_v48 = vunpack.i.l.bf16 %v5257_v55 }
 0x272   : > { %v5344_v19 = vpop.permute.xlu0 %4020 }
 0x273   : > { %6898 = vst [vmem:[#allocation25_spill] sm:$0xff] %v5344_v19  ;;  %v5352_v47 = vpop.permute.xlu1 %4080  ;;  %v1109_v61 = vsel %vm266_vm1, %v4027_v48, %v4028_v27  ;;  %v2605_v48 = vld [vmem:[#allocation2 + $0xf0] sm:$0xff] }
 0x274   : > { %4340 = vrot.lane.b32.xlu0 %v4339_v35, %s4632_s9  ;;  %6899 = vst [vmem:[#allocation26_spill] sm:$0xff] %v5352_v47  ;;  %v5363_v47 = vpack.i.bf16 %v1995_v38, %v1991_v16  ;;  %v1110_v16 = vsel %vm266_vm1, %v4028_v27, %v4012_v21 }
 0x275   : > { %4360 = vrot.lane.b32.xlu1 %v4359_v17, %s4630_s8  ;;  %v5371_v17 = vld [vmem:[#allocation2 + $0xa8] sm:$0xff] }
 0x276   : > { %v4056_v3 = vpop.permute.xlu0 %4055 }
 0x277   : > { %v4058_v13 = vunpack.i.h.bf16 %v4056_v3  ;;  %v4057_v37 = vunpack.i.l.bf16 %v4056_v3  ;;  %v4091_v35 = vpop.permute.xlu1 %4090  ;;  %v4364_v3 = vpack.i.bf16 %v5359_v41, %v5371_v17 }
 0x278   : > { %4355 = vrot.lane.b32.xlu0 %v5113_v46, %s4629_s7  ;;  %v4093_v62 = vunpack.i.h.bf16 %v4091_v35  ;;  %v4092_v55 = vunpack.i.l.bf16 %v4091_v35 }
 0x279   : > { %v5369_v42 = vsel %vm266_vm1, %v4057_v37, %v4058_v13  ;;  %4370 = vrot.lane.b32.xlu1 %v5363_v47, %s4630_s8 }
 0x27a   : > { %6901 = vst [vmem:[#allocation28_spill] sm:$0xff] %v5369_v42  ;;  %v5373_v9 = vpop.permute.xlu0 %4060  ;;  %v1112_v13 = vsel %vm266_vm1, %v4092_v55, %v4093_v62  ;;  %v1113_v38 = vsel %vm266_vm1, %v4093_v62, %v4057_v37  ;;  %v4384_v62 = vpack.i.bf16 %v5158_v7, %v5359_v41  ;;  %v2201_v37 = vld [vmem:[#allocation2 + $0xd0] sm:$0xff]  ;;  %v1999_v7 = vld [vmem:[#allocation2 + $0xc0] sm:$0xff] }
 0x27b   : > { %v5386_v35 = vpop.permute.xlu1 %4095  ;;  %v3633_v0 = vpack.c.bf16 %v1113_v38, %v1110_v16  ;;  %v3635_v33 = vpack.c.bf16 %v1112_v13, %v1109_v61  ;;  %v5423_v16 = vpack.i.bf16 %v5317_v32, %v1999_v7  ;;  %v5436_v46 = vpack.i.bf16 %v5217_v11, %v2201_v37  ;;  %v2176_v7 = vld [vmem:[#allocation2 + $0x8] sm:$0xff]  ;;  %v2175_v11 = vld [vmem:[#allocation2] sm:$0xff] }
 0x27c   : > { %4365 = vrot.lane.b32.xlu0 %v4364_v3, %s4630_s8  ;;  %v5412_v3 = vpack.i.bf16 %v2605_v48, %v5043_v56 }
 0x27d   : > { %4380 = vrot.lane.b32.xlu1 %v4344_v26, %s4627_s29  ;;  %3634 = vmatprep.subr.bf16.mxu0 %v3633_v0  ;;  %v4394_v0 = vpack.i.bf16 %v2201_v37, %v5041_v53  ;;  %v4047_v26 = vunpack.i.l.bf16 %v5298_v31  ;;  %v2179_v37 = vld [vmem:[#allocation2 + $0x20] sm:$0xff] }
 0x27e   : > { %v5388_v51 = vpop.permute.xlu0 %4065  ;;  %3636 = vmatpush1.bf16.msra.mxu0 %v3635_v33  ;;  %v6784_v33 = vunpack.i.h.bf16 %v5298_v31 }
 0x27f   : > { %6902 = vst [vmem:[#allocation29_spill] sm:$0xff] %v5388_v51  ;;  %v5394_v21 = vpop.permute.xlu1 %4100 }
 0x280   : > { %4375 = vrot.lane.b32.xlu0 %v4374_v6, %s4632_s9  ;;  %v4072_v6 = vunpack.i.l.bf16 %v5326_v25 }
 0x281   : > { %4385 = vrot.lane.b32.xlu1 %v4384_v62, %s4632_s9 }
 0x282   : > { %v5398_v27 = vpop.permute.xlu0 %4085  ;;  %v2709_v38 = vsel %vm516_vm8, %v4072_v6, %v4047_v26 }
 0x283   : > { %6903 = vst [vmem:[#allocation30_spill] sm:$0xff] %v5398_v27  ;;  %v5403_v49 = vpop.permute.xlu1 %4135 }
 0x284   : > { %4390 = vrot.lane.b32.xlu0 %v5203_v4, %s4629_s7  ;;  %v4073_v4 = vunpack.i.h.bf16 %v5326_v25  ;;  %v2710_v25 = vsel %vm516_vm8, %v4047_v26, %v6784_v33  ;;  %v5445_v26 = vpack.i.bf16 %v5263_v28, %v2605_v48  ;;  %v5459_v48 = vpack.i.bf16 %v2179_v37, %v2175_v11  ;;  %v2382_v33 = vld [vmem:[#allocation2 + $0x38] sm:$0xff] }
 0x285   : > { %4395 = vrot.lane.b32.xlu1 %v4394_v0, %s4630_s8 }
 0x286   : > { %v5409_v55 = vpop.permute.xlu0 %4105 }
 0x287   : > { %6904 = vst [vmem:[#allocation31_spill] sm:$0xff] %v5409_v55  ;;  %v6783_v61 = vunpack.i.h.bf16 %v5409_v55  ;;  %v4107_v53 = vunpack.i.l.bf16 %v5409_v55  ;;  %v5420_v13 = vpop.permute.xlu1 %4140 }
 0x288   : > { %4405 = vrot.lane.b32.xlu0 %v5412_v3, %s4634_s11  ;;  %v4143_v31 = vunpack.i.h.bf16 %v5420_v13 }
 0x289   : > { %v2712_v56 = vsel %vm516_vm8, %v4073_v4, %v4107_v53  ;;  %v2713_v62 = vsel %vm516_vm8, %v4107_v53, %v6783_v61  ;;  %4400 = vrot.lane.b32.xlu1 %v5423_v16, %s4630_s8  ;;  %v2180_v4 = vld [vmem:[#allocation2 + $0x28] sm:$0xff] }
 0x28a   : > { %v5433_v0 = vpop.permute.xlu0 %4110  ;;  %v3761_v27 = vpack.c.bf16 %v2713_v62, %v2710_v25  ;;  %v3763_v32 = vpack.c.bf16 %v2712_v56, %v2709_v38  ;;  %v2377_v56 = vld [vmem:[#allocation2 + $0x10] sm:$0xff] }
 0x28b   : > { %6905 = vst [vmem:[#allocation32_spill] sm:$0xff] %v5433_v0  ;;  %v5442_v6 = vpop.permute.xlu1 %4145  ;;  %v2390_v0 = vld [vmem:[#allocation2 + $0x78] sm:$0xff] }
 0x28c   : > { %4410 = vrot.lane.b32.xlu0 %v5436_v46, %s4632_s9  ;;  %3762 = vmatprep.subr.bf16.mxu1 %v3761_v27  ;;  %v5455_v27 = vpack.i.bf16 %v2180_v4, %v2176_v7  ;;  %v4434_v4 = vpack.i.bf16 %v5315_v50, %v2377_v56  ;;  %v4469_v58 = vpack.i.bf16 %v2390_v0, %v5323_v24 }
 0x28d   : > { %3764 = vmatpush1.bf16.msra.mxu1 %v3763_v32  ;;  %4415 = vrot.lane.b32.xlu1 %v5445_v26, %s4632_s9  ;;  %v5468_v32 = vld [vmem:[%s6763_s3 + $0x8] sm:$0xff] }
 0x28e   : > { %v5447_v53 = vpop.permute.xlu0 %4115  ;;  %6907 = vst [vmem:[#allocation34_spill] sm:$0xff] %v5468_v32  ;;  %3069 = vmatprep.mubr.f32.mxu0 %v5468_v32 }
 0x28f   : > { %6906 = vst [vmem:[#allocation33_spill] sm:$0xff] %v5447_v53  ;;  %v5453_v38 = vpop.permute.xlu1 %4160  ;;  %v4444_v53 = vpack.i.bf16 %v2382_v33, %v5277_v18 }
 0x290   : > { %4420 = vrot.lane.b32.xlu0 %v5306_v34, %s4629_s7  ;;  %v6791_v37 = vunpack.i.l.bf16 %v5453_v38 }
 0x291   : > { %4425 = vrot.lane.b32.xlu1 %v5455_v27, %s4632_s9 }
 0x292   : > { %v5457_v28 = vpop.permute.xlu0 %4120 }
 0x293   : > { %v4123_v25 = vunpack.i.h.bf16 %v5457_v28  ;;  %v6788_v62 = vunpack.i.l.bf16 %v5457_v28  ;;  %v5472_v7 = vpop.permute.xlu1 %4190  ;;  %v6920_v51 = vunpack.i.l.bf16 %v5457_v28 }
 0x294   : > { %4430 = vrot.lane.b32.xlu0 %v5459_v48, %s4632_s9  ;;  %v4192_v61 = vunpack.i.l.bf16 %v5472_v7 }
 0x295   : > { %v5479_v11 = vsel %vm266_vm1, %v6788_v62, %v4123_v25  ;;  %4435 = vrot.lane.b32.xlu1 %v4434_v4, %s4633_s10  ;;  %v5498_v62 = vpack.i.bf16 %v2382_v33, %v5315_v50 }
 0x296   : > { %v5483_v55 = vpop.permute.xlu0 %4125  ;;  %v5491_v54 = vsel %vm391_vm5, %v4192_v61, %v6791_v37  ;;  %v4142_v61 = vunpack.i.l.bf16 %v5420_v13  ;;  %v4148_v37 = vunpack.i.h.bf16 %v5442_v6  ;;  %v5527_v13 = vpack.i.bf16 %v5330_v36, %v5295_v29  ;;  %v2386_v36 = vld [vmem:[#allocation2 + $0x58] sm:$0xff] }
 0x297   : > { %v6793_v56 = vunpack.i.l.bf16 %v5483_v55  ;;  %6908 = vst [vmem:[#allocation35_spill] sm:$0xff] %v5491_v54  ;;  %v5495_v25 = vpop.permute.xlu1 %4200 }
 0x298   : > { %4440 = vrot.lane.b32.xlu0 %v5412_v3, %s4628_s30  ;;  %v4203_v12 = vunpack.i.h.bf16 %v5495_v25  ;;  %v4202_v8 = vunpack.i.l.bf16 %v5495_v25 }
 0x299   : > { %v5503_v4 = vsel %vm297_vm3, %v4143_v31, %v6793_v56  ;;  %4450 = vrot.lane.b32.xlu1 %v5498_v62, %s4630_s8  ;;  %v4147_v56 = vunpack.i.l.bf16 %v5442_v6 }
 0x29a   : > { %v5505_v42 = vpop.permute.xlu0 %4130 }
 0x29b   : > { %v6798_v32 = vunpack.i.l.bf16 %v5505_v42  ;;  %v5514_v50 = vpop.permute.xlu1 %4205  ;;  %v5558_v24 = vsel %vm328_vm2, %v4147_v56, %v4148_v37 }
 0x29c   : > { %4445 = vrot.lane.b32.xlu0 %v4444_v53, %s4633_s10  ;;  %v4207_v45 = vunpack.i.l.bf16 %v5514_v50  ;;  %v5532_v53 = vsel %vm297_vm3, %v4142_v61, %v4143_v31  ;;  %v6911_v43 = vunpack.i.h.bf16 %v5514_v50  ;;  %v4464_v31 = vpack.i.bf16 %v2386_v36, %v5290_v20  ;;  %6913 = vst [vmem:[#allocation39_spill] sm:$0xff] %v5558_v24 }
 0x29d   : > { %v5521_v18 = vsel %vm328_vm2, %v4148_v37, %v6798_v32  ;;  %4460 = vrot.lane.b32.xlu1 %v5313_v44, %s4632_s9  ;;  %6910 = vst [vmem:[#allocation37_spill] sm:$0xff] %v5532_v53 }
 0x29e   : > { %v5523_v33 = vpop.permute.xlu0 %4150  ;;  %v5538_v5 = vsel %vm297_vm3, %v4207_v45, %v6911_v43  ;;  %v4138_v43 = vunpack.i.h.bf16 %v5403_v49  ;;  %v4137_v45 = vunpack.i.l.bf16 %v5403_v49  ;;  %v1118_v49 = vsel %vm266_vm1, %v4202_v8, %v4203_v12 }
 0x29f   : > { %6909 = vst [vmem:[#allocation36_spill] sm:$0xff] %v5523_v33  ;;  %6912 = vst [vmem:[#allocation38_spill] sm:$0xff] %v5538_v5  ;;  %v5544_v32 = vpop.permute.xlu1 %4210 }
 0x2a0   : > { %4455 = vrot.lane.b32.xlu0 %v5527_v13, %s4632_s9  ;;  %v6803_v6 = vunpack.i.h.bf16 %v5544_v32  ;;  %v4212_v61 = vunpack.i.l.bf16 %v5544_v32 }
 0x2a1   : > { %4470 = vrot.lane.b32.xlu1 %v4469_v58, %s4633_s10  ;;  %v5574_v58 = vpack.i.bf16 %v5371_v17, %v5349_v10  ;;  %v6916_v10 = vunpack.i.h.bf16 %v5523_v33  ;;  %v6917_v17 = vunpack.i.l.bf16 %v5523_v33 }
 0x2a2   : > { %v5554_v29 = vpop.permute.xlu0 %4155  ;;  %v5563_v20 = vsel %vm328_vm2, %v4212_v61, %v6803_v6  ;;  %v5578_v61 = vpack.i.bf16 %v2390_v0, %v2386_v36  ;;  %v2394_v6 = vld [vmem:[#allocation2 + $0x98] sm:$0xff] }
 0x2a3   : > { %6914 = vst [vmem:[#allocation40_spill] sm:$0xff] %v5563_v20  ;;  %v5570_v14 = vpop.permute.xlu1 %4215  ;;  %v4494_v25 = vpack.i.bf16 %v2394_v6, %v5342_v40  ;;  %v2716_v37 = vsel %vm516_vm8, %v6917_v17, %v6916_v10  ;;  %v1115_v20 = vsel %vm266_vm1, %v4137_v45, %v4138_v43  ;;  %v4128_v40 = vunpack.i.h.bf16 %v5483_v55 }
 0x2a4   : > { %4465 = vrot.lane.b32.xlu0 %v4464_v31, %s4633_s10  ;;  %6915 = vst [vmem:[#allocation41_spill] sm:$0xff] %v5570_v14  ;;  %v6918_v8 = vunpack.i.h.bf16 %v5570_v14  ;;  %v6919_v31 = vunpack.i.l.bf16 %v5570_v14  ;;  %v1116_v10 = vsel %vm266_vm1, %v4138_v43, %v6920_v51  ;;  %v3639_v53 = vpack.c.bf16 %v1118_v49, %v1115_v20 }
 0x2a5   : > { %4485 = vrot.lane.b32.xlu1 %v5574_v58, %s4632_s9 }
 0x2a6   : > { %v4166_v15 = vpop.permute.xlu0 %4165  ;;  %v2719_v24 = vsel %vm516_vm8, %v6919_v31, %v6918_v8  ;;  %v2398_v8 = vld [vmem:[#allocation2 + $0xb8] sm:$0xff] }
 0x2a7   : > { %v4168_v36 = vunpack.i.h.bf16 %v4166_v15  ;;  %v4167_v56 = vunpack.i.l.bf16 %v4166_v15  ;;  %v5603_v17 = vpop.permute.xlu1 %4220  ;;  %v3765_v15 = vpack.c.bf16 %v2719_v24, %v2716_v37  ;;  %v6922_v37 = vunpack.i.l.bf16 %v5554_v29 }
 0x2a8   : > { %4475 = vrot.lane.b32.xlu0 %v5412_v3, %s4629_s7  ;;  %v6812_v31 = vunpack.i.h.bf16 %v5603_v17  ;;  %v4222_v45 = vunpack.i.l.bf16 %v5603_v17 }
 0x2a9   : > { %v5606_v0 = vsel %vm266_vm1, %v4167_v56, %v4168_v36  ;;  %v1119_v19 = vsel %vm266_vm1, %v4203_v12, %v4167_v56  ;;  %4495 = vrot.lane.b32.xlu1 %v4494_v25, %s4633_s10  ;;  %3766 = vmatprep.subr.bf16.mxu1 %v3765_v15  ;;  %v6921_v12 = vunpack.i.h.bf16 %v5554_v29  ;;  %v5634_v25 = vpack.i.bf16 %v2398_v8, %v2394_v6 }
 0x2aa   : > { %v5613_v28 = vpop.permute.xlu0 %4170  ;;  %v3637_v51 = vpack.c.bf16 %v1119_v19, %v1116_v10  ;;  %v5628_v20 = vsel %vm364_vm4, %v4222_v45, %v6812_v31  ;;  %v6923_v36 = vunpack.i.l.bf16 %v5483_v55  ;;  %v4133_v15 = vunpack.i.h.bf16 %v5505_v42 }
 0x2ab   : > { %v4173_v43 = vunpack.i.h.bf16 %v5613_v28  ;;  %v6811_v24 = vunpack.i.l.bf16 %v5613_v28  ;;  %v5623_v56 = vsel %vm364_vm4, %v6922_v37, %v6921_v12  ;;  %v5632_v19 = vpop.permute.xlu1 %4245 }
 0x2ac   : > { %4480 = vrot.lane.b32.xlu0 %v5578_v61, %s4630_s8  ;;  %3638 = vmatprep.subr.bf16.mxu0 %v3637_v51  ;;  %v5641_v10 = vsel %vm297_vm3, %v6923_v36, %v4128_v40  ;;  %v6926_v36 = vunpack.i.h.bf16 %v5544_v32 }
 0x2ad   : > { %6924 = vst [vmem:[#allocation42_spill] sm:$0xff] %v5641_v10  ;;  %v5647_v12 = vsel %vm297_vm3, %v6811_v24, %v4173_v43  ;;  %3640 = vmatpush1.bf16.msra.mxu0 %v3639_v53  ;;  %4505 = vrot.lane.b32.xlu1 %v5634_v25, %s4630_s8  ;;  %v6927_v53 = vunpack.i.l.bf16 %v5505_v42 }
 0x2ae   : > { %6925 = vst [vmem:[#allocation43_spill] sm:$0xff] %v5647_v12  ;;  %v4176_v51 = vpop.permute.xlu0 %4175  ;;  %v4098_v12 = vunpack.i.h.bf16 %v5386_v35 }
 0x2af   : > { %v4178_v37 = vunpack.i.h.bf16 %v4176_v51  ;;  %v4177_v55 = vunpack.i.l.bf16 %v4176_v51  ;;  %v5655_v40 = vpop.permute.xlu1 %4250  ;;  %v5665_v6 = vsel %vm328_vm2, %v6927_v53, %v4133_v15  ;;  %v4499_v51 = vpack.i.bf16 %v2398_v8, %v5359_v41 }
 0x2b0   : > { %4490 = vrot.lane.b32.xlu0 %v5363_v47, %s4632_s9  ;;  %v6929_v41 = vunpack.i.l.bf16 %v5523_v33 }
 0x2b1   : > { %v5660_v43 = vsel %vm328_vm2, %v6926_v36, %v4177_v55  ;;  %v5668_v5 = vsel %vm328_vm2, %v4177_v55, %v4178_v37  ;;  %4510 = vrot.lane.b32.xlu1 %v5423_v16, %s4632_s9  ;;  %v6928_v37 = vunpack.i.l.bf16 %v5570_v14 }
 0x2b2   : > { %v4181_v49 = vpop.permute.xlu0 %4180 }
 0x2b3   : > { %v4183_v24 = vunpack.i.h.bf16 %v4181_v49  ;;  %v4182_v42 = vunpack.i.l.bf16 %v4181_v49  ;;  %v5678_v15 = vpop.permute.xlu1 %4255 }
 0x2b4   : > { %4500 = vrot.lane.b32.xlu0 %v4499_v51, %s4633_s10 }
 0x2b5   : > { %v2718_v55 = vsel %vm516_vm8, %v4183_v24, %v6928_v37  ;;  %v2715_v8 = vsel %vm516_vm8, %v4182_v42, %v6929_v41  ;;  %4525 = vrot.lane.b32.xlu1 %v5445_v26, %s4633_s10  ;;  %v6931_v24 = vunpack.i.l.bf16 %v5554_v29  ;;  %v6934_v41 = vunpack.i.h.bf16 %v5603_v17 }
 0x2b6   : > { %v3767_v53 = vpack.c.bf16 %v2718_v55, %v2715_v8  ;;  %v4186_v31 = vpop.permute.xlu0 %4185  ;;  %v3983_v37 = vunpack.i.h.bf16 %v5189_v60 }
 0x2b7   : > { %v4188_v36 = vunpack.i.h.bf16 %v4186_v31  ;;  %v4187_v32 = vunpack.i.l.bf16 %v4186_v31  ;;  %v5690_v49 = vpop.permute.xlu1 %4260 }
 0x2b8   : > { %4515 = vrot.lane.b32.xlu0 %v5412_v3, %s4630_s8  ;;  %3768 = vmatpush1.bf16.msra.mxu1 %v3767_v53  ;;  %6930 = vst [vmem:[#allocation44_spill] sm:$0xff] %v5690_v49  ;;  %v4193_v53 = vunpack.i.h.bf16 %v5472_v7 }
 0x2b9   : > { %v5693_v51 = vsel %vm364_vm4, %v4188_v36, %v4222_v45  ;;  %v5698_v42 = vsel %vm364_vm4, %v4187_v32, %v6931_v24  ;;  %4535 = vrot.lane.b32.xlu1 %v5455_v27, %s4633_s10  ;;  %v6814_v45 = vunpack.i.h.bf16 %v5453_v38  ;;  %v6932_v36 = vunpack.i.h.bf16 %v5554_v29 }
 0x2ba   : > { %v4196_v26 = vpop.permute.xlu0 %4195 }
 0x2bb   : > { %v4198_v31 = vunpack.i.h.bf16 %v4196_v26  ;;  %v4197_v3 = vunpack.i.l.bf16 %v4196_v26  ;;  %v5706_v55 = vpop.permute.xlu1 %4265 }
 0x2bc   : > { %4520 = vrot.lane.b32.xlu0 %v5436_v46, %s4633_s10 }
 0x2bd   : > { %v5712_v32 = vsel %vm364_vm4, %v6932_v36, %v4197_v3  ;;  %v5717_v8 = vsel %vm364_vm4, %v6934_v41, %v4198_v31  ;;  %4545 = vrot.lane.b32.xlu1 %v5527_v13, %s4633_s10  ;;  %v6937_v13 = vunpack.i.l.bf16 %v5453_v38 }
 0x2be   : > { %6933 = vst [vmem:[#allocation45_spill] sm:$0xff] %v5712_v32  ;;  %6935 = vst [vmem:[#allocation46_spill] sm:$0xff] %v5717_v8  ;;  %v5719_v27 = vpop.permute.xlu0 %4225 }
 0x2bf   : > { %v6813_v29 = vunpack.i.h.bf16 %v5719_v27  ;;  %v4227_v24 = vunpack.i.l.bf16 %v5719_v27  ;;  %v5730_v17 = vpop.permute.xlu1 %4270  ;;  %v5740_v31 = vsel %vm391_vm5, %v6937_v13, %v6814_v45  ;;  %v3982_v45 = vunpack.i.l.bf16 %v5189_v60 }
 0x2c0   : > { %4530 = vrot.lane.b32.xlu0 %v5306_v34, %s4630_s8  ;;  %6938 = vst [vmem:[#allocation48_spill] sm:$0xff] %v5740_v31  ;;  %v6819_v46 = vunpack.i.l.bf16 %v5730_v17 }
 0x2c1   : > { %v5733_v26 = vsel %vm391_vm5, %v4193_v53, %v4227_v24  ;;  %v5745_v7 = vsel %vm391_vm5, %v4227_v24, %v6813_v29  ;;  %4560 = vrot.lane.b32.xlu1 %v5313_v44, %s4633_s10  ;;  %v6816_v44 = vunpack.i.l.bf16 %v5706_v55  ;;  %v4248_v29 = vunpack.i.h.bf16 %v5632_v19 }
 0x2c2   : > { %6936 = vst [vmem:[#allocation47_spill] sm:$0xff] %v5733_v26  ;;  %6939 = vst [vmem:[#allocation49_spill] sm:$0xff] %v5745_v7  ;;  %v5749_v3 = vpop.permute.xlu0 %4230 }
 0x2c3   : > { %v5757_v41 = vpop.permute.xlu1 %4290  ;;  %v6942_v60 = vunpack.i.l.bf16 %v5749_v3 }
 0x2c4   : > { %4540 = vrot.lane.b32.xlu0 %v5459_v48, %s4633_s10 }
 0x2c5   : > { %4570 = vrot.lane.b32.xlu1 %v5578_v61, %s4634_s11  ;;  %v1122_v26 = vsel %vm266_vm1, %v4248_v29, %v6942_v60 }
 0x2c6   : > { %v5759_v53 = vpop.permute.xlu0 %4235 }
 0x2c7   : > { %v5765_v24 = vpop.permute.xlu1 %4295  ;;  %v4238_v14 = vunpack.i.h.bf16 %v5759_v53 }
 0x2c8   : > { %4550 = vrot.lane.b32.xlu0 %v5049_v2, %s4632_s9  ;;  %v4297_v13 = vunpack.i.l.bf16 %v5765_v24 }
 0x2c9   : > { %4585 = vrot.lane.b32.xlu1 %v5049_v2, %s4633_s10  ;;  %v4247_v2 = vunpack.i.l.bf16 %v5632_v19 }
 0x2ca   : > { %v5769_v34 = vpop.permute.xlu0 %4240  ;;  %v5776_v48 = vsel %vm364_vm4, %v4297_v13, %v6816_v44  ;;  %v2996_v44 = vld [vmem:[%s6764_s4] sm:$0xff] }
 0x2cb   : > { %v5780_v61 = vpop.permute.xlu1 %4300  ;;  %v1121_v19 = vsel %vm266_vm1, %v4247_v2, %v4248_v29 }
 0x2cc   : > { %4555 = vrot.lane.b32.xlu0 %v5498_v62, %s4634_s11  ;;  %6940 = vst [vmem:[#allocation50_spill] sm:$0xff] %v5780_v61  ;;  %v4302_v36 = vunpack.i.l.bf16 %v5780_v61  ;;  %v3913_v62 = vunpack.i.h.bf16 %v5148_v59  ;;  %v6946_v61 = vunpack.i.l.bf16 %v5759_v53 }
 0x2cd   : > { %4590 = vrot.lane.b32.xlu1 %v5423_v16, %s4633_s10 }
 0x2ce   : > { %v5788_v33 = vpop.permute.xlu0 %4275  ;;  %v5796_v13 = vsel %vm391_vm5, %v4302_v36, %v6819_v46  ;;  %v6829_v36 = vunpack.i.l.bf16 %v5332_v30 }
 0x2cf   : > { %6941 = vst [vmem:[#allocation51_spill] sm:$0xff] %v5796_v13  ;;  %v4311_v16 = vpop.permute.xlu1 %4310  ;;  %v6944_v8 = vunpack.i.l.bf16 %v5788_v33 }
 0x2d0   : > { %4565 = vrot.lane.b32.xlu0 %v5574_v58, %s4633_s10  ;;  %v4313_v46 = vunpack.i.h.bf16 %v4311_v16  ;;  %v4312_v13 = vunpack.i.l.bf16 %v4311_v16  ;;  %v6943_v58 = vunpack.i.l.bf16 %v5250_v22 }
 0x2d1   : > { %2999 = vperm.xlu1 %3878, %v2996_v44   ;;  %v3912_v44 = vunpack.i.l.bf16 %v5148_v59 }
 0x2d2   : > { %v5811_v54 = vpop.permute.xlu0 %4280  ;;  %v1307_v32 = vsel %vm297_vm3, %v3983_v37, %v6943_v58  ;;  %v1124_v16 = vsel %vm266_vm1, %v4312_v13, %v4313_v46  ;;  %v1125_v2 = vsel %vm266_vm1, %v4313_v46, %v6944_v8  ;;  %v6945_v58 = vunpack.i.l.bf16 %v5171_v39 }
 0x2d3   : > { %v4283_v10 = vunpack.i.h.bf16 %v5811_v54  ;;  %v3643_v29 = vpack.c.bf16 %v1124_v16, %v1121_v19  ;;  %v5828_v60 = vpop.permute.xlu1 %4315  ;;  %v3641_v31 = vpack.c.bf16 %v1125_v2, %v1122_v26  ;;  %v6830_v13 = vunpack.i.l.bf16 %v5373_v9  ;;  %v6955_v19 = vld [vmem:[#allocation37_spill] sm:$0xff] }
 0x2d4   : > { %4575 = vrot.lane.b32.xlu0 %v5363_v47, %s4633_s10  ;;  %v1304_v7 = vsel %vm297_vm3, %v3913_v62, %v6945_v58  ;;  %v5838_v8 = vsel %vm297_vm3, %v6946_v61, %v4238_v14  ;;  %v6948_v59 = vunpack.i.l.bf16 %v5811_v54  ;;  %v1306_v46 = vsel %vm297_vm3, %v3982_v45, %v3983_v37  ;;  %v2606_v14 = vld [vmem:[#allocation2 + $0xf8] sm:$0xff] }
 0x2d5   : > { %6947 = vst [vmem:[#allocation52_spill] sm:$0xff] %v5838_v8  ;;  %v4097_v26 = vunpack.i.l.bf16 %v5386_v35  ;;  %3642 = vmatprep.subr.bf16.mxu0 %v3641_v31  ;;  %v3645_v2 = vpack.c.bf16 %v1307_v32, %v1304_v7  ;;  %v4033_v58 = vunpack.i.h.bf16 %v5266_v57  ;;  %v1303_v61 = vsel %vm297_vm3, %v3912_v44, %v3913_v62  ;;  %v2602_v45 = vld [vmem:[#allocation2 + $0xd8] sm:$0xff] }
 0x2d6   : > { %v5843_v47 = vsel %vm297_vm3, %v6948_v59, %v4283_v10  ;;  %v5849_v16 = vpop.permute.xlu0 %4285  ;;  %3644 = vmatpush1.bf16.msra.mxu0 %v3643_v29  ;;  %v1313_v10 = vsel %vm297_vm3, %v4098_v12, %v6830_v13  ;;  %v4032_v37 = vunpack.i.l.bf16 %v5266_v57  ;;  %v3647_v32 = vpack.c.bf16 %v1306_v46, %v1303_v61 }
 0x2d7   : > { %6949 = vst [vmem:[#allocation53_spill] sm:$0xff] %v5843_v47  ;;  %v5859_v35 = vpop.permute.xlu1 %4325  ;;  %3646 = vmatprep.subr.bf16.mxu0 %v3645_v2  ;;  %v1310_v31 = vsel %vm297_vm3, %v4033_v58, %v6829_v36  ;;  %v1312_v7 = vsel %vm297_vm3, %v4097_v26, %v4098_v12  ;;  %v4594_v59 = vpack.i.bf16 %v2606_v14, %v2602_v45  ;;  %v6950_v57 = vunpack.i.l.bf16 %v5613_v28 }
 0x2d8   : > { %4580 = vrot.lane.b32.xlu0 %v5634_v25, %s4634_s11  ;;  %v3649_v62 = vpack.c.bf16 %v1313_v10, %v1310_v31  ;;  %v6951_v25 = vunpack.i.h.bf16 %v5514_v50  ;;  %v1309_v2 = vsel %vm297_vm3, %v4032_v37, %v4033_v58  ;;  %v6828_v61 = vunpack.i.l.bf16 %v5859_v35 }
 0x2d9   : > { %v3651_v26 = vpack.c.bf16 %v1312_v7, %v1309_v2  ;;  %v6831_v14 = vunpack.i.l.bf16 %v5259_v23  ;;  %v4253_v10 = vunpack.i.h.bf16 %v5655_v40  ;;  %v4252_v28 = vunpack.i.l.bf16 %v5655_v40 }
 0x2da   : > { %v5865_v29 = vpop.permute.xlu0 %4305  ;;  %3648 = vmatpush1.bf16.msra.mxu0 %v3647_v32  ;;  %v1319_v44 = vsel %vm297_vm3, %v6951_v25, %v6950_v57  ;;  %v3918_v37 = vunpack.i.h.bf16 %v5154_v63  ;;  %v3988_v32 = vunpack.i.h.bf16 %v5197_v1  ;;  %v3987_v40 = vunpack.i.l.bf16 %v5197_v1 }
 0x2db   : > { %v4336_v46 = vpop.permute.xlu1 %4335  ;;  %3650 = vmatprep.subr.bf16.mxu0 %v3649_v62  ;;  %v3653_v50 = vpack.c.bf16 %v1319_v44, %v5503_v4  ;;  %v4103_v4 = vunpack.i.h.bf16 %v5394_v21  ;;  %v1321_v57 = vsel %vm297_vm3, %v4252_v28, %v4253_v10  ;;  %v6953_v44 = vunpack.i.l.bf16 %v5759_v53 }
 0x2dc   : > { %4595 = vrot.lane.b32.xlu0 %v4594_v59, %s4634_s11  ;;  %v4337_v12 = vunpack.i.l.bf16 %v4336_v46  ;;  %v6957_v28 = vunpack.i.l.bf16 %v5811_v54  ;;  %v3917_v53 = vunpack.i.l.bf16 %v5154_v63  ;;  %v4102_v63 = vunpack.i.l.bf16 %v5394_v21 }
 0x2dd   : > { %v1322_v2 = vsel %vm297_vm3, %v4253_v10, %v6953_v44  ;;  %v6985_v47 = vunpack.i.l.bf16 %v5849_v16 }
 0x2de   : > { %v5878_v45 = vpop.permute.xlu0 %4320  ;;  %v5884_v58 = vsel %vm422_vm6, %v4337_v12, %v6828_v61  ;;  %3652 = vmatpush1.bf16.msra.mxu0 %v3651_v26  ;;  %v1507_v12 = vsel %vm328_vm2, %v3988_v32, %v6831_v14  ;;  %v6959_v14 = vld [vmem:[#allocation25_spill] sm:$0xff] }
 0x2df   : > { %6952 = vst [vmem:[#allocation54_spill] sm:$0xff] %v5884_v58  ;;  %v4346_v31 = vpop.permute.xlu1 %4345  ;;  %3654 = vmatprep.subr.bf16.mxu0 %v3653_v50  ;;  %v4338_v50 = vunpack.i.h.bf16 %v4336_v46  ;;  %v6833_v7 = vunpack.i.l.bf16 %v6959_v14  ;;  %v6960_v26 = vld [vmem:[#allocation29_spill] sm:$0xff]  ;;  %v6978_v58 = vld [vmem:[#allocation32_spill] sm:$0xff] }
 0x2e0   : > { %v4348_v59 = vunpack.i.h.bf16 %v4346_v31  ;;  %v4347_v62 = vunpack.i.l.bf16 %v4346_v31  ;;  %v6954_v31 = vld [vmem:[#allocation38_spill] sm:$0xff]  ;;  %v6834_v46 = vunpack.i.l.bf16 %v6960_v26 }
 0x2e1   : > { %v6956_v61 = vpack.c.bf16 %v6954_v31, %v6955_v19  ;;  %v6963_v19 = vunpack.i.l.bf16 %v5178_v52  ;;  %v1503_v31 = vsel %vm328_vm2, %v3917_v53, %v3918_v37  ;;  %v6969_v53 = vld [vmem:[#allocation6_spill] sm:$0xff] }
 0x2e2   : > { %v5892_v25 = vpop.permute.xlu0 %4330  ;;  %v1324_v1 = vsel %vm297_vm3, %v4347_v62, %v4348_v59  ;;  %v1325_v36 = vsel %vm297_vm3, %v4348_v59, %v6957_v28 }
 0x2e3   : > { %3656 = vmatpush1.bf16.msra.mxu0 %v6956_v61  ;;  %v3659_v10 = vpack.c.bf16 %v1324_v1, %v1321_v57  ;;  %v5909_v44 = vpop.permute.xlu1 %4350  ;;  %v3657_v13 = vpack.c.bf16 %v1325_v36, %v1322_v2  ;;  %v6961_v62 = vunpack.i.l.bf16 %v5892_v25  ;;  %v1504_v54 = vsel %vm328_vm2, %v3918_v37, %v6963_v19  ;;  %v6965_v2 = vld [vmem:[#allocation18_spill] sm:$0xff] }
 0x2e4   : > { %6958 = vst [vmem:[#allocation38_spill] sm:$0xff] %v5909_v44  ;;  %v1506_v61 = vsel %vm328_vm2, %v3987_v40, %v3988_v32  ;;  %v3661_v57 = vpack.c.bf16 %v1507_v12, %v1504_v54  ;;  %v4038_v1 = vunpack.i.h.bf16 %v6965_v2  ;;  %v4037_v32 = vunpack.i.l.bf16 %v6965_v2 }
 0x2e5   : > { %v5916_v8 = vsel %vm422_vm6, %v4338_v50, %v6961_v62  ;;  %3658 = vmatprep.subr.bf16.mxu0 %v3657_v13  ;;  %v1513_v50 = vsel %vm328_vm2, %v4103_v4, %v6834_v46  ;;  %v3663_v21 = vpack.c.bf16 %v1506_v61, %v1503_v31  ;;  %v1512_v12 = vsel %vm328_vm2, %v4102_v63, %v4103_v4  ;;  %v6968_v62 = vld [vmem:[#allocation5_spill] sm:$0xff] }
 0x2e6   : > { %6962 = vst [vmem:[#allocation37_spill] sm:$0xff] %v5916_v8  ;;  %v5925_v59 = vpop.permute.xlu0 %4340  ;;  %v1510_v13 = vsel %vm328_vm2, %v4038_v1, %v6833_v7  ;;  %v3923_v19 = vunpack.i.h.bf16 %v6968_v62  ;;  %v3922_v54 = vunpack.i.l.bf16 %v6968_v62  ;;  %v3888_v37 = vunpack.i.h.bf16 %v5171_v39  ;;  %v6971_v63 = vld [vmem:[#allocation17_spill] sm:$0xff]  ;;  %v6977_v7 = vld [vmem:[#allocation7_spill] sm:$0xff] }
 0x2e7   : > { %6964 = vst [vmem:[#allocation25_spill] sm:$0xff] %v5925_v59  ;;  %3660 = vmatpush1.bf16.msra.mxu0 %v3659_v10  ;;  %v5933_v40 = vpop.permute.xlu1 %4360  ;;  %v3665_v10 = vpack.c.bf16 %v1513_v50, %v1510_v13  ;;  %v6839_v2 = vunpack.i.h.bf16 %v6969_v53  ;;  %v3937_v61 = vunpack.i.l.bf16 %v6969_v53  ;;  %v4257_v62 = vunpack.i.l.bf16 %v5678_v15 }
 0x2e8   : > { %6966 = vst [vmem:[#allocation29_spill] sm:$0xff] %v5933_v40  ;;  %3662 = vmatprep.subr.bf16.mxu0 %v3661_v57  ;;  %v1509_v57 = vsel %vm328_vm2, %v4037_v32, %v4038_v1  ;;  %v5953_v13 = vsel %vm364_vm4, %v3922_v54, %v3923_v19  ;;  %v6973_v1 = vunpack.i.l.bf16 %v5171_v39  ;;  %v6976_v54 = vpack.c.bf16 %v5660_v43, %v5521_v18  ;;  %v6982_v39 = vld [vmem:[#allocation39_spill] sm:$0xff] }
 0x2e9   : > { %v3667_v4 = vpack.c.bf16 %v1512_v12, %v1509_v57  ;;  %v6974_v12 = vld [vmem:[#allocation8_spill] sm:$0xff]  ;;  %v6975_v57 = vld [vmem:[#allocation11_spill] sm:$0xff]  ;;  %v4113_v8 = vunpack.i.h.bf16 %v6978_v58  ;;  %v6980_v18 = vunpack.i.l.bf16 %v6971_v63  ;;  %v3893_v40 = vunpack.i.h.bf16 %v5178_v52 }
 0x2ea   : > { %v5939_v28 = vpop.permute.xlu0 %4355  ;;  %v5961_v32 = vsel %vm297_vm3, %v6973_v1, %v3888_v37  ;;  %v3993_v46 = vunpack.i.h.bf16 %v6975_v57 }
 0x2eb   : > { %6967 = vst [vmem:[#allocation18_spill] sm:$0xff] %v5939_v28  ;;  %3664 = vmatpush1.bf16.msra.mxu0 %v3663_v21  ;;  %v5947_v31 = vpop.permute.xlu1 %4370  ;;  %v4258_v21 = vunpack.i.h.bf16 %v5678_v15  ;;  %v5971_v15 = vsel %vm422_vm6, %v3937_v61, %v6839_v2  ;;  %v6981_v2 = vld [vmem:[#allocation40_spill] sm:$0xff] }
 0x2ec   : > { %6970 = vst [vmem:[#allocation5_spill] sm:$0xff] %v5947_v31  ;;  %3666 = vmatprep.subr.bf16.mxu0 %v3665_v10  ;;  %v3972_v10 = vunpack.i.l.bf16 %v6977_v7  ;;  %v1707_v43 = vsel %vm364_vm4, %v3993_v46, %v6980_v18  ;;  %v6983_v53 = vpack.c.bf16 %v6981_v2, %v6982_v39  ;;  %v6986_v2 = vld [vmem:[#allocation19_spill] sm:$0xff]  ;;  %v6987_v39 = vld [vmem:[#allocation24_spill] sm:$0xff] }
 0x2ed   : > { %v6847_v44 = vunpack.i.l.bf16 %v6987_v39 }
 0x2ee   : > { %v5950_v50 = vpop.permute.xlu0 %4365 }
 0x2ef   : > { %6972 = vst [vmem:[#allocation17_spill] sm:$0xff] %v5950_v50  ;;  %3668 = vmatpush1.bf16.msra.mxu0 %v3667_v4  ;;  %v4381_v36 = vpop.permute.xlu1 %4380  ;;  %v3992_v4 = vunpack.i.l.bf16 %v6975_v57 }
 0x2f0   : > { %3670 = vmatprep.subr.bf16.mxu0 %v6976_v54  ;;  %v4383_v37 = vunpack.i.h.bf16 %v4381_v36  ;;  %v4382_v1 = vunpack.i.l.bf16 %v4381_v36  ;;  %v1521_v54 = vsel %vm328_vm2, %v4257_v62, %v4258_v21  ;;  %v6984_v36 = vunpack.i.l.bf16 %v5769_v34 }
 0x2f1   : > { %v1706_v59 = vsel %vm364_vm4, %v3992_v4, %v3993_v46  ;;  %v6990_v4 = vunpack.i.l.bf16 %v6978_v58 }
 0x2f2   : > { %v5978_v31 = vpop.permute.xlu0 %4375  ;;  %v1524_v57 = vsel %vm328_vm2, %v4382_v1, %v4383_v37  ;;  %v1522_v50 = vsel %vm328_vm2, %v4258_v21, %v6984_v36  ;;  %v6988_v21 = vunpack.i.l.bf16 %v6974_v12 }
 0x2f3   : > { %6979 = vst [vmem:[#allocation8_spill] sm:$0xff] %v5978_v31  ;;  %3672 = vmatpush1.bf16.msra.mxu0 %v6983_v53  ;;  %v1525_v31 = vsel %vm328_vm2, %v4383_v37, %v6985_v47  ;;  %v3675_v28 = vpack.c.bf16 %v1524_v57, %v1521_v54  ;;  %v5996_v62 = vpop.permute.xlu1 %4385  ;;  %v4043_v53 = vunpack.i.h.bf16 %v6986_v2  ;;  %v6005_v47 = vsel %vm422_vm6, %v3972_v10, %v3937_v61 }
 0x2f4   : > { %v3673_v1 = vpack.c.bf16 %v1525_v31, %v1522_v50  ;;  %v1704_v36 = vsel %vm364_vm4, %v3923_v19, %v6988_v21  ;;  %6989 = vst [vmem:[#allocation11_spill] sm:$0xff] %v6005_v47  ;;  %v4042_v37 = vunpack.i.l.bf16 %v6986_v2  ;;  %v4078_v54 = vunpack.i.h.bf16 %v6987_v39 }
 0x2f5   : > { %v3677_v31 = vpack.c.bf16 %v1707_v43, %v1704_v36  ;;  %v1710_v18 = vsel %vm364_vm4, %v4043_v53, %v6990_v4  ;;  %v1713_v19 = vsel %vm364_vm4, %v4113_v8, %v6847_v44  ;;  %v3953_v61 = vunpack.i.h.bf16 %v5259_v23 }
 0x2f6   : > { %v4391_v57 = vpop.permute.xlu0 %4390  ;;  %3674 = vmatprep.subr.bf16.mxu0 %v3673_v1  ;;  %v1712_v10 = vsel %vm364_vm4, %v4078_v54, %v4113_v8  ;;  %v3679_v43 = vpack.c.bf16 %v1706_v59, %v5953_v13  ;;  %v4292_v1 = vunpack.i.l.bf16 %v5757_v41  ;;  %v6991_v36 = vunpack.i.h.bf16 %v5453_v38  ;;  %v6995_v54 = vld [vmem:[#allocation14_spill] sm:$0xff] }
 0x2f7   : > { %v4393_v50 = vunpack.i.h.bf16 %v4391_v57  ;;  %v4392_v46 = vunpack.i.l.bf16 %v4391_v57  ;;  %3676 = vmatpush1.bf16.msra.mxu0 %v3675_v28  ;;  %v6018_v21 = vpop.permute.xlu1 %4395  ;;  %v4262_v28 = vunpack.i.l.bf16 %v5690_v49  ;;  %v6993_v4 = vunpack.i.h.bf16 %v5719_v27 }
 0x2f8   : > { %3678 = vmatprep.subr.bf16.mxu0 %v3677_v31  ;;  %v4002_v31 = vunpack.i.l.bf16 %v6995_v54  ;;  %v3681_v2 = vpack.c.bf16 %v1713_v19, %v1710_v18  ;;  %v1709_v38 = vsel %vm364_vm4, %v4042_v37, %v4043_v53  ;;  %v6997_v44 = vunpack.i.l.bf16 %v5259_v23 }
 0x2f9   : > { %v6026_v57 = vsel %vm391_vm5, %v6991_v36, %v4392_v46  ;;  %v6031_v8 = vsel %vm391_vm5, %v6993_v4, %v4393_v50  ;;  %v4293_v46 = vunpack.i.h.bf16 %v5757_v41  ;;  %v3948_v50 = vunpack.i.h.bf16 %v5250_v22 }
 0x2fa   : > { %6992 = vst [vmem:[#allocation7_spill] sm:$0xff] %v6026_v57  ;;  %6994 = vst [vmem:[#allocation32_spill] sm:$0xff] %v6031_v8  ;;  %v6037_v13 = vpop.permute.xlu0 %4405  ;;  %v4068_v4 = vunpack.i.h.bf16 %v6960_v26  ;;  %v1508_v59 = vsel %vm328_vm2, %v6997_v44, %v3953_v61  ;;  %v3683_v18 = vpack.c.bf16 %v1712_v10, %v1709_v38  ;;  %v2721_v53 = vsel %vm516_vm8, %v4292_v1, %v4262_v28  ;;  %v7000_v8 = vld [vmem:[#allocation20_spill] sm:$0xff] }
 0x2fb   : > { %6996 = vst [vmem:[#allocation40_spill] sm:$0xff] %v6037_v13  ;;  %v6851_v36 = vunpack.i.h.bf16 %v6037_v13  ;;  %v4407_v27 = vunpack.i.l.bf16 %v6037_v13  ;;  %3680 = vmatpush1.bf16.msra.mxu0 %v3679_v43  ;;  %v6048_v57 = vpop.permute.xlu1 %4400  ;;  %v6999_v37 = vunpack.i.h.bf16 %v5690_v49  ;;  %v3958_v23 = vunpack.i.h.bf16 %v6971_v63 }
 0x2fc   : > { %6998 = vst [vmem:[#allocation39_spill] sm:$0xff] %v6048_v57  ;;  %3682 = vmatprep.subr.bf16.mxu0 %v3681_v2  ;;  %v3968_v44 = vunpack.i.h.bf16 %v7000_v8  ;;  %v7001_v2 = vld [vmem:[#allocation12_spill] sm:$0xff]  ;;  %v3967_v38 = vunpack.i.l.bf16 %v7000_v8  ;;  %v7004_v8 = vpack.c.bf16 %v5628_v20, %v5623_v56  ;;  %v7030_v47 = vunpack.i.l.bf16 %v5373_v9 }
 0x2fd   : > { %v2724_v41 = vsel %vm516_vm8, %v4293_v46, %v4407_v27  ;;  %v2722_v19 = vsel %vm516_vm8, %v4262_v28, %v6999_v37  ;;  %v2725_v43 = vsel %vm516_vm8, %v4407_v27, %v6851_v36  ;;  %v4023_v46 = vunpack.i.h.bf16 %v6959_v14  ;;  %v7003_v36 = vld [vmem:[#allocation22_spill] sm:$0xff] }
 0x2fe   : > { %v3771_v61 = vpack.c.bf16 %v2724_v41, %v2721_v53  ;;  %v6060_v57 = vpop.permute.xlu0 %4410  ;;  %v3769_v10 = vpack.c.bf16 %v2725_v43, %v2722_v19  ;;  %v7002_v28 = vunpack.i.l.bf16 %v5178_v52  ;;  %v3932_v27 = vunpack.i.l.bf16 %v7001_v2  ;;  %v7005_v52 = vld [vmem:[#allocation9_spill] sm:$0xff] }
 0x2ff   : > { %3684 = vmatpush1.bf16.msra.mxu0 %v3683_v18  ;;  %v6853_v13 = vunpack.i.h.bf16 %v7003_v36  ;;  %v4007_v53 = vunpack.i.l.bf16 %v7003_v36  ;;  %v6071_v19 = vpop.permute.xlu1 %4415  ;;  %v3898_v43 = vunpack.i.h.bf16 %v6974_v12  ;;  %v3903_v1 = vunpack.i.h.bf16 %v7005_v52  ;;  %v6082_v18 = vld [vmem:[%s6763_s3 + $0x20] sm:$0xff] }
 0x300   : > { %v1505_v37 = vsel %vm328_vm2, %v7002_v28, %v3893_v40  ;;  %3770 = vmatprep.subr.bf16.mxu1 %v3769_v10  ;;  %3686 = vmatprep.subr.bf16.mxu0 %v7004_v8  ;;  %v6854_v40 = vunpack.i.l.bf16 %v7005_v52  ;;  %7006 = vst [vmem:[#allocation19_spill] sm:$0xff] %v6082_v18  ;;  %v7008_v28 = vunpack.i.l.bf16 %v5250_v22  ;;  %v6093_v20 = vsel %vm391_vm5, %v3968_v44, %v4002_v31 }
 0x301   : > { %v3773_v41 = vpack.c.bf16 %v1508_v59, %v1505_v37  ;;  %3772 = vmatpush1.bf16.msra.mxu1 %v3771_v61  ;;  %v7007_v59 = vunpack.i.l.bf16 %v6960_v26  ;;  %v7010_v61 = vunpack.i.h.bf16 %v6995_v54  ;;  %v7011_v26 = vunpack.i.l.bf16 %v6971_v63 }
 0x302   : > { %v6090_v56 = vsel %vm297_vm3, %v7008_v28, %v3948_v50  ;;  %v6095_v37 = vpop.permute.xlu0 %4420  ;;  %v6108_v22 = vsel %vm391_vm5, %v3967_v38, %v3932_v27  ;;  %v7012_v50 = vld [vmem:[#allocation23_spill] sm:$0xff]  ;;  %v7013_v28 = vunpack.i.l.bf16 %v6959_v14  ;;  %v7015_v63 = vunpack.i.h.bf16 %v6977_v7  ;;  %v7018_v7 = vld [vmem:[#allocation16_spill] sm:$0xff] }
 0x303   : > { %v1514_v10 = vsel %vm328_vm2, %v7007_v59, %v4068_v4  ;;  %7009 = vst [vmem:[#allocation24_spill] sm:$0xff] %v6095_v37  ;;  %3774 = vmatprep.subr.bf16.mxu1 %v3773_v41  ;;  %v6100_v8 = vsel %vm391_vm5, %v4002_v31, %v7010_v61  ;;  %v6105_v4 = vsel %vm364_vm4, %v7011_v26, %v3958_v23  ;;  %v6855_v59 = vunpack.i.h.bf16 %v7012_v50  ;;  %v6125_v61 = vpop.permute.xlu1 %4425 }
 0x304   : > { %v6856_v44 = vunpack.i.l.bf16 %v7012_v50  ;;  %v1511_v41 = vsel %vm328_vm2, %v7013_v28, %v4023_v46  ;;  %v7014_v31 = vpack.c.bf16 %v5693_v51, %v5698_v42  ;;  %v6121_v23 = vsel %vm422_vm6, %v7015_v63, %v4007_v53  ;;  %3510 = vmatmul.mubr.msk.f32.vlgmr.msra.gmra.mrb[16].mxu1 %vm945_vm7, %v6082_v18  ;;  %v7019_v46 = vld [vmem:[#allocation15_spill] sm:$0xff] }
 0x305   : > { %7016 = vst [vmem:[#allocation14_spill] sm:$0xff] %v6121_v23  ;;  %v3777_v38 = vpack.c.bf16 %v1514_v10, %v1511_v41  ;;  %v7017_v26 = vunpack.i.h.bf16 %v7001_v2  ;;  %v6135_v51 = vsel %vm422_vm6, %v4007_v53, %v6853_v13  ;;  %v4288_v42 = vunpack.i.h.bf16 %v5849_v16  ;;  %v7022_v53 = vld [vmem:[#allocation34_spill] sm:$0xff]  ;;  %v7027_v18 = vld [vmem:[#allocation27_spill] sm:$0xff] }
 0x306   : > { %3688 = vmatpush1.bf16.msra.mxu0 %v7014_v31  ;;  %v7020_v28 = vpack.c.bf16 %v7018_v7, %v7019_v46  ;;  %v7021_v41 = vunpack.i.l.bf16 %v6974_v12  ;;  %3282 = vmatprep.mubr.f32.mxu1 %v7022_v53  ;;  %v4063_v63 = vunpack.i.h.bf16 %v5373_v9  ;;  %v4243_v46 = vunpack.i.h.bf16 %v5769_v34  ;;  %v7023_v53 = vld [vmem:[#allocation26_spill] sm:$0xff] }
 0x307   : > { %v6130_v14 = vsel %vm391_vm5, %v3932_v27, %v7017_v26  ;;  %v6151_v27 = vsel %vm458_vm15, %v6854_v40, %v3903_v1  ;;  %v6155_v26 = vpop.permute.xlu0 %4430  ;;  %v6169_v1 = vsel %vm391_vm5, %v6856_v44, %v6855_v59  ;;  %v4083_v13 = vunpack.i.h.bf16 %v7023_v53  ;;  %v7024_v40 = vld [vmem:[#allocation33_spill] sm:$0xff]  ;;  %v6179_v7 = vpop.permute.xlu1 %4435 }
 0x308   : > { %3776 = vmatpush3.bf16.msra.mxu1 %v7020_v28  ;;  %v6146_v31 = vsel %vm364_vm4, %v7021_v41, %v3898_v43  ;;  %v4018_v41 = vunpack.i.h.bf16 %v5332_v30  ;;  %v4117_v43 = vunpack.i.l.bf16 %v7024_v40  ;;  %v4278_v12 = vunpack.i.h.bf16 %v5788_v33  ;;  %7025 = vst [vmem:[#allocation20_spill] sm:$0xff] %v6179_v7  ;;  %v7031_v7 = vld [vmem:[#allocation30_spill] sm:$0xff] }
 0x309   : > { %3778 = vmatprep.subr.bf16.mxu1 %v3777_v38  ;;  %v4082_v10 = vunpack.i.l.bf16 %v7023_v53  ;;  %v4233_v59 = vunpack.i.h.bf16 %v5749_v3  ;;  %v7026_v38 = vld [vmem:[#allocation28_spill] sm:$0xff]  ;;  %v7029_v28 = vunpack.i.l.bf16 %v5849_v16  ;;  %v6193_v23 = vsel %vm297_vm3, %v7030_v47, %v4063_v63 }
 0x30a   : > { %v7028_v49 = vpack.c.bf16 %v7026_v38, %v7027_v18  ;;  %v4088_v52 = vunpack.i.h.bf16 %v7031_v7  ;;  %v4087_v53 = vunpack.i.l.bf16 %v7031_v7  ;;  %v4118_v37 = vunpack.i.h.bf16 %v7024_v40 }
 0x30b   : > { %v1526_v36 = vsel %vm328_vm2, %v7029_v28, %v4288_v42  ;;  %v6198_v44 = vpop.permute.xlu0 %4440  ;;  %v4298_v16 = vunpack.i.h.bf16 %v5765_v24  ;;  %v7033_v47 = vunpack.i.l.bf16 %v5769_v34  ;;  %v6210_v63 = vsel %vm391_vm5, %v4083_v13, %v4117_v43 }
 0x30c   : > { %3780 = vmatpush3.bf16.msra.mxu1 %v7028_v49  ;;  %v7032_v49 = vpack.c.bf16 %v5668_v5, %v5665_v6  ;;  %v4443_v18 = vunpack.i.h.bf16 %v6198_v44  ;;  %v4442_v9 = vunpack.i.l.bf16 %v6198_v44  ;;  %v7034_v7 = vunpack.i.l.bf16 %v5788_v33  ;;  %v6215_v5 = vpop.permute.xlu1 %4450 }
 0x30d   : > { %v1523_v42 = vsel %vm328_vm2, %v7033_v47, %v4243_v46  ;;  %v7035_v6 = vunpack.i.l.bf16 %v6978_v58  ;;  %v7037_v13 = vpack.c.bf16 %v5606_v0, %v5479_v11  ;;  %v7038_v33 = vunpack.i.h.bf16 %v5706_v55 }
 0x30e   : > { %3782 = vmatprep.subr.bf16.mxu1 %v7032_v49  ;;  %v1126_v38 = vsel %vm266_vm1, %v7034_v7, %v4278_v12  ;;  %v3785_v28 = vpack.c.bf16 %v1526_v36, %v1523_v42  ;;  %v7036_v49 = vunpack.i.l.bf16 %v5749_v3  ;;  %v1724_v46 = vsel %vm364_vm4, %v4298_v16, %v4442_v9 }
 0x30f   : > { %v1711_v24 = vsel %vm364_vm4, %v7035_v6, %v4087_v53  ;;  %v7039_v36 = vunpack.i.l.bf16 %v5706_v55  ;;  %v1725_v58 = vsel %vm364_vm4, %v4442_v9, %v4443_v18  ;;  %v4318_v3 = vunpack.i.h.bf16 %v5828_v60  ;;  %v6238_v16 = vpop.permute.xlu0 %4445 }
 0x310   : > { %v1123_v34 = vsel %vm266_vm1, %v7036_v49, %v4233_v59  ;;  %3784 = vmatpush3.bf16.msra.mxu1 %v7037_v13  ;;  %v6871_v59 = vunpack.i.l.bf16 %v5828_v60  ;;  %v3691_v53 = vpack.c.bf16 %v1724_v46, %v5776_v48  ;;  %v4323_v47 = vunpack.i.h.bf16 %v5878_v45 }
 0x311   : > { %v1722_v12 = vsel %vm364_vm4, %v7039_v36, %v7038_v33  ;;  %3786 = vmatprep.subr.bf16.mxu1 %v3785_v28  ;;  %v3787_v0 = vpack.c.bf16 %v1126_v38, %v1123_v34  ;;  %v4322_v42 = vunpack.i.l.bf16 %v5878_v45  ;;  %v1913_v7 = vsel %vm391_vm5, %v4117_v43, %v4118_v37  ;;  %v6255_v45 = vpop.permute.xlu1 %4460 }
 0x312   : > { %v3689_v11 = vpack.c.bf16 %v1725_v58, %v1722_v12  ;;  %v7040_v9 = vunpack.i.l.bf16 %v5332_v30  ;;  %v7041_v49 = vunpack.i.l.bf16 %v7012_v50  ;;  %v6865_v28 = vunpack.i.h.bf16 %v5892_v25  ;;  %v6262_v30 = vld [vmem:[%s6763_s3] sm:$0xff] }
 0x313   : > { %v7042_v38 = vunpack.i.l.bf16 %v6987_v39  ;;  %v6869_v43 = vunpack.i.h.bf16 %v5730_v17  ;;  %v4307_v39 = vunpack.i.l.bf16 %v5865_v29  ;;  %v6267_v13 = vpop.permute.xlu0 %4455  ;;  %v7044_v33 = vpack.c.bf16 %v6105_v4, %v6146_v31 }
 0x314   : > { %v1311_v6 = vsel %vm297_vm3, %v7040_v9, %v4018_v41  ;;  %v1909_v48 = vsel %vm391_vm5, %v4082_v10, %v7041_v49  ;;  %3690 = vmatprep.subr.bf16.mxu0 %v3689_v11  ;;  %3788 = vmatpush3.bf16.msra.mxu1 %v3787_v0  ;;  %v3697_v36 = vpack.c.bf16 %v1913_v7, %v6169_v1  ;;  %v7046_v58 = vunpack.i.h.bf16 %v7001_v2  ;;  %v7048_v1 = vld [vmem:[#allocation25_spill] sm:$0xff] }
 0x315   : > { %v1714_v34 = vsel %vm364_vm4, %v7042_v38, %v4088_v52  ;;  %v3699_v46 = vpack.c.bf16 %v6210_v63, %v1909_v48  ;;  %3692 = vmatpush1.bf16.msra.mxu0 %v3691_v53  ;;  %v3795_v41 = vpack.c.bf16 %v6193_v23, %v1311_v6  ;;  %v6866_v52 = vunpack.i.h.bf16 %v5859_v35  ;;  %3790 = vmatprep.subr.bf16.mxu1 %v7044_v33 }
 0x316   : > { %v3793_v10 = vpack.c.bf16 %v1714_v34, %v1711_v24  ;;  %v7043_v63 = vpack.c.bf16 %v6100_v8, %v6130_v14  ;;  %v6279_v23 = vsel %vm458_vm15, %v6871_v59, %v4318_v3  ;;  %v7045_v24 = vunpack.i.h.bf16 %v6995_v54  ;;  %v7047_v14 = vld [vmem:[#allocation38_spill] sm:$0xff]  ;;  %v6297_v54 = vpop.permute.xlu1 %4470 }
 0x317   : > { %v6289_v8 = vsel %vm391_vm5, %v7046_v58, %v4322_v42  ;;  %v4353_v4 = vunpack.i.h.bf16 %v7047_v14  ;;  %v6867_v31 = vunpack.i.l.bf16 %v7047_v14  ;;  %v4343_v53 = vunpack.i.h.bf16 %v7048_v1  ;;  %v7049_v3 = vld [vmem:[#allocation18_spill] sm:$0xff]  ;;  %v7057_v58 = vld [vmem:[#allocation29_spill] sm:$0xff] }
 0x318   : > { %3694 = vmatprep.subr.bf16.mxu0 %v7043_v63  ;;  %v6284_v12 = vsel %vm391_vm5, %v7045_v24, %v4323_v47  ;;  %v6868_v11 = vunpack.i.l.bf16 %v7048_v1  ;;  %v4357_v0 = vunpack.i.l.bf16 %v7049_v3  ;;  %3070 = vmatmul.mubr.f32.vlgmr.msra.gmra.mrb[16].mxu0 %v6262_v30  ;;  %v7050_v2 = vunpack.i.l.bf16 %v5892_v25  ;;  %v7051_v42 = vld [vmem:[#allocation50_spill] sm:$0xff] }
 0x319   : > { %v4303_v7 = vunpack.i.h.bf16 %v7051_v42  ;;  %v4358_v9 = vunpack.i.h.bf16 %v7049_v3  ;;  %v7052_v6 = vpack.c.bf16 %v6093_v20, %v6108_v22  ;;  %v7053_v49 = vpack.c.bf16 %v6090_v56, %v5961_v32  ;;  %v6324_v20 = vpop.permute.xlu0 %4465  ;;  %v7059_v42 = vld [vmem:[#allocation17_spill] sm:$0xff]  ;;  %v7072_v59 = vld [vmem:[#allocation42_spill] sm:$0xff] }
 0x31a   : > { %v6304_v47 = vsel %vm422_vm6, %v7050_v2, %v6865_v28  ;;  %v7054_v48 = vunpack.i.l.bf16 %v5730_v17  ;;  %v4308_v63 = vunpack.i.h.bf16 %v5865_v29  ;;  %v7055_v32 = vunpack.i.h.bf16 %v5706_v55  ;;  %v6339_v29 = vld [vmem:[%s6763_s3 + $0x18] sm:$0xff] }
 0x31b   : > { %3696 = vmatpush1.bf16.msra.mxu0 %v7052_v6  ;;  %3792 = vmatpush3.bf16.msra.mxu1 %v7053_v49  ;;  %v7056_v22 = vunpack.i.l.bf16 %v5859_v35  ;;  %v6870_v3 = vunpack.i.h.bf16 %v7057_v58  ;;  %v4367_v6 = vunpack.i.l.bf16 %v7059_v42  ;;  %v7060_v49 = vld [vmem:[#allocation5_spill] sm:$0xff]  ;;  %v7061_v28 = vld [vmem:[#allocation8_spill] sm:$0xff]  ;;  %v6873_v40 = vunpack.i.l.bf16 %v5996_v62 }
 0x31c   : > { %v1922_v38 = vsel %vm391_vm5, %v7054_v48, %v6869_v43  ;;  %3698 = vmatprep.subr.bf16.mxu0 %v3697_v36  ;;  %3794 = vmatprep.subr.bf16.mxu1 %v3793_v10  ;;  %v1723_v56 = vsel %vm364_vm4, %v7055_v32, %v4307_v39  ;;  %v4362_v10 = vunpack.i.l.bf16 %v7057_v58  ;;  %v6348_v39 = vsel %vm458_vm15, %v6867_v31, %v4353_v4  ;;  %v6358_v32 = vpop.permute.xlu1 %4485 }
 0x31d   : > { %v6334_v24 = vsel %vm422_vm6, %v7056_v22, %v6866_v52  ;;  %3140 = vmatprep.mubr.f32.mxu0 %v6339_v29  ;;  %v7058_v36 = vunpack.i.h.bf16 %v7012_v50  ;;  %v4372_v48 = vunpack.i.l.bf16 %v7060_v49  ;;  %v6363_v22 = vsel %vm458_vm15, %v6868_v11, %v4343_v53  ;;  %v7063_v11 = vld [vmem:[#allocation48_spill] sm:$0xff] }
 0x31e   : > { %v6368_v4 = vsel %vm391_vm5, %v4118_v37, %v4358_v9  ;;  %v6872_v50 = vunpack.i.h.bf16 %v7059_v42  ;;  %v4378_v52 = vunpack.i.h.bf16 %v7061_v28  ;;  %v6874_v53 = vunpack.i.l.bf16 %v7061_v28  ;;  %v6379_v37 = vpop.permute.xlu0 %4475  ;;  %v7062_v9 = vld [vmem:[#allocation49_spill] sm:$0xff] }
 0x31f   : > { %v6354_v2 = vsel %vm391_vm5, %v7058_v36, %v4357_v0  ;;  %v4373_v0 = vunpack.i.h.bf16 %v7060_v49  ;;  %3700 = vmatpush1.bf16.msra.mxu0 %v3699_v46  ;;  %3796 = vmatpush3.bf16.msra.mxu1 %v3795_v41  ;;  %v1726_v36 = vsel %vm364_vm4, %v4443_v18, %v4308_v63  ;;  %v4388_v31 = vunpack.i.h.bf16 %v5996_v62  ;;  %v7065_v46 = vld [vmem:[#allocation46_spill] sm:$0xff]  ;;  %v7066_v41 = vld [vmem:[#allocation45_spill] sm:$0xff] }
 0x320   : > { %v7064_v43 = vpack.c.bf16 %v7062_v9, %v7063_v11  ;;  %v7067_v49 = vpack.c.bf16 %v7065_v46, %v7066_v41  ;;  %v6877_v44 = vunpack.i.h.bf16 %v6379_v37  ;;  %v4477_v18 = vunpack.i.l.bf16 %v6379_v37  ;;  %v6404_v41 = vpop.permute.xlu1 %4495 }
 0x321   : > { %v3809_v63 = vpack.c.bf16 %v6348_v39, %v6363_v22  ;;  %v6394_v55 = vsel %vm422_vm6, %v4362_v10, %v6870_v3  ;;  %v6402_v9 = vsel %vm422_vm6, %v4373_v0, %v4367_v6  ;;  %v3801_v46 = vpack.c.bf16 %v1726_v36, %v1723_v56  ;;  %v7068_v39 = vld [vmem:[#allocation47_spill] sm:$0xff] }
 0x322   : > { %3702 = vmatprep.subr.bf16.mxu0 %v7064_v43  ;;  %3798 = vmatprep.subr.bf16.mxu1 %v7067_v49  ;;  %v6399_v43 = vsel %vm422_vm6, %v4372_v48, %v4362_v10  ;;  %v1924_v49 = vsel %vm391_vm5, %v4303_v7, %v4477_v18  ;;  %v7069_v22 = vld [vmem:[#allocation35_spill] sm:$0xff]  ;;  %v1925_v10 = vsel %vm391_vm5, %v4477_v18, %v6877_v44  ;;  %v6422_v7 = vpop.permute.xlu0 %4480  ;;  %v6875_v18 = vunpack.i.l.bf16 %v6071_v19 }
 0x323   : > { %v7070_v33 = vpack.c.bf16 %v7068_v39, %v7069_v22  ;;  %v7071_v3 = vld [vmem:[#allocation43_spill] sm:$0xff]  ;;  %v6419_v56 = vsel %vm422_vm6, %v4367_v6, %v6872_v50  ;;  %v3705_v36 = vpack.c.bf16 %v1925_v10, %v1922_v38  ;;  %v4418_v6 = vunpack.i.h.bf16 %v6071_v19  ;;  %v7075_v22 = vld [vmem:[#allocation53_spill] sm:$0xff]  ;;  %v7076_v10 = vld [vmem:[#allocation52_spill] sm:$0xff] }
 0x324   : > { %v7073_v34 = vpack.c.bf16 %v7071_v3, %v7072_v59  ;;  %v7074_v48 = vld [vmem:[#allocation51_spill] sm:$0xff]  ;;  %v6427_v59 = vsel %vm458_vm15, %v6874_v53, %v4378_v52  ;;  %v6876_v3 = vunpack.i.l.bf16 %v6060_v57  ;;  %v4433_v38 = vunpack.i.h.bf16 %v6155_v26  ;;  %v6442_v39 = vpop.permute.xlu1 %4505 }
 0x325   : > { %3704 = vmatpush1.bf16.msra.mxu0 %v7070_v33  ;;  %v3707_v0 = vpack.c.bf16 %v1924_v49, %v7074_v48  ;;  %v4413_v33 = vunpack.i.h.bf16 %v6060_v57  ;;  %v4428_v52 = vunpack.i.h.bf16 %v6125_v61  ;;  %v4427_v49 = vunpack.i.l.bf16 %v6125_v61  ;;  %v7087_v44 = vld [vmem:[#allocation11_spill] sm:$0xff] }
 0x326   : > { %3800 = vmatpush3.bf16.msra.mxu1 %v7073_v34  ;;  %v6432_v34 = vsel %vm458_vm15, %v6873_v40, %v4388_v31  ;;  %3706 = vmatprep.subr.bf16.mxu0 %v3705_v36  ;;  %v7077_v48 = vpack.c.bf16 %v7075_v22, %v7076_v10  ;;  %v3717_v50 = vpack.c.bf16 %v6419_v56, %v6394_v55  ;;  %v4397_v61 = vunpack.i.l.bf16 %v6018_v21  ;;  %v6457_v31 = vpop.permute.xlu0 %4490  ;;  %v7080_v56 = vld [vmem:[#allocation24_spill] sm:$0xff] }
 0x327   : > { %3802 = vmatprep.subr.bf16.mxu1 %v3801_v46  ;;  %v4432_v46 = vunpack.i.l.bf16 %v6155_v26  ;;  %v3813_v26 = vpack.c.bf16 %v6432_v34, %v6427_v59  ;;  %v4453_v36 = vunpack.i.h.bf16 %v6215_v5  ;;  %v4452_v53 = vunpack.i.l.bf16 %v6215_v5  ;;  %v7081_v34 = vld [vmem:[#allocation39_spill] sm:$0xff] }
 0x328   : > { %v7079_v55 = vpack.c.bf16 %v6279_v23, %v6151_v27  ;;  %v4422_v59 = vunpack.i.l.bf16 %v7080_v56  ;;  %v4402_v22 = vunpack.i.l.bf16 %v7081_v34  ;;  %v6470_v10 = vsel %vm458_vm15, %v6876_v3, %v4413_v33  ;;  %v6482_v27 = vpop.permute.xlu1 %4510  ;;  %v7082_v23 = vld [vmem:[#allocation9_spill] sm:$0xff]  ;;  %v7086_v3 = vld [vmem:[#allocation14_spill] sm:$0xff] }
 0x329   : > { %3708 = vmatpush1.bf16.msra.mxu0 %v3707_v0  ;;  %v7078_v0 = vpack.c.bf16 %v6135_v51, %v5971_v15  ;;  %v2326_v5 = vsel %vm458_vm15, %v6875_v18, %v4418_v6  ;;  %v6476_v15 = vsel %vm458_vm15, %v4432_v46, %v4427_v49  ;;  %v6479_v51 = vsel %vm458_vm15, %v4433_v38, %v4428_v52  ;;  %v7085_v38 = vld [vmem:[#allocation20_spill] sm:$0xff]  ;;  %v7092_v46 = vld [vmem:[#allocation22_spill] sm:$0xff] }
 0x32a   : > { %3804 = vmatpush3.bf16.msra.mxu1 %v7077_v48  ;;  %v7083_v48 = vunpack.i.l.bf16 %v7082_v23  ;;  %v7084_v33 = vunpack.i.l.bf16 %v5828_v60  ;;  %v4448_v6 = vunpack.i.h.bf16 %v6238_v16  ;;  %v4438_v18 = vunpack.i.h.bf16 %v7085_v38  ;;  %v7090_v23 = vld [vmem:[#allocation6_spill] sm:$0xff] }
 0x32b   : > { %3710 = vmatprep.subr.bf16.mxu0 %v7078_v0  ;;  %3806 = vmatprep.subr.bf16.mxu1 %v7079_v55  ;;  %v7088_v11 = vpack.c.bf16 %v7086_v3, %v7087_v44  ;;  %v4458_v60 = vunpack.i.h.bf16 %v6267_v13  ;;  %v7093_v40 = vunpack.i.h.bf16 %v7092_v46  ;;  %v6516_v44 = vpop.permute.xlu0 %4500  ;;  %v4473_v46 = vunpack.i.h.bf16 %v6297_v54 }
 0x32c   : > { %v6487_v0 = vsel %vm458_vm15, %v4427_v49, %v7083_v48  ;;  %v6492_v55 = vsel %vm458_vm15, %v4428_v52, %v7084_v33  ;;  %v7089_v49 = vpack.c.bf16 %v6284_v12, %v6289_v8  ;;  %v4457_v52 = vunpack.i.l.bf16 %v6267_v13 }
 0x32d   : > { %3283 = vmatmul.mubr.f32.vlgmr.msra.gmra.mrb[18].mxu1 %v6262_v30  ;;  %3712 = vmatpush1.bf16.msra.mxu0 %v7088_v11  ;;  %v7091_v48 = vunpack.i.h.bf16 %v7090_v23  ;;  %v6514_v30 = vsel %vm422_vm6, %v7093_v40, %v4453_v36  ;;  %v7094_v12 = vpack.c.bf16 %v6304_v47, %v6334_v24  ;;  %v4403_v8 = vunpack.i.h.bf16 %v7081_v34 }
 0x32e   : > { %3808 = vmatpush3.bf16.msra.mxu1 %v7089_v49  ;;  %v2121_v13 = vsel %vm422_vm6, %v4402_v22, %v4397_v61  ;;  %v3817_v11 = vpack.c.bf16 %v2326_v5, %v6470_v10  ;;  %3352 = vmatprep.mubr.f32.mxu1 %v6339_v29  ;;  %v7096_v40 = vunpack.i.h.bf16 %v5730_v17  ;;  %v4463_v47 = vunpack.i.h.bf16 %v6255_v45  ;;  %v7097_v17 = vld [vmem:[#allocation37_spill] sm:$0xff]  ;;  %v7098_v10 = vld [vmem:[#allocation54_spill] sm:$0xff] }
 0x32f   : > { %v6509_v33 = vsel %vm422_vm6, %v7091_v48, %v4452_v53  ;;  %3714 = vmatprep.subr.bf16.mxu0 %v7094_v12  ;;  %3810 = vmatprep.subr.bf16.mxu1 %v3809_v63  ;;  %v7095_v53 = vunpack.i.h.bf16 %v6018_v21  ;;  %v4462_v24 = vunpack.i.l.bf16 %v6255_v45  ;;  %v6533_v63 = vpop.permute.xlu1 %4525  ;;  %v3725_v34 = vpack.c.bf16 %v6492_v55, %v6487_v0  ;;  %v6558_v49 = vpop.permute.xlu0 %4515 }
 0x330   : > { %v1923_v36 = vsel %vm391_vm5, %v7096_v40, %v4422_v59  ;;  %v4423_v22 = vunpack.i.h.bf16 %v7080_v56  ;;  %v3823_v29 = vpack.c.bf16 %v6514_v30, %v6509_v33  ;;  %v7099_v59 = vpack.c.bf16 %v7097_v17, %v7098_v10 }
 0x331   : > { %v2122_v3 = vsel %vm422_vm6, %v4397_v61, %v7095_v53  ;;  %v3727_v61 = vpack.c.bf16 %v6479_v51, %v6476_v15  ;;  %v7100_v45 = vpack.c.bf16 %v6368_v4, %v6354_v2  ;;  %v7101_v5 = vunpack.i.l.bf16 %v7085_v38 }
 0x332   : > { %3716 = vmatpush1.bf16.msra.mxu0 %v7099_v59  ;;  %v6552_v56 = vsel %vm458_vm15, %v4462_v24, %v4457_v52  ;;  %v6555_v55 = vsel %vm458_vm15, %v4463_v47, %v4458_v60  ;;  %v7102_v23 = vunpack.i.l.bf16 %v6238_v16  ;;  %v4472_v4 = vunpack.i.l.bf16 %v6297_v54 }
 0x333   : > { %3812 = vmatpush3.bf16.msra.mxu1 %v7100_v45  ;;  %v2505_v0 = vsel %vm489_vm0, %v7101_v5, %v4438_v18  ;;  %3718 = vmatprep.subr.bf16.mxu0 %v3717_v50  ;;  %v4518_v18 = vunpack.i.h.bf16 %v6558_v49  ;;  %v4517_v48 = vunpack.i.l.bf16 %v6558_v49  ;;  %v7103_v12 = vunpack.i.l.bf16 %v7048_v1  ;;  %v6574_v24 = vpop.permute.xlu1 %4535  ;;  %v7107_v45 = vld [vmem:[#allocation32_spill] sm:$0xff] }
 0x334   : > { %3814 = vmatprep.subr.bf16.mxu1 %v3813_v26  ;;  %v2508_v2 = vsel %vm489_vm0, %v7102_v23, %v4448_v6  ;;  %v4468_v40 = vunpack.i.h.bf16 %v6324_v20  ;;  %v4467_v47 = vunpack.i.l.bf16 %v6324_v20  ;;  %v7104_v50 = vunpack.i.h.bf16 %v6379_v37  ;;  %v7108_v37 = vld [vmem:[#allocation7_spill] sm:$0xff] }
 0x335   : > { %v2310_v53 = vsel %vm458_vm15, %v4457_v52, %v7103_v12  ;;  %v7105_v6 = vunpack.i.l.bf16 %v7047_v14  ;;  %v4488_v10 = vunpack.i.h.bf16 %v6358_v32  ;;  %v4487_v1 = vunpack.i.l.bf16 %v6358_v32  ;;  %v6593_v32 = vpop.permute.xlu0 %4520 }
 0x336   : > { %v1926_v26 = vsel %vm391_vm5, %v7104_v50, %v4423_v22  ;;  %v2124_v52 = vsel %vm422_vm6, %v4403_v8, %v4517_v48  ;;  %v7106_v59 = vpack.c.bf16 %v6402_v9, %v6399_v43  ;;  %v7109_v5 = vpack.c.bf16 %v7107_v45, %v7108_v37 }
 0x337   : > { %v2313_v17 = vsel %vm458_vm15, %v4458_v60, %v7105_v6  ;;  %v2125_v14 = vsel %vm422_vm6, %v4517_v48, %v4518_v18  ;;  %v4483_v60 = vunpack.i.h.bf16 %v6422_v7  ;;  %v4482_v22 = vunpack.i.l.bf16 %v6422_v7 }
 0x338   : > { %3720 = vmatpush1.bf16.msra.mxu0 %v7106_v59  ;;  %3816 = vmatpush3.bf16.msra.mxu1 %v7109_v5  ;;  %v3723_v23 = vpack.c.bf16 %v2124_v52, %v2121_v13  ;;  %v3721_v8 = vpack.c.bf16 %v2125_v14, %v2122_v3  ;;  %v3731_v43 = vpack.c.bf16 %v6555_v55, %v6552_v56  ;;  %v4503_v6 = vunpack.i.h.bf16 %v6516_v44 }
 0x339   : > { %3818 = vmatprep.subr.bf16.mxu1 %v3817_v11  ;;  %v3819_v9 = vpack.c.bf16 %v1926_v26, %v1923_v36  ;;  %v3821_v12 = vpack.c.bf16 %v2508_v2, %v2505_v0  ;;  %v3729_v50 = vpack.c.bf16 %v2313_v17, %v2310_v53  ;;  %v4502_v59 = vunpack.i.l.bf16 %v6516_v44  ;;  %v6605_v11 = vpop.permute.xlu1 %4545  ;;  %v4531_v52 = vpop.permute.xlu0 %4530 }
 0x33a   : > { %3722 = vmatprep.subr.bf16.mxu0 %v3721_v8  ;;  %v2511_v7 = vsel %vm489_vm0, %v4467_v47, %v4468_v40  ;;  %v2514_v13 = vsel %vm489_vm0, %v4472_v4, %v4473_v46  ;;  %v4498_v3 = vunpack.i.h.bf16 %v6404_v41  ;;  %v4497_v36 = vunpack.i.l.bf16 %v6404_v41 }
 0x33b   : > { %v7110_v0 = vunpack.i.l.bf16 %v7061_v28  ;;  %v7111_v55 = vunpack.i.l.bf16 %v5996_v62  ;;  %v7112_v48 = vunpack.i.h.bf16 %v5859_v35  ;;  %v7113_v53 = vunpack.i.h.bf16 %v5892_v25 }
 0x33c   : > { %3724 = vmatpush1.bf16.msra.mxu0 %v3723_v23  ;;  %3820 = vmatpush3.bf16.msra.mxu1 %v3819_v9  ;;  %v4508_v26 = vunpack.i.h.bf16 %v6442_v39  ;;  %v4507_v17 = vunpack.i.l.bf16 %v6442_v39  ;;  %v4493_v28 = vunpack.i.h.bf16 %v6457_v31  ;;  %v4492_v62 = vunpack.i.l.bf16 %v6457_v31 }
 0x33d   : > { %v2316_v56 = vsel %vm458_vm15, %v4487_v1, %v7110_v0  ;;  %v2319_v2 = vsel %vm458_vm15, %v4488_v10, %v7111_v55  ;;  %v2111_v46 = vsel %vm422_vm6, %v7112_v48, %v4482_v22  ;;  %v2114_v40 = vsel %vm422_vm6, %v7113_v53, %v4483_v60  ;;  %3726 = vmatprep.subr.bf16.mxu0 %v3725_v34  ;;  %v6632_v14 = vpop.permute.xlu1 %4560 }
 0x33e   : > { %3822 = vmatprep.subr.bf16.mxu1 %v3821_v12  ;;  %v4537_v45 = vunpack.i.l.bf16 %v6574_v24  ;;  %v3825_v35 = vpack.c.bf16 %v2514_v13, %v2511_v7  ;;  %v4523_v37 = vunpack.i.h.bf16 %v6593_v32  ;;  %v4522_v25 = vunpack.i.l.bf16 %v6593_v32 }
 0x33f   : > { %v4538_v5 = vunpack.i.h.bf16 %v6574_v24  ;;  %v2520_v39 = vsel %vm489_vm0, %v4502_v59, %v4503_v6  ;;  %v3827_v34 = vpack.c.bf16 %v2114_v40, %v2111_v46  ;;  %v3733_v31 = vpack.c.bf16 %v2319_v2, %v2316_v56  ;;  %v6702_v24 = vld [vmem:[%s6763_s3 + $0x10] sm:$0xff] }
 0x340   : > { %3728 = vmatpush1.bf16.msra.mxu0 %v3727_v61  ;;  %3824 = vmatpush3.bf16.msra.mxu1 %v3823_v29  ;;  %v2517_v60 = vsel %vm489_vm0, %v4497_v36, %v4498_v3  ;;  %v7114_v22 = vunpack.i.h.bf16 %v7057_v58  ;;  %v7115_v8 = vunpack.i.h.bf16 %v7059_v42  ;;  %v4528_v15 = vunpack.i.h.bf16 %v6533_v63  ;;  %v4541_v61 = vpop.permute.xlu0 %4540 }
 0x341   : > { %v4527_v51 = vunpack.i.l.bf16 %v6533_v63  ;;  %3730 = vmatprep.subr.bf16.mxu0 %v3729_v50  ;;  %3826 = vmatprep.subr.bf16.mxu1 %v3825_v35  ;;  %v2318_v30 = vsel %vm458_vm15, %v4493_v28, %v4488_v10  ;;  %v2315_v33 = vsel %vm458_vm15, %v4492_v62, %v4487_v1  ;;  %v3829_v29 = vpack.c.bf16 %v2520_v39, %v2517_v60  ;;  %v4571_v1 = vpop.permute.xlu1 %4570 }
 0x342   : > { %v2117_v23 = vsel %vm422_vm6, %v7114_v22, %v4507_v17  ;;  %v2120_v9 = vsel %vm422_vm6, %v7115_v8, %v4508_v26  ;;  %v7116_v58 = vunpack.i.l.bf16 %v7085_v38  ;;  %v4533_v12 = vunpack.i.h.bf16 %v4531_v52 }
 0x343   : > { %v4532_v6 = vunpack.i.l.bf16 %v4531_v52  ;;  %v2523_v7 = vsel %vm489_vm0, %v4522_v25, %v4523_v37  ;;  %v7117_v50 = vunpack.i.l.bf16 %v6238_v16  ;;  %v3831_v10 = vpack.c.bf16 %v2120_v9, %v2117_v23 }
 0x344   : > { %v2504_v42 = vsel %vm489_vm0, %v4537_v45, %v7116_v58  ;;  %3732 = vmatpush1.bf16.msra.mxu0 %v3731_v43  ;;  %3828 = vmatpush3.bf16.msra.mxu1 %v3827_v34  ;;  %v3735_v3 = vpack.c.bf16 %v2318_v30, %v2315_v33  ;;  %v4513_v38 = vunpack.i.h.bf16 %v6482_v27  ;;  %v4512_v0 = vunpack.i.l.bf16 %v6482_v27  ;;  %v4551_v56 = vpop.permute.xlu0 %4550 }
 0x345   : > { %v2507_v13 = vsel %vm489_vm0, %v4538_v5, %v7117_v50  ;;  %3734 = vmatprep.subr.bf16.mxu0 %v3733_v31  ;;  %3830 = vmatprep.subr.bf16.mxu1 %v3829_v29  ;;  %v2526_v55 = vsel %vm489_vm0, %v4527_v51, %v4528_v15  ;;  %v4553_v2 = vunpack.i.h.bf16 %v4551_v56  ;;  %v4552_v16 = vunpack.i.l.bf16 %v4551_v56  ;;  %v6685_v23 = vpop.permute.xlu1 %4585  ;;  %v7123_v29 = vld [vmem:[#allocation10_spill] sm:$0xff] }
 0x346   : > { %v3833_v48 = vpack.c.bf16 %v2526_v55, %v2523_v7  ;;  %v3741_v46 = vpack.c.bf16 %v2507_v13, %v2504_v42  ;;  %v7118_v43 = vunpack.i.h.bf16 %v6018_v21  ;;  %v2126_v40 = vsel %vm422_vm6, %v4518_v18, %v4533_v12 }
 0x347   : > { %v4543_v27 = vunpack.i.h.bf16 %v4541_v61  ;;  %v4542_v26 = vunpack.i.l.bf16 %v4541_v61  ;;  %v2324_v17 = vsel %vm458_vm15, %v4513_v38, %v4553_v2  ;;  %v2321_v52 = vsel %vm458_vm15, %v4512_v0, %v4552_v16  ;;  %v7121_v61 = vld [vmem:[#allocation13_spill] sm:$0xff]  ;;  %v7127_v38 = vld [vmem:[#allocation31_spill] sm:$0xff] }
 0x348   : > { %v2123_v53 = vsel %vm422_vm6, %v7118_v43, %v4532_v6  ;;  %3736 = vmatpush1.bf16.msra.mxu0 %v3735_v3  ;;  %3832 = vmatpush3.bf16.msra.mxu1 %v3831_v10  ;;  %v7119_v28 = vunpack.i.l.bf16 %v6060_v57  ;;  %v4548_v21 = vunpack.i.h.bf16 %v6605_v11  ;;  %v4547_v35 = vunpack.i.l.bf16 %v6605_v11  ;;  %v4556_v49 = vpop.permute.xlu0 %4555  ;;  %v7125_v10 = vld [vmem:[#allocation21_spill] sm:$0xff] }
 0x349   : > { %v3739_v37 = vpack.c.bf16 %v2324_v17, %v2321_v52  ;;  %3834 = vmatprep.subr.bf16.mxu1 %v3833_v48  ;;  %v7120_v18 = vunpack.i.l.bf16 %v6071_v19  ;;  %v3835_v34 = vpack.c.bf16 %v2126_v40, %v2123_v53  ;;  %v4558_v31 = vunpack.i.h.bf16 %v4556_v49 }
 0x34a   : > { %v2322_v62 = vsel %vm458_vm15, %v4552_v16, %v7119_v28  ;;  %v4557_v60 = vunpack.i.l.bf16 %v4556_v49  ;;  %v2506_v57 = vsel %vm489_vm0, %v4543_v27, %v4538_v5  ;;  %v2503_v8 = vsel %vm489_vm0, %v4542_v26, %v4537_v45 }
 0x34b   : > { %v2325_v39 = vsel %vm458_vm15, %v4553_v2, %v7120_v18  ;;  %v4573_v11 = vunpack.i.h.bf16 %v4571_v1  ;;  %v4572_v9 = vunpack.i.l.bf16 %v4571_v1  ;;  %v4563_v15 = vunpack.i.h.bf16 %v6632_v14  ;;  %v4591_v2 = vpop.permute.xlu1 %4590 }
 0x34c   : > { %v3737_v22 = vpack.c.bf16 %v2325_v39, %v2322_v62  ;;  %v4562_v19 = vunpack.i.l.bf16 %v6632_v14  ;;  %v7122_v30 = vunpack.i.h.bf16 %v7121_v61  ;;  %v7124_v58 = vunpack.i.h.bf16 %v7123_v29  ;;  %3836 = vmatpush3.bf16.msra.mxu1 %v3835_v34  ;;  %v4566_v5 = vpop.permute.xlu0 %4565  ;;  %v7132_v39 = vld [vmem:[#allocation36_spill] sm:$0xff]  ;;  %v7138_v29 = vld [vmem:[#allocation19_spill] sm:$0xff] }
 0x34d   : > { %v4636_v12 = vmov 0.0|0.0   ;;  %v2510_v14 = vsel %vm489_vm0, %v4547_v35, %v4467_v47  ;;  %v2513_v6 = vsel %vm489_vm0, %v4548_v21, %v4472_v4  ;;  %v3743_v7 = vpack.c.bf16 %v2506_v57, %v2503_v8 }
 0x34e   : > { %v2708_v33 = vsel %vm516_vm8, %v7122_v30, %v4558_v31  ;;  %v2705_v42 = vsel %vm516_vm8, %v7124_v58, %v4557_v60  ;;  %3738 = vmatprep.subr.bf16.mxu0 %v3737_v22  ;;  %3837 = vmatprep.subr.bf16.mxu1 %v4636_v12  ;;  %v4568_v50 = vunpack.i.h.bf16 %v4566_v5  ;;  %v4567_v13 = vunpack.i.l.bf16 %v4566_v5 }
 0x34f   : > { %v3838_v45 = vpack.c.bf16 %v2708_v33, %v2705_v42  ;;  %3740 = vmatpush1.bf16.msra.mxu0 %v3739_v37  ;;  %v7126_v1 = vunpack.i.h.bf16 %v7125_v10  ;;  %v7128_v0 = vunpack.i.h.bf16 %v7127_v38  ;;  %v4588_v20 = vunpack.i.h.bf16 %v6685_v23  ;;  %3353 = vmatmul.mubr.f32.vlgmr.msra.gmra.mrb[20].mxu1 %v6702_v24 }
 0x350   : > { %3742 = vmatprep.subr.bf16.mxu0 %v3741_v46  ;;  %v4587_v47 = vunpack.i.l.bf16 %v6685_v23  ;;  %v2509_v54 = vsel %vm489_vm0, %v4562_v19, %v4547_v35  ;;  %v2512_v4 = vsel %vm489_vm0, %v4563_v15, %v4548_v21  ;;  %v3745_v55 = vpack.c.bf16 %v2513_v6, %v2510_v14  ;;  %v4576_v48 = vpop.permute.xlu0 %4575  ;;  %v7136_v19 = vld [vmem:[#allocation40_spill] sm:$0xff] }
 0x351   : > { %v2711_v3 = vsel %vm516_vm8, %v7126_v1, %v4572_v9  ;;  %v2714_v56 = vsel %vm516_vm8, %v7128_v0, %v4573_v11  ;;  %3839 = vmatpush3.bf16.msra.mxu1 %v3838_v45  ;;  %vm4637_vm1 = vmmov 0   ;;  %v7129_v16 = vmov 0.0   ;;  %v7134_v11 = vld [vmem:[#allocation44_spill] sm:$0xff] }
 0x352   : > { %3610 = vmatprep.mubr.msk.f32.mxu1 %vm4637_vm1, %v7129_v16  ;;  %3840 = vmatprep.subr.bf16.mxu1 %v4636_v12  ;;  %v2516_v46 = vsel %vm489_vm0, %v4567_v13, %v4497_v36  ;;  %v2519_v43 = vsel %vm489_vm0, %v4568_v50, %v4502_v59  ;;  %v3841_v53 = vpack.c.bf16 %v2714_v56, %v2711_v3  ;;  %v4578_v40 = vunpack.i.h.bf16 %v4576_v48 }
 0x353   : > { %3744 = vmatpush1.bf16.msra.mxu0 %v3743_v7  ;;  %v4577_v27 = vunpack.i.l.bf16 %v4576_v48  ;;  %v3747_v26 = vpack.c.bf16 %v2512_v4, %v2509_v54  ;;  %v4593_v17 = vunpack.i.h.bf16 %v4591_v2  ;;  %v2522_v52 = vsel %vm489_vm0, %v4587_v47, %v4522_v25  ;;  %v3000_v7 = vpop.permute.xlu1 %2999 }
 0x354   : > { %3746 = vmatprep.subr.bf16.mxu0 %v3745_v55  ;;  %v2525_v41 = vsel %vm489_vm0, %v4588_v20, %v4527_v51  ;;  %v2518_v44 = vsel %vm489_vm0, %v4578_v40, %v4568_v50  ;;  %v4592_v28 = vunpack.i.l.bf16 %v4591_v2  ;;  %v3749_v59 = vpack.c.bf16 %v2519_v43, %v2516_v46  ;;  %v4581_v21 = vpop.permute.xlu0 %4580  ;;  %v7130_v51 = vld [vmem:[#allocation41_spill] sm:$0xff] }
 0x355   : > { %v2515_v36 = vsel %vm489_vm0, %v4577_v27, %v4567_v13  ;;  %3842 = vmatpush3.bf16.msra.mxu1 %v3841_v53  ;;  %v4583_v35 = vunpack.i.h.bf16 %v4581_v21  ;;  %v4582_v37 = vunpack.i.l.bf16 %v4581_v21  ;;  %v3753_v32 = vpack.c.bf16 %v2525_v41, %v2522_v52 }
 0x356   : > { %v3751_v62 = vpack.c.bf16 %v2518_v44, %v2515_v36  ;;  %3843 = vmatprep.subr.bf16.mxu1 %v4636_v12  ;;  %v2521_v25 = vsel %vm489_vm0, %v4592_v28, %v4587_v47  ;;  %v2524_v63 = vsel %vm489_vm0, %v4593_v17, %v4588_v20  ;;  %v7131_v49 = vunpack.i.h.bf16 %v7130_v51 }
 0x357   : > { %3748 = vmatpush1.bf16.msra.mxu0 %v3747_v26  ;;  %v7133_v34 = vunpack.i.h.bf16 %v7132_v39  ;;  %v3755_v8 = vpack.c.bf16 %v2524_v63, %v2521_v25  ;;  %v7135_v9 = vunpack.i.h.bf16 %v7134_v11  ;;  %v7137_v61 = vunpack.i.h.bf16 %v7136_v19 }
 0x358   : > { %3750 = vmatprep.subr.bf16.mxu0 %v3749_v59  ;;  %v2720_v18 = vsel %vm516_vm8, %v7131_v49, %v4583_v35  ;;  %v4596_v22 = vpop.permute.xlu0 %4595 }
 0x359   : > { %v2717_v31 = vsel %vm516_vm8, %v7133_v34, %v4582_v37  ;;  %v4598_v23 = vunpack.i.h.bf16 %v4596_v22  ;;  %v4597_v57 = vunpack.i.l.bf16 %v4596_v22 }
 0x35a   : > { %v3844_v60 = vpack.c.bf16 %v2720_v18, %v2717_v31 }
 0x35b   : > { %3752 = vmatpush1.bf16.msra.mxu0 %v3751_v62  ;;  %v2723_v15 = vsel %vm516_vm8, %v7135_v9, %v4597_v57  ;;  %v2726_v30 = vsel %vm516_vm8, %v7137_v61, %v4598_v23 }
 0x35c   : > { %3754 = vmatprep.subr.bf16.mxu0 %v3753_v32  ;;  %3845 = vmatpush3.bf16.msra.mxu1 %v3844_v60  ;;  %v3847_v33 = vpack.c.bf16 %v2726_v30, %v2723_v15 }
 0x35d   : > { %3846 = vmatprep.subr.bf16.mxu1 %v4636_v12 }
 0x35f   : > { %3756 = vmatpush1.bf16.msra.mxu0 %v3755_v8 }
 0x360   : > { %3848 = vmatpush3.bf16.msra.mxu1 %v3847_v33 }
 0x362   : > { %3141 = vmatmul.mubr.f32.vlgmr.msra.gmra.mrb[16].mxu0 %v6702_v24 }
 0x363   : > { %3611 = vmatmul.mubr.msk.f32.vlgmr.msra.gmra.mrb[22].mxu1 %vm945_vm7, %v7138_v29 }
 0x3d7   : > { %v3213_v58 = vpop.f32.mrb[16].mxu1 }
 0x3d8   : > { %v3215_v42 = vpop.f32.mrb[17].mxu1 }
 0x400   : > { %v3547_v45 = vpop.f32.mrb[18].mxu1 }
 0x401   : > { %v3548_v5 = vpop.f32.mrb[19].mxu1 }
 0x402   : > { %v3549_v14 = vadd.f32 %v3548_v5, %v3547_v45 }
 0x404   : > { %v3285_v13 = vadd.f32 %v3549_v14, %v3000_v7 }
 0x422   : > { %v3582_v6 = vpop.f32.mrb[20].mxu1 }
 0x423   : > { %v3583_v50 = vpop.f32.mrb[21].mxu1 }
 0x424   : > { %v3584_v10 = vadd.f32 %v3583_v50, %v3582_v6 }
 0x426   : > { %v3355_v12 = vadd.f32 %v3584_v10, %v3285_v13 }
 0x435   : > { %v3142_v1 = vpop.f32.mrb[16].mxu0 }
 0x436   : > { %v3849_v3 = vadd.f32 %v3142_v1, %v3000_v7  ;;  %v3144_v38 = vpop.f32.mrb[17].mxu0  ;;  %v3424_v0 = vpop.f32.mrb[22].mxu1 }
 0x437   : > { %v3851_v24 = vadd.f32 %v3144_v38, %v3000_v7  ;;  %v3425_v20 = vadd.f32 %v3424_v0, %v3355_v12  ;;  %v3612_v47 = vpop.f32.mrb[23].mxu1 }
 0x438   : > { %v3850_v56 = vadd.f32 %v3849_v3, %v3213_v58 }
 0x439   : > { %v3852_v54 = vadd.f32 %v3851_v24, %v3215_v42  ;;  %3430 = vst [vmem:[%s251_s13 + $0x10] sm:$0xff] %v3425_v20 }
 0x43a   : > { %3428 = vst [vmem:[%s251_s13] sm:$0xff] %v3850_v56 }
 0x43b   : > { %3429 = vst [vmem:[%s251_s13 + $0x8] sm:$0xff] %v3852_v54 }
 0x43c PF: > { %s16_s21 = sadd.s32 1, %s4623_s21  }
 0x43d   : > { %p13_p4 = scmp.ge.s32.totalorder %s16_s21, 4  }
 0x43f   :  { %15 = sbr.rel (!%p13_p4) target bundleno = 1 (0x1), region = 74 }

</bundles_post_ra>
